<compile_context>
chip_gen: v7x
topology: tpu7x:2x2x1
jax: 0.10.0
libtpu: 0.0.40
codegen_flags: <defaults>
</compile_context>

<pallas_src>
import functools

import jax
import jax.numpy as jnp
import numpy as np
from jax.experimental import pallas as pl
from jax.experimental.pallas import tpu as pltpu

# ---- component defaults (openpifpaf losses/components.py) -------------------
_BCE_BACKGROUND_CLAMP = -15.0
_BCE_FOCAL_GAMMA = 1.0
_BCE_FOCAL_ALPHA = 0.5
_SOFT_CLAMP_VALUE = 5.0
_SCALE_RELATIVE_EPS = 0.1


def _soft_clamp(v, *, gate, max_value=_SOFT_CLAMP_VALUE):
    """components.SoftClamp.  With gate=True the whole-tile log is skipped
    (lax.cond) when no element exceeds max_value — saves ~1 EUP op/element in the
    common case.  Inputs must already be masked (invalid lanes = 0) so jnp.max is
    NaN-free."""
    def _clamp(u):
        return jnp.where(u > max_value, max_value + jnp.log(u - max_value + 1.0), u)
    if not gate:
        return _clamp(v)
    return jax.lax.cond(jnp.max(v) > max_value, _clamp, lambda u: u, v)


def _bce(x, t, mask, recip, clamp):
    """components.Bce with default focal terms (elementwise, no reduction)."""
    t01 = jnp.where(t > 0.0, 1.0, t)
    x = jnp.where((t01 == 0.0) & (x < _BCE_BACKGROUND_CLAMP), _BCE_BACKGROUND_CLAMP, x)
    e = jnp.exp(-jnp.abs(x))                        # shared transcendental
    one_pe = 1.0 + e
    bce = jnp.maximum(x, 0.0) - x * t01 + jnp.log(one_pe)   # stable BCE-with-logits
    bce = clamp(jnp.where(mask, bce, 0.0))                  # pre-mask -> NaN-free clamp gate
    p = jnp.where(x >= 0.0, 1.0, e) * recip(one_pe)         # sigmoid from shared e
    pt = p * t01 + (1.0 - p) * (1.0 - t01)
    focal = 1.0 - pt
    if _BCE_FOCAL_GAMMA != 1.0:
        focal = (focal + 1e-4) ** _BCE_FOCAL_GAMMA
    return focal * bce * _BCE_FOCAL_ALPHA


def _laplace(x1, x2, logb, t1, t2, bmin, mask, clamp):
    """components.Laplace (elementwise)."""
    norm = jnp.sqrt((x1 - t1) ** 2 + (x2 - t2) ** 2)
    logb = 3.0 * jnp.tanh(logb / 3.0)
    v = logb + (norm + bmin) * jnp.exp(-logb)
    return clamp(jnp.where(mask, v, 0.0))


def _scale(x, t, mask, recip, clamp):
    """components.Scale (relative L1, elementwise)."""
    softplus = jnp.maximum(x, 0.0) + jnp.log(1.0 + jnp.exp(-jnp.abs(x)))
    d = jnp.abs(softplus - t) * recip(_SCALE_RELATIVE_EPS + t)
    return clamp(jnp.where(mask, d, 0.0))


# ------------------------------- kernel --------------------------------------
def _loss_kernel(*refs, n_vectors, n_scales, n_rows, tn, row_blocks, rb_per_core,
                 gate_soft_clamp):
    n_ch = 1 + 3 * n_vectors + n_scales
    x_refs = refs[:n_ch]
    t_refs = refs[n_ch:2 * n_ch]
    w_ref = refs[2 * n_ch]           # (tn, 128) per-row training weights (lane-replicated)
    out_ref = refs[2 * n_ch + 1]     # (1, n_losses, tn, tl) resident accumulator block

    g = pl.program_id(0)             # partial / TensorCore index
    i = pl.program_id(1)             # row block within this partial
    j = pl.program_id(2)             # lane block

    @pl.when((i == 0) & (j == 0))
    def _init():
        out_ref[...] = jnp.zeros_like(out_ref)

    # Global row block handled this step.  When row_blocks is odd the last core
    # gets a phantom step (clamped onto the last real block in the index maps);
    # it is fully masked out here.
    gb = g * rb_per_core + i
    live = gb < row_blocks
    row0 = jnp.minimum(gb, row_blocks - 1) * tn
    riota = jax.lax.broadcasted_iota(jnp.int32, (tn, 1), 0)
    row_ok = jnp.logical_and((row0 + riota) < n_rows, live)      # (tn, 1)

    w_col = w_ref[:, 0:1]            # (tn, 1) per-row weight column

    recip = lambda v: pl.reciprocal(v, approx=True)
    clamp = functools.partial(_soft_clamp, gate=gate_soft_clamp)

    def mask_for(t_chan):
        return jnp.logical_and(jnp.logical_not(jnp.isnan(t_chan)), row_ok)

    def accumulate(k, vals, mask):
        # weight rows and add into the resident VMEM slab; final reduce is done
        # in the wrapper (better numerics, no per-step XLU/SMEM work).
        out_ref[0, k] += jnp.where(mask, vals, 0.0) * w_col

    # --- confidence (channel 0, Bce) ---
    tc = t_refs[0][...].astype(jnp.float32)
    xc = x_refs[0][...].astype(jnp.float32)
    m = mask_for(tc)
    accumulate(0, _bce(xc, tc, m, recip, clamp), m)

    # --- regression vectors (Laplace) ---
    for v in range(n_vectors):
        c1 = 1 + 2 * v
        c2 = c1 + 1
        cb = 1 + 2 * n_vectors + v
        t1 = t_refs[c1][...].astype(jnp.float32)
        m = mask_for(t1)
        vals = _laplace(x_refs[c1][...].astype(jnp.float32),
                        x_refs[c2][...].astype(jnp.float32),
                        x_refs[cb][...].astype(jnp.float32),
                        t1,
                        t_refs[c2][...].astype(jnp.float32),
                        t_refs[cb][...].astype(jnp.float32),
                        m, clamp)
        accumulate(1 + v, vals, m)

    # --- scales ---
    for s in range(n_scales):
        cs = 1 + 3 * n_vectors + s
        ts = t_refs[cs][...].astype(jnp.float32)
        m = mask_for(ts)
        accumulate(1 + n_vectors + s,
                   _scale(x_refs[cs][...].astype(jnp.float32), ts, m, recip, clamp), m)


# ------------------------------- wrapper --------------------------------------
def _pick_tiles(l_pad, n_ch, n_losses, tn, tl_cap, budget_bytes):
    """Largest (tn, tl) whose double-buffered VMEM footprint fits the data budget."""
    tl_cap = max(128, (tl_cap // 128) * 128)
    cands = [d for d in range(128, min(tl_cap, l_pad) + 1, 128) if l_pad % d == 0]
    if not cands:
        cands = [128]

    def footprint(tn_, tl_):
        data = 2 * (2 * n_ch) * tn_ * tl_ * 4      # x & t channel blocks, double-buffered
        out = 2 * n_losses * tn_ * tl_ * 4         # resident accumulator block
        w = 2 * tn_ * 128 * 4                      # weight block
        return data + out + w

    tl = cands[0]
    for d in cands:
        if footprint(tn, d) <= budget_bytes:
            tl = d
    while tn > 8 and footprint(tn, tl) > budget_bytes:
        tn -= 8
    return tn, tl


def composite_loss_by_component(x, t, training_weights=None, *, n_vectors, n_scales,
                                prescale=1.0, tn=16, tl_cap=4096,
                                vmem_budget_bytes=24 * 1024 * 1024,
                                vmem_limit_bytes=48 * 1024 * 1024,
                                num_partials=2, gate_soft_clamp=True):
    """x, t: [B, n_fields, C, H, W]; returns (1 + n_vectors + n_scales,) f32 losses.

    vmem_budget_bytes / vmem_limit_bytes should be re-derived per generation:
    v5e (16 MiB default scoped / 128 MiB physical), v6e (32/128), v7x (32/64).
    Defaults (24 / 48 MiB) are safe on all three.
    """
    B, F, C, H, W = x.shape
    assert C == 1 + 3 * n_vectors + n_scales
    assert t.shape == x.shape
    n_losses = 1 + n_vectors + n_scales
    L = H * W
    N = B * F

    # ---- lane layout: [B,F,C,H,W] -> [N, C*L_pad]; channel c -> cols [c*L_pad, (c+1)*L_pad)
    gran = 128 if L % 128 == 0 else max(128, min((tl_cap // 128) * 128, 1024))
    L_pad = ((L + gran - 1) // gran) * gran
    if L_pad == L:
        x2 = x.reshape(N, C * L)                    # free row-major reshape, no HBM copy
        t2 = t.reshape(N, C * L)
    else:
        # TODO(synk): only hit when H*W is not 128-aligned — this pad is one extra HBM copy.
        x2 = jnp.pad(x.reshape(B, F, C, L),
                     ((0, 0), (0, 0), (0, 0), (0, L_pad - L))).reshape(N, C * L_pad)
        t2 = jnp.pad(t.reshape(B, F, C, L),
                     ((0, 0), (0, 0), (0, 0), (0, L_pad - L)),
                     constant_values=jnp.nan).reshape(N, C * L_pad)

    # ---- row tiling (no HBM row padding: ragged last block is masked in-kernel)
    tn = max(8, (tn // 8) * 8)
    if N < 8:
        # TODO(synk): tiny-batch corner (B*F < 8 sublanes) — pad rows once to the 8-row minimum.
        x2 = jnp.pad(x2, ((0, 8 - N), (0, 0)))
        t2 = jnp.pad(t2, ((0, 8 - N), (0, 0)), constant_values=jnp.nan)
    rows = x2.shape[0]
    tn = min(tn, (rows // 8) * 8)

    tn, tl = _pick_tiles(L_pad, C, n_losses, tn, tl_cap, vmem_budget_bytes)
    n_j = L_pad // tl
    row_blocks = -(-rows // tn)
    rb_per_core = -(-row_blocks // num_partials)

    # ---- per-row training weights: tiny (row_blocks*tn, 128) f32, one j-invariant block/row-block
    if training_weights is None:
        w_rows = jnp.ones((F,), jnp.float32)
    else:
        w_rows = jnp.asarray(training_weights, jnp.float32).reshape(F)
    w_rows = jnp.tile(w_rows, (B,))
    w_rows = jnp.pad(w_rows, (0, row_blocks * tn - N))
    w2d = jnp.tile(w_rows[:, None], (1, 128))

    def row_block_index(g, i):
        # clamp phantom steps (odd row_blocks) onto the last real block; the
        # in-kernel mask zeroes their contribution.
        return jnp.minimum(g * rb_per_core + i, row_blocks - 1)

    def ch_spec(c):
        return pl.BlockSpec((tn, tl),
                            lambda g, i, j, c=c: (row_block_index(g, i), c * n_j + j))

    in_specs = ([ch_spec(c) for c in range(C)]          # x channels
                + [ch_spec(c) for c in range(C)]        # t channels
                + [pl.BlockSpec((tn, 128), lambda g, i, j: (row_block_index(g, i), 0))])
    out_specs = pl.BlockSpec((1, n_losses, tn, tl), lambda g, i, j: (g, 0, 0, 0))

    kernel = functools.partial(
        _loss_kernel, n_vectors=n_vectors, n_scales=n_scales, n_rows=N, tn=tn,
        row_blocks=row_blocks, rb_per_core=rb_per_core, gate_soft_clamp=gate_soft_clamp)

    cost = pl.CostEstimate(
        flops=int(30 * N * C * L),
        transcendentals=int(4 * N * C * L),
        bytes_accessed=int(2 * N * C * L_pad * x.dtype.itemsize
                           + num_partials * n_losses * tn * tl * 4))

    partials = pl.pallas_call(
        kernel,
        out_shape=jax.ShapeDtypeStruct((num_partials, n_losses, tn, tl), jnp.float32),
        grid=(num_partials, rb_per_core, n_j),
        in_specs=in_specs,
        out_specs=out_specs,
        compiler_params=pltpu.CompilerParams(
            dimension_semantics=("parallel", "arbitrary", "arbitrary"),
            vmem_limit_bytes=int(vmem_limit_bytes)),
        cost_estimate=cost,
    )(*([x2] * C + [t2] * C + [w2d]))

    losses = jnp.sum(partials, axis=(0, 2, 3)) / jnp.float32(B)
    if prescale != 1.0:
        losses = losses * jnp.float32(prescale)
    return losses


# ------------------------------- reference ------------------------------------
def _reference_losses(x, t, training_weights=None, *, n_vectors, n_scales, prescale=1.0):
    """Pure-JAX mirror of the module (exact divide, ungated elementwise soft clamp)."""
    B, F = x.shape[0], x.shape[1]
    if training_weights is None:
        w = jnp.ones((1, F, 1, 1), jnp.float32)
    else:
        w = jnp.asarray(training_weights, jnp.float32).reshape(1, F, 1, 1)
    recip = lambda v: 1.0 / v
    clamp = functools.partial(_soft_clamp, gate=False)
    x = x.astype(jnp.float32)
    t = t.astype(jnp.float32)
    losses = []
    tc = t[:, :, 0]
    m = jnp.logical_not(jnp.isnan(tc))
    losses.append(jnp.sum(jnp.where(m, _bce(x[:, :, 0], tc, m, recip, clamp) * w, 0.0)) / B)
    for i in range(n_vectors):
        c1, c2, cb = 1 + 2 * i, 2 + 2 * i, 1 + 2 * n_vectors + i
        m = jnp.logical_not(jnp.isnan(t[:, :, c1]))
        l = _laplace(x[:, :, c1], x[:, :, c2], x[:, :, cb],
                     t[:, :, c1], t[:, :, c2], t[:, :, cb], m, clamp)
        losses.append(jnp.sum(jnp.where(m, l * w, 0.0)) / B)
    for i in range(n_scales):
        cs = 1 + 3 * n_vectors + i
        m = jnp.logical_not(jnp.isnan(t[:, :, cs]))
        l = _scale(x[:, :, cs], t[:, :, cs], m, recip, clamp)
        losses.append(jnp.sum(jnp.where(m, l * w, 0.0)) / B)
    out = jnp.stack(losses)
    if prescale != 1.0:
        out = out * jnp.float32(prescale)
    return out


if __name__ == "__main__":
    B, F, H, W = 4, 6, 16, 16          # batch, n_fields, spatial
    n_vectors, n_scales = 2, 2
    C = 1 + 3 * n_vectors + n_scales   # = 9

    key = jax.random.PRNGKey(0)
    k_x, k_conf, k_reg, k_sc, k_nan = jax.random.split(key, 5)

    # predictions: raw network outputs (logits / vectors / logb / scale logits)
    x = jax.random.normal(k_x, (B, F, C, H, W), jnp.float32)

    # targets: conf in {0,1}, vector targets, bmin channels, positive scales
    t_conf = (jax.random.uniform(k_conf, (B, F, 1, H, W)) > 0.5).astype(jnp.float32)
    t_vec = jax.random.normal(k_reg, (B, F, 2 * n_vectors, H, W), jnp.float32)
    t_bmin = jnp.full((B, F, n_vectors, H, W), 0.1, jnp.float32)
    t_scales = jax.random.uniform(k_sc, (B, F, n_scales, H, W), jnp.float32,
                                  minval=0.5, maxval=2.0)
    t = jnp.concatenate([t_conf, t_vec, t_bmin, t_scales], axis=2)

    # sprinkle NaNs into the mask-defining target channels (conf, vec-x, scales)
    nan_channels = ([0]
                    + [1 + 2 * i for i in range(n_vectors)]
                    + [1 + 3 * n_vectors + i for i in range(n_scales)])
    nan_keys = jax.random.split(k_nan, len(nan_channels))
    for kk, c in zip(nan_keys, nan_channels):
        nan_mask = jax.random.uniform(kk, (B, F, H, W)) < 0.3
        t = t.at[:, :, c].set(jnp.where(nan_mask, jnp.nan, t[:, :, c]))

    # deterministic per-field training weights (head_meta.training_weights)
    training_weights = jnp.array([1.0, 0.5, 2.0, 1.5, 0.75, 1.25], jnp.float32)

    # tn=8 / tl_cap=128 force a (2, 2, 2) grid at this small demo size so the
    # accumulator init / accumulate / phantom-block paths are exercised;
    # production defaults are tn=16, tl_cap=4096.
    out = composite_loss_by_component(
        x, t, training_weights, n_vectors=n_vectors, n_scales=n_scales,
        tn=8, tl_cap=128)
    out = jax.block_until_ready(out)

    ref = _reference_losses(x, t, training_weights,
                            n_vectors=n_vectors, n_scales=n_scales)

    # approx EUP reciprocal inside the kernel (exact divide in the reference) and a
    # different summation order -> compare at 1% relative tolerance.
    np.testing.assert_allclose(np.asarray(out), np.asarray(ref), rtol=1e-2, atol=1e-2)
    assert np.all(np.isfinite(np.asarray(out)))
    print("KERNEL_OK")
</pallas_src>

<mosaic_0001>
module attributes {stable_mosaic.version = 11 : i64} {
  func.func @_loss_kernel(%arg0: i32, %arg1: i32, %arg2: i32, %arg3: memref<8x128xf32, #tpu.memory_space<vmem>>, %arg4: memref<8x128xf32, #tpu.memory_space<vmem>>, %arg5: memref<8x128xf32, #tpu.memory_space<vmem>>, %arg6: memref<8x128xf32, #tpu.memory_space<vmem>>, %arg7: memref<8x128xf32, #tpu.memory_space<vmem>>, %arg8: memref<8x128xf32, #tpu.memory_space<vmem>>, %arg9: memref<8x128xf32, #tpu.memory_space<vmem>>, %arg10: memref<8x128xf32, #tpu.memory_space<vmem>>, %arg11: memref<8x128xf32, #tpu.memory_space<vmem>>, %arg12: memref<8x128xf32, #tpu.memory_space<vmem>>, %arg13: memref<8x128xf32, #tpu.memory_space<vmem>>, %arg14: memref<8x128xf32, #tpu.memory_space<vmem>>, %arg15: memref<8x128xf32, #tpu.memory_space<vmem>>, %arg16: memref<8x128xf32, #tpu.memory_space<vmem>>, %arg17: memref<8x128xf32, #tpu.memory_space<vmem>>, %arg18: memref<8x128xf32, #tpu.memory_space<vmem>>, %arg19: memref<8x128xf32, #tpu.memory_space<vmem>>, %arg20: memref<8x128xf32, #tpu.memory_space<vmem>>, %arg21: memref<8x128xf32, #tpu.memory_space<vmem>>, %arg22: memref<1x5x8x128xf32, #tpu.memory_space<vmem>>) attributes {dimension_semantics = [#tpu.dimension_semantics<parallel>, #tpu.dimension_semantics<arbitrary>, #tpu.dimension_semantics<arbitrary>], iteration_bounds = array<i64: 2, 2, 2>, scalar_prefetch = 0 : i64, scratch_operands = 0 : i64, tpu.core_type = #tpu.core_type<tc>, window_params = [{transform_indices = @transform_0, window_bounds = array<i64: 8, 128>}, {transform_indices = @transform_1, window_bounds = array<i64: 8, 128>}, {transform_indices = @transform_2, window_bounds = array<i64: 8, 128>}, {transform_indices = @transform_3, window_bounds = array<i64: 8, 128>}, {transform_indices = @transform_4, window_bounds = array<i64: 8, 128>}, {transform_indices = @transform_5, window_bounds = array<i64: 8, 128>}, {transform_indices = @transform_6, window_bounds = array<i64: 8, 128>}, {transform_indices = @transform_7, window_bounds = array<i64: 8, 128>}, {transform_indices = @transform_8, window_bounds = array<i64: 8, 128>}, {transform_indices = @transform_9, window_bounds = array<i64: 8, 128>}, {transform_indices = @transform_10, window_bounds = array<i64: 8, 128>}, {transform_indices = @transform_11, window_bounds = array<i64: 8, 128>}, {transform_indices = @transform_12, window_bounds = array<i64: 8, 128>}, {transform_indices = @transform_13, window_bounds = array<i64: 8, 128>}, {transform_indices = @transform_14, window_bounds = array<i64: 8, 128>}, {transform_indices = @transform_15, window_bounds = array<i64: 8, 128>}, {transform_indices = @transform_16, window_bounds = array<i64: 8, 128>}, {transform_indices = @transform_17, window_bounds = array<i64: 8, 128>}, {transform_indices = @transform_18, window_bounds = array<i64: 8, 128>}, {transform_indices = @transform_19, window_bounds = array<i64: 1, 5, 8, 128>}]} {
    %c0_i32 = arith.constant 0 : i32
    %0 = arith.cmpi eq, %arg1, %c0_i32 : i32
    %c0_i32_0 = arith.constant 0 : i32
    %1 = arith.cmpi eq, %arg2, %c0_i32_0 : i32
    %2 = arith.andi %0, %1 : i1
    %3 = arith.extui %2 : i1 to i32
    %c0_i32_1 = arith.constant 0 : i32
    %4 = arith.cmpi ne, %3, %c0_i32_1 : i32
    scf.if %4 {
      %cst_133 = arith.constant 0.000000e+00 : f32
      %263 = vector.broadcast %cst_133 : f32 to vector<1x5x8x128xf32>
      %c0_134 = arith.constant 0 : index
      %c0_135 = arith.constant 0 : index
      %c0_136 = arith.constant 0 : index
      %c0_137 = arith.constant 0 : index
      %264 = vector.load %arg22[%c0_134, %c0_135, %c0_136, %c0_137] : memref<1x5x8x128xf32, #tpu.memory_space<vmem>>, vector<1x5x8x128xf32>
      tpu.vector_store %arg22[%c0_134, %c0_135, %c0_136, %c0_137], %263 {strides = array<i32>} : memref<1x5x8x128xf32, #tpu.memory_space<vmem>>, vector<1x5x8x128xf32>,
    } else {
    }
    %c2_i32 = arith.constant 2 : i32
    %5 = arith.muli %arg0, %c2_i32 : i32
    %6 = arith.addi %5, %arg1 : i32
    %c3_i32 = arith.constant 3 : i32
    %7 = arith.cmpi slt, %6, %c3_i32 : i32
    %c2_i32_2 = arith.constant 2 : i32
    %8 = arith.minsi %6, %c2_i32_2 : i32
    %c8_i32 = arith.constant 8 : i32
    %9 = arith.muli %8, %c8_i32 : i32
    %10 = tpu.iota {dimensions = array<i32: 0>} : vector<8x1xi32>
    %11 = vector.broadcast %9 : i32 to vector<8x1xi32>
    %12 = arith.addi %11, %10 : vector<8x1xi32>
    %c24_i32 = arith.constant 24 : i32
    %13 = vector.broadcast %c24_i32 : i32 to vector<8x1xi32>
    %14 = arith.cmpi slt, %12, %13 : vector<8x1xi32>
    %15 = vector.broadcast %7 : i1 to vector<8x1xi1>
    %16 = arith.andi %14, %15 : vector<8x1xi1>
    %c0 = arith.constant 0 : index
    %c0_3 = arith.constant 0 : index
    %17 = vector.load %arg21[%c0, %c0_3] : memref<8x128xf32, #tpu.memory_space<vmem>>, vector<8x1xf32>
    %c0_4 = arith.constant 0 : index
    %c0_5 = arith.constant 0 : index
    %18 = vector.load %arg12[%c0_4, %c0_5] : memref<8x128xf32, #tpu.memory_space<vmem>>, vector<8x128xf32>
    %c0_6 = arith.constant 0 : index
    %c0_7 = arith.constant 0 : index
    %19 = vector.load %arg3[%c0_6, %c0_7] : memref<8x128xf32, #tpu.memory_space<vmem>>, vector<8x128xf32>
    %20 = arith.cmpf one, %18, %18 : vector<8x128xf32>
    %cst = arith.constant dense<true> : vector<8x128xi1>
    %21 = arith.xori %20, %cst : vector<8x128xi1>
    %22 = vector.broadcast %16 : vector<8x1xi1> to vector<8x128xi1>
    %23 = arith.andi %21, %22 : vector<8x128xi1>
    %cst_8 = arith.constant 0.000000e+00 : f32
    %24 = vector.broadcast %cst_8 : f32 to vector<8x128xf32>
    %25 = arith.cmpf ogt, %18, %24 : vector<8x128xf32>
    %cst_9 = arith.constant 1.000000e+00 : f32
    %26 = vector.broadcast %cst_9 : f32 to vector<8x128xf32>
    %27 = arith.select %25, %26, %18 : vector<8x128xi1>, vector<8x128xf32>
    %cst_10 = arith.constant 0.000000e+00 : f32
    %28 = vector.broadcast %cst_10 : f32 to vector<8x128xf32>
    %29 = arith.cmpf oeq, %27, %28 : vector<8x128xf32>
    %cst_11 = arith.constant -1.500000e+01 : f32
    %30 = vector.broadcast %cst_11 : f32 to vector<8x128xf32>
    %31 = arith.cmpf olt, %19, %30 : vector<8x128xf32>
    %32 = arith.andi %29, %31 : vector<8x128xi1>
    %cst_12 = arith.constant -1.500000e+01 : f32
    %33 = vector.broadcast %cst_12 : f32 to vector<8x128xf32>
    %34 = arith.select %32, %33, %19 : vector<8x128xi1>, vector<8x128xf32>
    %35 = math.absf %34 : vector<8x128xf32>
    %cst_13 = arith.constant 0.000000e+00 : f32
    %36 = vector.broadcast %cst_13 : f32 to vector<8x128xf32>
    %37 = arith.subf %36, %35 : vector<8x128xf32>
    %38 = math.exp %37 : vector<8x128xf32>
    %cst_14 = arith.constant 1.000000e+00 : f32
    %39 = vector.broadcast %cst_14 : f32 to vector<8x128xf32>
    %40 = arith.addf %39, %38 : vector<8x128xf32>
    %cst_15 = arith.constant 0.000000e+00 : f32
    %41 = vector.broadcast %cst_15 : f32 to vector<8x128xf32>
    %42 = arith.maximumf %34, %41 : vector<8x128xf32>
    %43 = arith.mulf %34, %27 : vector<8x128xf32>
    %44 = arith.subf %42, %43 : vector<8x128xf32>
    %45 = math.log %40 : vector<8x128xf32>
    %46 = arith.addf %44, %45 : vector<8x128xf32>
    %cst_16 = arith.constant 0.000000e+00 : f32
    %47 = vector.broadcast %cst_16 : f32 to vector<8x128xf32>
    %48 = arith.select %23, %46, %47 : vector<8x128xi1>, vector<8x128xf32>
    %49 = vector.shape_cast %48 : vector<8x128xf32> to vector<1x8x128xf32>
    %cst_17 = arith.constant dense<0xFF800000> : vector<1xf32>
    %50 = vector.multi_reduction <maximumf>, %49, %cst_17 [1, 2] : vector<1x8x128xf32> to vector<1xf32>
    %51 = vector.shape_cast %50 : vector<1xf32> to vector<1x1x1xf32>
    %52 = vector.extract %51[0, 0, 0] : f32 from vector<1x1x1xf32>
    %cst_18 = arith.constant 5.000000e+00 : f32
    %53 = arith.cmpf ogt, %52, %cst_18 : f32
    %54 = arith.extui %53 : i1 to i32
    %c0_i32_19 = arith.constant 0 : i32
    %55 = arith.cmpi ne, %54, %c0_i32_19 : i32
    %56 = scf.if %55 -> (vector<8x128xf32>) {
      %cst_133 = arith.constant 5.000000e+00 : f32
      %263 = vector.broadcast %cst_133 : f32 to vector<8x128xf32>
      %264 = arith.cmpf ogt, %48, %263 : vector<8x128xf32>
      %cst_134 = arith.constant 5.000000e+00 : f32
      %265 = vector.broadcast %cst_134 : f32 to vector<8x128xf32>
      %266 = arith.subf %48, %265 : vector<8x128xf32>
      %cst_135 = arith.constant 1.000000e+00 : f32
      %267 = vector.broadcast %cst_135 : f32 to vector<8x128xf32>
      %268 = arith.addf %266, %267 : vector<8x128xf32>
      %269 = math.log %268 : vector<8x128xf32>
      %cst_136 = arith.constant 5.000000e+00 : f32
      %270 = vector.broadcast %cst_136 : f32 to vector<8x128xf32>
      %271 = arith.addf %270, %269 : vector<8x128xf32>
      %272 = arith.select %264, %271, %48 : vector<8x128xi1>, vector<8x128xf32>
      scf.yield %272 : vector<8x128xf32>
    } else {
      scf.yield %48 : vector<8x128xf32>
    }
    %cst_20 = arith.constant 0.000000e+00 : f32
    %57 = vector.broadcast %cst_20 : f32 to vector<8x128xf32>
    %58 = arith.cmpf oge, %34, %57 : vector<8x128xf32>
    %cst_21 = arith.constant 1.000000e+00 : f32
    %59 = vector.broadcast %cst_21 : f32 to vector<8x128xf32>
    %60 = arith.select %58, %59, %38 : vector<8x128xi1>, vector<8x128xf32>
    %61 = tpu.reciprocal %40 {approx = true} : vector<8x128xf32> -> vector<8x128xf32>
    %62 = arith.mulf %60, %61 : vector<8x128xf32>
    %63 = arith.mulf %62, %27 : vector<8x128xf32>
    %cst_22 = arith.constant 1.000000e+00 : f32
    %64 = vector.broadcast %cst_22 : f32 to vector<8x128xf32>
    %65 = arith.subf %64, %62 : vector<8x128xf32>
    %cst_23 = arith.constant 1.000000e+00 : f32
    %66 = vector.broadcast %cst_23 : f32 to vector<8x128xf32>
    %67 = arith.subf %66, %27 : vector<8x128xf32>
    %68 = arith.mulf %65, %67 : vector<8x128xf32>
    %69 = arith.addf %63, %68 : vector<8x128xf32>
    %cst_24 = arith.constant 1.000000e+00 : f32
    %70 = vector.broadcast %cst_24 : f32 to vector<8x128xf32>
    %71 = arith.subf %70, %69 : vector<8x128xf32>
    %72 = arith.mulf %71, %56 : vector<8x128xf32>
    %cst_25 = arith.constant 5.000000e-01 : f32
    %73 = vector.broadcast %cst_25 : f32 to vector<8x128xf32>
    %74 = arith.mulf %72, %73 : vector<8x128xf32>
    %c0_26 = arith.constant 0 : index
    %c0_27 = arith.constant 0 : index
    %c0_28 = arith.constant 0 : index
    %c0_29 = arith.constant 0 : index
    %75 = vector.load %arg22[%c0_26, %c0_27, %c0_28, %c0_29] : memref<1x5x8x128xf32, #tpu.memory_space<vmem>>, vector<1x1x8x128xf32>
    %76 = vector.shape_cast %75 : vector<1x1x8x128xf32> to vector<8x128xf32>
    %cst_30 = arith.constant 0.000000e+00 : f32
    %77 = vector.broadcast %cst_30 : f32 to vector<8x128xf32>
    %78 = arith.select %23, %74, %77 : vector<8x128xi1>, vector<8x128xf32>
    %79 = vector.broadcast %17 : vector<8x1xf32> to vector<8x128xf32>
    %80 = arith.mulf %78, %79 : vector<8x128xf32>
    %81 = arith.addf %76, %80 : vector<8x128xf32>
    %c0_31 = arith.constant 0 : index
    %c0_32 = arith.constant 0 : index
    %c0_33 = arith.constant 0 : index
    %c0_34 = arith.constant 0 : index
    %82 = vector.load %arg22[%c0_31, %c0_32, %c0_33, %c0_34] : memref<1x5x8x128xf32, #tpu.memory_space<vmem>>, vector<1x1x8x128xf32>
    %83 = vector.shape_cast %82 : vector<1x1x8x128xf32> to vector<8x128xf32>
    %84 = vector.shape_cast %81 : vector<8x128xf32> to vector<1x1x8x128xf32>
    tpu.vector_store %arg22[%c0_31, %c0_32, %c0_33, %c0_34], %84 {strides = array<i32>} : memref<1x5x8x128xf32, #tpu.memory_space<vmem>>, vector<1x1x8x128xf32>,
    %c0_35 = arith.constant 0 : index
    %c0_36 = arith.constant 0 : index
    %85 = vector.load %arg13[%c0_35, %c0_36] : memref<8x128xf32, #tpu.memory_space<vmem>>, vector<8x128xf32>
    %86 = arith.cmpf one, %85, %85 : vector<8x128xf32>
    %cst_37 = arith.constant dense<true> : vector<8x128xi1>
    %87 = arith.xori %86, %cst_37 : vector<8x128xi1>
    %88 = vector.broadcast %16 : vector<8x1xi1> to vector<8x128xi1>
    %89 = arith.andi %87, %88 : vector<8x128xi1>
    %c0_38 = arith.constant 0 : index
    %c0_39 = arith.constant 0 : index
    %90 = vector.load %arg4[%c0_38, %c0_39] : memref<8x128xf32, #tpu.memory_space<vmem>>, vector<8x128xf32>
    %c0_40 = arith.constant 0 : index
    %c0_41 = arith.constant 0 : index
    %91 = vector.load %arg5[%c0_40, %c0_41] : memref<8x128xf32, #tpu.memory_space<vmem>>, vector<8x128xf32>
    %c0_42 = arith.constant 0 : index
    %c0_43 = arith.constant 0 : index
    %92 = vector.load %arg8[%c0_42, %c0_43] : memref<8x128xf32, #tpu.memory_space<vmem>>, vector<8x128xf32>
    %c0_44 = arith.constant 0 : index
    %c0_45 = arith.constant 0 : index
    %93 = vector.load %arg14[%c0_44, %c0_45] : memref<8x128xf32, #tpu.memory_space<vmem>>, vector<8x128xf32>
    %c0_46 = arith.constant 0 : index
    %c0_47 = arith.constant 0 : index
    %94 = vector.load %arg17[%c0_46, %c0_47] : memref<8x128xf32, #tpu.memory_space<vmem>>, vector<8x128xf32>
    %95 = arith.subf %90, %85 : vector<8x128xf32>
    %96 = arith.mulf %95, %95 : vector<8x128xf32>
    %97 = arith.subf %91, %93 : vector<8x128xf32>
    %98 = arith.mulf %97, %97 : vector<8x128xf32>
    %99 = arith.addf %96, %98 : vector<8x128xf32>
    %100 = math.sqrt %99 : vector<8x128xf32>
    %cst_48 = arith.constant 3.000000e+00 : f32
    %101 = vector.broadcast %cst_48 : f32 to vector<8x128xf32>
    %102 = arith.divf %92, %101 : vector<8x128xf32>
    %103 = math.tanh %102 : vector<8x128xf32>
    %cst_49 = arith.constant 3.000000e+00 : f32
    %104 = vector.broadcast %cst_49 : f32 to vector<8x128xf32>
    %105 = arith.mulf %104, %103 : vector<8x128xf32>
    %106 = arith.addf %100, %94 : vector<8x128xf32>
    %cst_50 = arith.constant 0.000000e+00 : f32
    %107 = vector.broadcast %cst_50 : f32 to vector<8x128xf32>
    %108 = arith.subf %107, %105 : vector<8x128xf32>
    %109 = math.exp %108 : vector<8x128xf32>
    %110 = arith.mulf %106, %109 : vector<8x128xf32>
    %111 = arith.addf %105, %110 : vector<8x128xf32>
    %cst_51 = arith.constant 0.000000e+00 : f32
    %112 = vector.broadcast %cst_51 : f32 to vector<8x128xf32>
    %113 = arith.select %89, %111, %112 : vector<8x128xi1>, vector<8x128xf32>
    %114 = vector.shape_cast %113 : vector<8x128xf32> to vector<1x8x128xf32>
    %cst_52 = arith.constant dense<0xFF800000> : vector<1xf32>
    %115 = vector.multi_reduction <maximumf>, %114, %cst_52 [1, 2] : vector<1x8x128xf32> to vector<1xf32>
    %116 = vector.shape_cast %115 : vector<1xf32> to vector<1x1x1xf32>
    %117 = vector.extract %116[0, 0, 0] : f32 from vector<1x1x1xf32>
    %cst_53 = arith.constant 5.000000e+00 : f32
    %118 = arith.cmpf ogt, %117, %cst_53 : f32
    %119 = arith.extui %118 : i1 to i32
    %c0_i32_54 = arith.constant 0 : i32
    %120 = arith.cmpi ne, %119, %c0_i32_54 : i32
    %121 = scf.if %120 -> (vector<8x128xf32>) {
      %cst_133 = arith.constant 5.000000e+00 : f32
      %263 = vector.broadcast %cst_133 : f32 to vector<8x128xf32>
      %264 = arith.cmpf ogt, %113, %263 : vector<8x128xf32>
      %cst_134 = arith.constant 5.000000e+00 : f32
      %265 = vector.broadcast %cst_134 : f32 to vector<8x128xf32>
      %266 = arith.subf %113, %265 : vector<8x128xf32>
      %cst_135 = arith.constant 1.000000e+00 : f32
      %267 = vector.broadcast %cst_135 : f32 to vector<8x128xf32>
      %268 = arith.addf %266, %267 : vector<8x128xf32>
      %269 = math.log %268 : vector<8x128xf32>
      %cst_136 = arith.constant 5.000000e+00 : f32
      %270 = vector.broadcast %cst_136 : f32 to vector<8x128xf32>
      %271 = arith.addf %270, %269 : vector<8x128xf32>
      %272 = arith.select %264, %271, %113 : vector<8x128xi1>, vector<8x128xf32>
      scf.yield %272 : vector<8x128xf32>
    } else {
      scf.yield %113 : vector<8x128xf32>
    }
    %c0_55 = arith.constant 0 : index
    %c1 = arith.constant 1 : index
    %c0_56 = arith.constant 0 : index
    %c0_57 = arith.constant 0 : index
    %122 = vector.load %arg22[%c0_55, %c1, %c0_56, %c0_57] : memref<1x5x8x128xf32, #tpu.memory_space<vmem>>, vector<1x1x8x128xf32>
    %123 = vector.shape_cast %122 : vector<1x1x8x128xf32> to vector<8x128xf32>
    %cst_58 = arith.constant 0.000000e+00 : f32
    %124 = vector.broadcast %cst_58 : f32 to vector<8x128xf32>
    %125 = arith.select %89, %121, %124 : vector<8x128xi1>, vector<8x128xf32>
    %126 = vector.broadcast %17 : vector<8x1xf32> to vector<8x128xf32>
    %127 = arith.mulf %125, %126 : vector<8x128xf32>
    %128 = arith.addf %123, %127 : vector<8x128xf32>
    %c0_59 = arith.constant 0 : index
    %c1_60 = arith.constant 1 : index
    %c0_61 = arith.constant 0 : index
    %c0_62 = arith.constant 0 : index
    %129 = vector.load %arg22[%c0_59, %c1_60, %c0_61, %c0_62] : memref<1x5x8x128xf32, #tpu.memory_space<vmem>>, vector<1x1x8x128xf32>
    %130 = vector.shape_cast %129 : vector<1x1x8x128xf32> to vector<8x128xf32>
    %131 = vector.shape_cast %128 : vector<8x128xf32> to vector<1x1x8x128xf32>
    tpu.vector_store %arg22[%c0_59, %c1_60, %c0_61, %c0_62], %131 {strides = array<i32>} : memref<1x5x8x128xf32, #tpu.memory_space<vmem>>, vector<1x1x8x128xf32>,
    %c0_63 = arith.constant 0 : index
    %c0_64 = arith.constant 0 : index
    %132 = vector.load %arg15[%c0_63, %c0_64] : memref<8x128xf32, #tpu.memory_space<vmem>>, vector<8x128xf32>
    %133 = arith.cmpf one, %132, %132 : vector<8x128xf32>
    %cst_65 = arith.constant dense<true> : vector<8x128xi1>
    %134 = arith.xori %133, %cst_65 : vector<8x128xi1>
    %135 = vector.broadcast %16 : vector<8x1xi1> to vector<8x128xi1>
    %136 = arith.andi %134, %135 : vector<8x128xi1>
    %c0_66 = arith.constant 0 : index
    %c0_67 = arith.constant 0 : index
    %137 = vector.load %arg6[%c0_66, %c0_67] : memref<8x128xf32, #tpu.memory_space<vmem>>, vector<8x128xf32>
    %c0_68 = arith.constant 0 : index
    %c0_69 = arith.constant 0 : index
    %138 = vector.load %arg7[%c0_68, %c0_69] : memref<8x128xf32, #tpu.memory_space<vmem>>, vector<8x128xf32>
    %c0_70 = arith.constant 0 : index
    %c0_71 = arith.constant 0 : index
    %139 = vector.load %arg9[%c0_70, %c0_71] : memref<8x128xf32, #tpu.memory_space<vmem>>, vector<8x128xf32>
    %c0_72 = arith.constant 0 : index
    %c0_73 = arith.constant 0 : index
    %140 = vector.load %arg16[%c0_72, %c0_73] : memref<8x128xf32, #tpu.memory_space<vmem>>, vector<8x128xf32>
    %c0_74 = arith.constant 0 : index
    %c0_75 = arith.constant 0 : index
    %141 = vector.load %arg18[%c0_74, %c0_75] : memref<8x128xf32, #tpu.memory_space<vmem>>, vector<8x128xf32>
    %142 = arith.subf %137, %132 : vector<8x128xf32>
    %143 = arith.mulf %142, %142 : vector<8x128xf32>
    %144 = arith.subf %138, %140 : vector<8x128xf32>
    %145 = arith.mulf %144, %144 : vector<8x128xf32>
    %146 = arith.addf %143, %145 : vector<8x128xf32>
    %147 = math.sqrt %146 : vector<8x128xf32>
    %cst_76 = arith.constant 3.000000e+00 : f32
    %148 = vector.broadcast %cst_76 : f32 to vector<8x128xf32>
    %149 = arith.divf %139, %148 : vector<8x128xf32>
    %150 = math.tanh %149 : vector<8x128xf32>
    %cst_77 = arith.constant 3.000000e+00 : f32
    %151 = vector.broadcast %cst_77 : f32 to vector<8x128xf32>
    %152 = arith.mulf %151, %150 : vector<8x128xf32>
    %153 = arith.addf %147, %141 : vector<8x128xf32>
    %cst_78 = arith.constant 0.000000e+00 : f32
    %154 = vector.broadcast %cst_78 : f32 to vector<8x128xf32>
    %155 = arith.subf %154, %152 : vector<8x128xf32>
    %156 = math.exp %155 : vector<8x128xf32>
    %157 = arith.mulf %153, %156 : vector<8x128xf32>
    %158 = arith.addf %152, %157 : vector<8x128xf32>
    %cst_79 = arith.constant 0.000000e+00 : f32
    %159 = vector.broadcast %cst_79 : f32 to vector<8x128xf32>
    %160 = arith.select %136, %158, %159 : vector<8x128xi1>, vector<8x128xf32>
    %161 = vector.shape_cast %160 : vector<8x128xf32> to vector<1x8x128xf32>
    %cst_80 = arith.constant dense<0xFF800000> : vector<1xf32>
    %162 = vector.multi_reduction <maximumf>, %161, %cst_80 [1, 2] : vector<1x8x128xf32> to vector<1xf32>
    %163 = vector.shape_cast %162 : vector<1xf32> to vector<1x1x1xf32>
    %164 = vector.extract %163[0, 0, 0] : f32 from vector<1x1x1xf32>
    %cst_81 = arith.constant 5.000000e+00 : f32
    %165 = arith.cmpf ogt, %164, %cst_81 : f32
    %166 = arith.extui %165 : i1 to i32
    %c0_i32_82 = arith.constant 0 : i32
    %167 = arith.cmpi ne, %166, %c0_i32_82 : i32
    %168 = scf.if %167 -> (vector<8x128xf32>) {
      %cst_133 = arith.constant 5.000000e+00 : f32
      %263 = vector.broadcast %cst_133 : f32 to vector<8x128xf32>
      %264 = arith.cmpf ogt, %160, %263 : vector<8x128xf32>
      %cst_134 = arith.constant 5.000000e+00 : f32
      %265 = vector.broadcast %cst_134 : f32 to vector<8x128xf32>
      %266 = arith.subf %160, %265 : vector<8x128xf32>
      %cst_135 = arith.constant 1.000000e+00 : f32
      %267 = vector.broadcast %cst_135 : f32 to vector<8x128xf32>
      %268 = arith.addf %266, %267 : vector<8x128xf32>
      %269 = math.log %268 : vector<8x128xf32>
      %cst_136 = arith.constant 5.000000e+00 : f32
      %270 = vector.broadcast %cst_136 : f32 to vector<8x128xf32>
      %271 = arith.addf %270, %269 : vector<8x128xf32>
      %272 = arith.select %264, %271, %160 : vector<8x128xi1>, vector<8x128xf32>
      scf.yield %272 : vector<8x128xf32>
    } else {
      scf.yield %160 : vector<8x128xf32>
    }
    %c0_83 = arith.constant 0 : index
    %c2 = arith.constant 2 : index
    %c0_84 = arith.constant 0 : index
    %c0_85 = arith.constant 0 : index
    %169 = vector.load %arg22[%c0_83, %c2, %c0_84, %c0_85] : memref<1x5x8x128xf32, #tpu.memory_space<vmem>>, vector<1x1x8x128xf32>
    %170 = vector.shape_cast %169 : vector<1x1x8x128xf32> to vector<8x128xf32>
    %cst_86 = arith.constant 0.000000e+00 : f32
    %171 = vector.broadcast %cst_86 : f32 to vector<8x128xf32>
    %172 = arith.select %136, %168, %171 : vector<8x128xi1>, vector<8x128xf32>
    %173 = vector.broadcast %17 : vector<8x1xf32> to vector<8x128xf32>
    %174 = arith.mulf %172, %173 : vector<8x128xf32>
    %175 = arith.addf %170, %174 : vector<8x128xf32>
    %c0_87 = arith.constant 0 : index
    %c2_88 = arith.constant 2 : index
    %c0_89 = arith.constant 0 : index
    %c0_90 = arith.constant 0 : index
    %176 = vector.load %arg22[%c0_87, %c2_88, %c0_89, %c0_90] : memref<1x5x8x128xf32, #tpu.memory_space<vmem>>, vector<1x1x8x128xf32>
    %177 = vector.shape_cast %176 : vector<1x1x8x128xf32> to vector<8x128xf32>
    %178 = vector.shape_cast %175 : vector<8x128xf32> to vector<1x1x8x128xf32>
    tpu.vector_store %arg22[%c0_87, %c2_88, %c0_89, %c0_90], %178 {strides = array<i32>} : memref<1x5x8x128xf32, #tpu.memory_space<vmem>>, vector<1x1x8x128xf32>,
    %c0_91 = arith.constant 0 : index
    %c0_92 = arith.constant 0 : index
    %179 = vector.load %arg19[%c0_91, %c0_92] : memref<8x128xf32, #tpu.memory_space<vmem>>, vector<8x128xf32>
    %180 = arith.cmpf one, %179, %179 : vector<8x128xf32>
    %cst_93 = arith.constant dense<true> : vector<8x128xi1>
    %181 = arith.xori %180, %cst_93 : vector<8x128xi1>
    %182 = vector.broadcast %16 : vector<8x1xi1> to vector<8x128xi1>
    %183 = arith.andi %181, %182 : vector<8x128xi1>
    %c0_94 = arith.constant 0 : index
    %c0_95 = arith.constant 0 : index
    %184 = vector.load %arg10[%c0_94, %c0_95] : memref<8x128xf32, #tpu.memory_space<vmem>>, vector<8x128xf32>
    %cst_96 = arith.constant 0.000000e+00 : f32
    %185 = vector.broadcast %cst_96 : f32 to vector<8x128xf32>
    %186 = arith.maximumf %184, %185 : vector<8x128xf32>
    %187 = math.absf %184 : vector<8x128xf32>
    %cst_97 = arith.constant 0.000000e+00 : f32
    %188 = vector.broadcast %cst_97 : f32 to vector<8x128xf32>
    %189 = arith.subf %188, %187 : vector<8x128xf32>
    %190 = math.exp %189 : vector<8x128xf32>
    %cst_98 = arith.constant 1.000000e+00 : f32
    %191 = vector.broadcast %cst_98 : f32 to vector<8x128xf32>
    %192 = arith.addf %191, %190 : vector<8x128xf32>
    %193 = math.log %192 : vector<8x128xf32>
    %194 = arith.addf %186, %193 : vector<8x128xf32>
    %195 = arith.subf %194, %179 : vector<8x128xf32>
    %196 = math.absf %195 : vector<8x128xf32>
    %cst_99 = arith.constant 1.000000e-01 : f32
    %197 = vector.broadcast %cst_99 : f32 to vector<8x128xf32>
    %198 = arith.addf %197, %179 : vector<8x128xf32>
    %199 = tpu.reciprocal %198 {approx = true} : vector<8x128xf32> -> vector<8x128xf32>
    %200 = arith.mulf %196, %199 : vector<8x128xf32>
    %cst_100 = arith.constant 0.000000e+00 : f32
    %201 = vector.broadcast %cst_100 : f32 to vector<8x128xf32>
    %202 = arith.select %183, %200, %201 : vector<8x128xi1>, vector<8x128xf32>
    %203 = vector.shape_cast %202 : vector<8x128xf32> to vector<1x8x128xf32>
    %cst_101 = arith.constant dense<0xFF800000> : vector<1xf32>
    %204 = vector.multi_reduction <maximumf>, %203, %cst_101 [1, 2] : vector<1x8x128xf32> to vector<1xf32>
    %205 = vector.shape_cast %204 : vector<1xf32> to vector<1x1x1xf32>
    %206 = vector.extract %205[0, 0, 0] : f32 from vector<1x1x1xf32>
    %cst_102 = arith.constant 5.000000e+00 : f32
    %207 = arith.cmpf ogt, %206, %cst_102 : f32
    %208 = arith.extui %207 : i1 to i32
    %c0_i32_103 = arith.constant 0 : i32
    %209 = arith.cmpi ne, %208, %c0_i32_103 : i32
    %210 = scf.if %209 -> (vector<8x128xf32>) {
      %cst_133 = arith.constant 5.000000e+00 : f32
      %263 = vector.broadcast %cst_133 : f32 to vector<8x128xf32>
      %264 = arith.cmpf ogt, %202, %263 : vector<8x128xf32>
      %cst_134 = arith.constant 5.000000e+00 : f32
      %265 = vector.broadcast %cst_134 : f32 to vector<8x128xf32>
      %266 = arith.subf %202, %265 : vector<8x128xf32>
      %cst_135 = arith.constant 1.000000e+00 : f32
      %267 = vector.broadcast %cst_135 : f32 to vector<8x128xf32>
      %268 = arith.addf %266, %267 : vector<8x128xf32>
      %269 = math.log %268 : vector<8x128xf32>
      %cst_136 = arith.constant 5.000000e+00 : f32
      %270 = vector.broadcast %cst_136 : f32 to vector<8x128xf32>
      %271 = arith.addf %270, %269 : vector<8x128xf32>
      %272 = arith.select %264, %271, %202 : vector<8x128xi1>, vector<8x128xf32>
      scf.yield %272 : vector<8x128xf32>
    } else {
      scf.yield %202 : vector<8x128xf32>
    }
    %c0_104 = arith.constant 0 : index
    %c3 = arith.constant 3 : index
    %c0_105 = arith.constant 0 : index
    %c0_106 = arith.constant 0 : index
    %211 = vector.load %arg22[%c0_104, %c3, %c0_105, %c0_106] : memref<1x5x8x128xf32, #tpu.memory_space<vmem>>, vector<1x1x8x128xf32>
    %212 = vector.shape_cast %211 : vector<1x1x8x128xf32> to vector<8x128xf32>
    %cst_107 = arith.constant 0.000000e+00 : f32
    %213 = vector.broadcast %cst_107 : f32 to vector<8x128xf32>
    %214 = arith.select %183, %210, %213 : vector<8x128xi1>, vector<8x128xf32>
    %215 = vector.broadcast %17 : vector<8x1xf32> to vector<8x128xf32>
    %216 = arith.mulf %214, %215 : vector<8x128xf32>
    %217 = arith.addf %212, %216 : vector<8x128xf32>
    %c0_108 = arith.constant 0 : index
    %c3_109 = arith.constant 3 : index
    %c0_110 = arith.constant 0 : index
    %c0_111 = arith.constant 0 : index
    %218 = vector.load %arg22[%c0_108, %c3_109, %c0_110, %c0_111] : memref<1x5x8x128xf32, #tpu.memory_space<vmem>>, vector<1x1x8x128xf32>
    %219 = vector.shape_cast %218 : vector<1x1x8x128xf32> to vector<8x128xf32>
    %220 = vector.shape_cast %217 : vector<8x128xf32> to vector<1x1x8x128xf32>
    tpu.vector_store %arg22[%c0_108, %c3_109, %c0_110, %c0_111], %220 {strides = array<i32>} : memref<1x5x8x128xf32, #tpu.memory_space<vmem>>, vector<1x1x8x128xf32>,
    %c0_112 = arith.constant 0 : index
    %c0_113 = arith.constant 0 : index
    %221 = vector.load %arg20[%c0_112, %c0_113] : memref<8x128xf32, #tpu.memory_space<vmem>>, vector<8x128xf32>
    %222 = arith.cmpf one, %221, %221 : vector<8x128xf32>
    %cst_114 = arith.constant dense<true> : vector<8x128xi1>
    %223 = arith.xori %222, %cst_114 : vector<8x128xi1>
    %224 = vector.broadcast %16 : vector<8x1xi1> to vector<8x128xi1>
    %225 = arith.andi %223, %224 : vector<8x128xi1>
    %c0_115 = arith.constant 0 : index
    %c0_116 = arith.constant 0 : index
    %226 = vector.load %arg11[%c0_115, %c0_116] : memref<8x128xf32, #tpu.memory_space<vmem>>, vector<8x128xf32>
    %cst_117 = arith.constant 0.000000e+00 : f32
    %227 = vector.broadcast %cst_117 : f32 to vector<8x128xf32>
    %228 = arith.maximumf %226, %227 : vector<8x128xf32>
    %229 = math.absf %226 : vector<8x128xf32>
    %cst_118 = arith.constant 0.000000e+00 : f32
    %230 = vector.broadcast %cst_118 : f32 to vector<8x128xf32>
    %231 = arith.subf %230, %229 : vector<8x128xf32>
    %232 = math.exp %231 : vector<8x128xf32>
    %cst_119 = arith.constant 1.000000e+00 : f32
    %233 = vector.broadcast %cst_119 : f32 to vector<8x128xf32>
    %234 = arith.addf %233, %232 : vector<8x128xf32>
    %235 = math.log %234 : vector<8x128xf32>
    %236 = arith.addf %228, %235 : vector<8x128xf32>
    %237 = arith.subf %236, %221 : vector<8x128xf32>
    %238 = math.absf %237 : vector<8x128xf32>
    %cst_120 = arith.constant 1.000000e-01 : f32
    %239 = vector.broadcast %cst_120 : f32 to vector<8x128xf32>
    %240 = arith.addf %239, %221 : vector<8x128xf32>
    %241 = tpu.reciprocal %240 {approx = true} : vector<8x128xf32> -> vector<8x128xf32>
    %242 = arith.mulf %238, %241 : vector<8x128xf32>
    %cst_121 = arith.constant 0.000000e+00 : f32
    %243 = vector.broadcast %cst_121 : f32 to vector<8x128xf32>
    %244 = arith.select %225, %242, %243 : vector<8x128xi1>, vector<8x128xf32>
    %245 = vector.shape_cast %244 : vector<8x128xf32> to vector<1x8x128xf32>
    %cst_122 = arith.constant dense<0xFF800000> : vector<1xf32>
    %246 = vector.multi_reduction <maximumf>, %245, %cst_122 [1, 2] : vector<1x8x128xf32> to vector<1xf32>
    %247 = vector.shape_cast %246 : vector<1xf32> to vector<1x1x1xf32>
    %248 = vector.extract %247[0, 0, 0] : f32 from vector<1x1x1xf32>
    %cst_123 = arith.constant 5.000000e+00 : f32
    %249 = arith.cmpf ogt, %248, %cst_123 : f32
    %250 = arith.extui %249 : i1 to i32
    %c0_i32_124 = arith.constant 0 : i32
    %251 = arith.cmpi ne, %250, %c0_i32_124 : i32
    %252 = scf.if %251 -> (vector<8x128xf32>) {
      %cst_133 = arith.constant 5.000000e+00 : f32
      %263 = vector.broadcast %cst_133 : f32 to vector<8x128xf32>
      %264 = arith.cmpf ogt, %244, %263 : vector<8x128xf32>
      %cst_134 = arith.constant 5.000000e+00 : f32
      %265 = vector.broadcast %cst_134 : f32 to vector<8x128xf32>
      %266 = arith.subf %244, %265 : vector<8x128xf32>
      %cst_135 = arith.constant 1.000000e+00 : f32
      %267 = vector.broadcast %cst_135 : f32 to vector<8x128xf32>
      %268 = arith.addf %266, %267 : vector<8x128xf32>
      %269 = math.log %268 : vector<8x128xf32>
      %cst_136 = arith.constant 5.000000e+00 : f32
      %270 = vector.broadcast %cst_136 : f32 to vector<8x128xf32>
      %271 = arith.addf %270, %269 : vector<8x128xf32>
      %272 = arith.select %264, %271, %244 : vector<8x128xi1>, vector<8x128xf32>
      scf.yield %272 : vector<8x128xf32>
    } else {
      scf.yield %244 : vector<8x128xf32>
    }
    %c0_125 = arith.constant 0 : index
    %c4 = arith.constant 4 : index
    %c0_126 = arith.constant 0 : index
    %c0_127 = arith.constant 0 : index
    %253 = vector.load %arg22[%c0_125, %c4, %c0_126, %c0_127] : memref<1x5x8x128xf32, #tpu.memory_space<vmem>>, vector<1x1x8x128xf32>
    %254 = vector.shape_cast %253 : vector<1x1x8x128xf32> to vector<8x128xf32>
    %cst_128 = arith.constant 0.000000e+00 : f32
    %255 = vector.broadcast %cst_128 : f32 to vector<8x128xf32>
    %256 = arith.select %225, %252, %255 : vector<8x128xi1>, vector<8x128xf32>
    %257 = vector.broadcast %17 : vector<8x1xf32> to vector<8x128xf32>
    %258 = arith.mulf %256, %257 : vector<8x128xf32>
    %259 = arith.addf %254, %258 : vector<8x128xf32>
    %c0_129 = arith.constant 0 : index
    %c4_130 = arith.constant 4 : index
    %c0_131 = arith.constant 0 : index
    %c0_132 = arith.constant 0 : index
    %260 = vector.load %arg22[%c0_129, %c4_130, %c0_131, %c0_132] : memref<1x5x8x128xf32, #tpu.memory_space<vmem>>, vector<1x1x8x128xf32>
    %261 = vector.shape_cast %260 : vector<1x1x8x128xf32> to vector<8x128xf32>
    %262 = vector.shape_cast %259 : vector<8x128xf32> to vector<1x1x8x128xf32>
    tpu.vector_store %arg22[%c0_129, %c4_130, %c0_131, %c0_132], %262 {strides = array<i32>} : memref<1x5x8x128xf32, #tpu.memory_space<vmem>>, vector<1x1x8x128xf32>,
    return
  }
  func.func @transform_0(%arg0: i32, %arg1: i32, %arg2: i32) -> (i32, i32) {
    %c2_i32 = arith.constant 2 : i32
    %0 = arith.muli %arg0, %c2_i32 : i32
    %1 = arith.addi %0, %arg1 : i32
    %c2_i32_0 = arith.constant 2 : i32
    %2 = arith.minsi %1, %c2_i32_0 : i32
    %c0_i32 = arith.constant 0 : i32
    %3 = arith.addi %c0_i32, %arg2 : i32
    %c0_i32_1 = arith.constant 0 : i32
    return %2, %3 : i32, i32
  }
  func.func @transform_1(%arg0: i32, %arg1: i32, %arg2: i32) -> (i32, i32) {
    %c2_i32 = arith.constant 2 : i32
    %0 = arith.muli %arg0, %c2_i32 : i32
    %1 = arith.addi %0, %arg1 : i32
    %c2_i32_0 = arith.constant 2 : i32
    %2 = arith.minsi %1, %c2_i32_0 : i32
    %c2_i32_1 = arith.constant 2 : i32
    %3 = arith.addi %c2_i32_1, %arg2 : i32
    %c0_i32 = arith.constant 0 : i32
    return %2, %3 : i32, i32
  }
  func.func @transform_2(%arg0: i32, %arg1: i32, %arg2: i32) -> (i32, i32) {
    %c2_i32 = arith.constant 2 : i32
    %0 = arith.muli %arg0, %c2_i32 : i32
    %1 = arith.addi %0, %arg1 : i32
    %c2_i32_0 = arith.constant 2 : i32
    %2 = arith.minsi %1, %c2_i32_0 : i32
    %c4_i32 = arith.constant 4 : i32
    %3 = arith.addi %c4_i32, %arg2 : i32
    %c0_i32 = arith.constant 0 : i32
    return %2, %3 : i32, i32
  }
  func.func @transform_3(%arg0: i32, %arg1: i32, %arg2: i32) -> (i32, i32) {
    %c2_i32 = arith.constant 2 : i32
    %0 = arith.muli %arg0, %c2_i32 : i32
    %1 = arith.addi %0, %arg1 : i32
    %c2_i32_0 = arith.constant 2 : i32
    %2 = arith.minsi %1, %c2_i32_0 : i32
    %c6_i32 = arith.constant 6 : i32
    %3 = arith.addi %c6_i32, %arg2 : i32
    %c0_i32 = arith.constant 0 : i32
    return %2, %3 : i32, i32
  }
  func.func @transform_4(%arg0: i32, %arg1: i32, %arg2: i32) -> (i32, i32) {
    %c2_i32 = arith.constant 2 : i32
    %0 = arith.muli %arg0, %c2_i32 : i32
    %1 = arith.addi %0, %arg1 : i32
    %c2_i32_0 = arith.constant 2 : i32
    %2 = arith.minsi %1, %c2_i32_0 : i32
    %c8_i32 = arith.constant 8 : i32
    %3 = arith.addi %c8_i32, %arg2 : i32
    %c0_i32 = arith.constant 0 : i32
    return %2, %3 : i32, i32
  }
  func.func @transform_5(%arg0: i32, %arg1: i32, %arg2: i32) -> (i32, i32) {
    %c2_i32 = arith.constant 2 : i32
    %0 = arith.muli %arg0, %c2_i32 : i32
    %1 = arith.addi %0, %arg1 : i32
    %c2_i32_0 = arith.constant 2 : i32
    %2 = arith.minsi %1, %c2_i32_0 : i32
    %c10_i32 = arith.constant 10 : i32
    %3 = arith.addi %c10_i32, %arg2 : i32
    %c0_i32 = arith.constant 0 : i32
    return %2, %3 : i32, i32
  }
  func.func @transform_6(%arg0: i32, %arg1: i32, %arg2: i32) -> (i32, i32) {
    %c2_i32 = arith.constant 2 : i32
    %0 = arith.muli %arg0, %c2_i32 : i32
    %1 = arith.addi %0, %arg1 : i32
    %c2_i32_0 = arith.constant 2 : i32
    %2 = arith.minsi %1, %c2_i32_0 : i32
    %c12_i32 = arith.constant 12 : i32
    %3 = arith.addi %c12_i32, %arg2 : i32
    %c0_i32 = arith.constant 0 : i32
    return %2, %3 : i32, i32
  }
  func.func @transform_7(%arg0: i32, %arg1: i32, %arg2: i32) -> (i32, i32) {
    %c2_i32 = arith.constant 2 : i32
    %0 = arith.muli %arg0, %c2_i32 : i32
    %1 = arith.addi %0, %arg1 : i32
    %c2_i32_0 = arith.constant 2 : i32
    %2 = arith.minsi %1, %c2_i32_0 : i32
    %c14_i32 = arith.constant 14 : i32
    %3 = arith.addi %c14_i32, %arg2 : i32
    %c0_i32 = arith.constant 0 : i32
    return %2, %3 : i32, i32
  }
  func.func @transform_8(%arg0: i32, %arg1: i32, %arg2: i32) -> (i32, i32) {
    %c2_i32 = arith.constant 2 : i32
    %0 = arith.muli %arg0, %c2_i32 : i32
    %1 = arith.addi %0, %arg1 : i32
    %c2_i32_0 = arith.constant 2 : i32
    %2 = arith.minsi %1, %c2_i32_0 : i32
    %c16_i32 = arith.constant 16 : i32
    %3 = arith.addi %c16_i32, %arg2 : i32
    %c0_i32 = arith.constant 0 : i32
    return %2, %3 : i32, i32
  }
  func.func @transform_9(%arg0: i32, %arg1: i32, %arg2: i32) -> (i32, i32) {
    %c2_i32 = arith.constant 2 : i32
    %0 = arith.muli %arg0, %c2_i32 : i32
    %1 = arith.addi %0, %arg1 : i32
    %c2_i32_0 = arith.constant 2 : i32
    %2 = arith.minsi %1, %c2_i32_0 : i32
    %c0_i32 = arith.constant 0 : i32
    %3 = arith.addi %c0_i32, %arg2 : i32
    %c0_i32_1 = arith.constant 0 : i32
    return %2, %3 : i32, i32
  }
  func.func @transform_10(%arg0: i32, %arg1: i32, %arg2: i32) -> (i32, i32) {
    %c2_i32 = arith.constant 2 : i32
    %0 = arith.muli %arg0, %c2_i32 : i32
    %1 = arith.addi %0, %arg1 : i32
    %c2_i32_0 = arith.constant 2 : i32
    %2 = arith.minsi %1, %c2_i32_0 : i32
    %c2_i32_1 = arith.constant 2 : i32
    %3 = arith.addi %c2_i32_1, %arg2 : i32
    %c0_i32 = arith.constant 0 : i32
    return %2, %3 : i32, i32
  }
  func.func @transform_11(%arg0: i32, %arg1: i32, %arg2: i32) -> (i32, i32) {
    %c2_i32 = arith.constant 2 : i32
    %0 = arith.muli %arg0, %c2_i32 : i32
    %1 = arith.addi %0, %arg1 : i32
    %c2_i32_0 = arith.constant 2 : i32
    %2 = arith.minsi %1, %c2_i32_0 : i32
    %c4_i32 = arith.constant 4 : i32
    %3 = arith.addi %c4_i32, %arg2 : i32
    %c0_i32 = arith.constant 0 : i32
    return %2, %3 : i32, i32
  }
  func.func @transform_12(%arg0: i32, %arg1: i32, %arg2: i32) -> (i32, i32) {
    %c2_i32 = arith.constant 2 : i32
    %0 = arith.muli %arg0, %c2_i32 : i32
    %1 = arith.addi %0, %arg1 : i32
    %c2_i32_0 = arith.constant 2 : i32
    %2 = arith.minsi %1, %c2_i32_0 : i32
    %c6_i32 = arith.constant 6 : i32
    %3 = arith.addi %c6_i32, %arg2 : i32
    %c0_i32 = arith.constant 0 : i32
    return %2, %3 : i32, i32
  }
  func.func @transform_13(%arg0: i32, %arg1: i32, %arg2: i32) -> (i32, i32) {
    %c2_i32 = arith.constant 2 : i32
    %0 = arith.muli %arg0, %c2_i32 : i32
    %1 = arith.addi %0, %arg1 : i32
    %c2_i32_0 = arith.constant 2 : i32
    %2 = arith.minsi %1, %c2_i32_0 : i32
    %c8_i32 = arith.constant 8 : i32
    %3 = arith.addi %c8_i32, %arg2 : i32
    %c0_i32 = arith.constant 0 : i32
    return %2, %3 : i32, i32
  }
  func.func @transform_14(%arg0: i32, %arg1: i32, %arg2: i32) -> (i32, i32) {
    %c2_i32 = arith.constant 2 : i32
    %0 = arith.muli %arg0, %c2_i32 : i32
    %1 = arith.addi %0, %arg1 : i32
    %c2_i32_0 = arith.constant 2 : i32
    %2 = arith.minsi %1, %c2_i32_0 : i32
    %c10_i32 = arith.constant 10 : i32
    %3 = arith.addi %c10_i32, %arg2 : i32
    %c0_i32 = arith.constant 0 : i32
    return %2, %3 : i32, i32
  }
  func.func @transform_15(%arg0: i32, %arg1: i32, %arg2: i32) -> (i32, i32) {
    %c2_i32 = arith.constant 2 : i32
    %0 = arith.muli %arg0, %c2_i32 : i32
    %1 = arith.addi %0, %arg1 : i32
    %c2_i32_0 = arith.constant 2 : i32
    %2 = arith.minsi %1, %c2_i32_0 : i32
    %c12_i32 = arith.constant 12 : i32
    %3 = arith.addi %c12_i32, %arg2 : i32
    %c0_i32 = arith.constant 0 : i32
    return %2, %3 : i32, i32
  }
  func.func @transform_16(%arg0: i32, %arg1: i32, %arg2: i32) -> (i32, i32) {
    %c2_i32 = arith.constant 2 : i32
    %0 = arith.muli %arg0, %c2_i32 : i32
    %1 = arith.addi %0, %arg1 : i32
    %c2_i32_0 = arith.constant 2 : i32
    %2 = arith.minsi %1, %c2_i32_0 : i32
    %c14_i32 = arith.constant 14 : i32
    %3 = arith.addi %c14_i32, %arg2 : i32
    %c0_i32 = arith.constant 0 : i32
    return %2, %3 : i32, i32
  }
  func.func @transform_17(%arg0: i32, %arg1: i32, %arg2: i32) -> (i32, i32) {
    %c2_i32 = arith.constant 2 : i32
    %0 = arith.muli %arg0, %c2_i32 : i32
    %1 = arith.addi %0, %arg1 : i32
    %c2_i32_0 = arith.constant 2 : i32
    %2 = arith.minsi %1, %c2_i32_0 : i32
    %c16_i32 = arith.constant 16 : i32
    %3 = arith.addi %c16_i32, %arg2 : i32
    %c0_i32 = arith.constant 0 : i32
    return %2, %3 : i32, i32
  }
  func.func @transform_18(%arg0: i32, %arg1: i32, %arg2: i32) -> (i32, i32) {
    %c2_i32 = arith.constant 2 : i32
    %0 = arith.muli %arg0, %c2_i32 : i32
    %1 = arith.addi %0, %arg1 : i32
    %c2_i32_0 = arith.constant 2 : i32
    %2 = arith.minsi %1, %c2_i32_0 : i32
    %c0_i32 = arith.constant 0 : i32
    %c0_i32_1 = arith.constant 0 : i32
    return %2, %c0_i32 : i32, i32
  }
  func.func @transform_19(%arg0: i32, %arg1: i32, %arg2: i32) -> (i32, i32, i32, i32) {
    %c0_i32 = arith.constant 0 : i32
    %c0_i32_0 = arith.constant 0 : i32
    %c0_i32_1 = arith.constant 0 : i32
    %c0_i32_2 = arith.constant 0 : i32
    return %arg0, %c0_i32, %c0_i32_0, %c0_i32_1 : i32, i32, i32, i32
  }
}

</mosaic_0001>

<bundles_post_ra>
// kernel: tpu_custom_call.1
= control target key start
LH: loop header
LB: loop body
LE: loop exit
PB: predicated region body
PF: predicated region fallthrough
CT: control target
= control target key end

     0   :  { %s5773_s0 = inlined_call_operand.hbm [shape: f32[24,2304], index: 0, kind: input, shape index: {}]   ;;  %s5774_s1 = inlined_call_operand.hbm [shape: f32[24,2304], index: 1, kind: input, shape index: {}]   ;;  %s5775_s2 = inlined_call_operand.hbm [shape: f32[24,2304], index: 2, kind: input, shape index: {}]   ;;  %s5776_s3 = inlined_call_operand.hbm [shape: f32[24,2304], index: 3, kind: input, shape index: {}]   ;;  %s5777_s4 = inlined_call_operand.hbm [shape: f32[24,2304], index: 4, kind: input, shape index: {}]   ;;  %s5778_s5 = inlined_call_operand.hbm [shape: f32[24,2304], index: 5, kind: input, shape index: {}]   ;;  %s5779_s6 = inlined_call_operand.hbm [shape: f32[24,2304], index: 6, kind: input, shape index: {}]   ;;  %s5780_s7 = inlined_call_operand.hbm [shape: f32[24,2304], index: 7, kind: input, shape index: {}]   ;;  %s5781_s8 = inlined_call_operand.hbm [shape: f32[24,2304], index: 8, kind: input, shape index: {}]   ;;  %s5782_s9 = inlined_call_operand.hbm [shape: f32[24,2304], index: 9, kind: input, shape index: {}]   ;;  %s5783_s10 = inlined_call_operand.hbm [shape: f32[24,2304], index: 10, kind: input, shape index: {}]   ;;  %s5784_s11 = inlined_call_operand.hbm [shape: f32[24,2304], index: 11, kind: input, shape index: {}]   ;;  %s5785_s12 = inlined_call_operand.hbm [shape: f32[24,2304], index: 12, kind: input, shape index: {}]   ;;  %s5786_s13 = inlined_call_operand.hbm [shape: f32[24,2304], index: 13, kind: input, shape index: {}]   ;;  %s5787_s14 = inlined_call_operand.hbm [shape: f32[24,2304], index: 14, kind: input, shape index: {}]   ;;  %s5788_s15 = inlined_call_operand.hbm [shape: f32[24,2304], index: 15, kind: input, shape index: {}]   ;;  %s5789_s16 = inlined_call_operand.hbm [shape: f32[24,2304], index: 16, kind: input, shape index: {}]   ;;  %s5790_s17 = inlined_call_operand.hbm [shape: f32[24,2304], index: 17, kind: input, shape index: {}]   ;;  %s5791_s18 = inlined_call_operand.vmem [shape: f32[24,128], index: 18, kind: input, shape index: {}]   ;;  %s5792_s19 = inlined_call_operand.hbm [shape: f32[2,5,8,128], index: 19, kind: output, shape index: {}]  }
   0x1   :  { %5944 = sst [smem:[#allocation111_spill]] %s5773_s0 }
   0x2   :  { %5945 = sst [smem:[#allocation112_spill]] %s5774_s1 }
   0x3   :  { %5946 = sst [smem:[#allocation113_spill]] %s5775_s2 }
   0x4   :  { %5947 = sst [smem:[#allocation114_spill]] %s5776_s3 }
   0x5   :  { %5948 = sst [smem:[#allocation115_spill]] %s5777_s4 }
   0x6   :  { %5949 = sst [smem:[#allocation116_spill]] %s5778_s5 }
   0x7   :  { %5950 = sst [smem:[#allocation117_spill]] %s5779_s6 }
   0x8   :  { %5951 = sst [smem:[#allocation118_spill]] %s5780_s7 }
   0x9   :  { %5952 = sst [smem:[#allocation119_spill]] %s5781_s8 }
   0xa   :  { %5953 = sst [smem:[#allocation120_spill]] %s5782_s9 }
   0xb   :  { %5954 = sst [smem:[#allocation121_spill]] %s5783_s10 }
   0xc   :  { %5955 = sst [smem:[#allocation122_spill]] %s5784_s11 }
   0xd   :  { %5956 = sst [smem:[#allocation123_spill]] %s5785_s12 }
   0xe   :  { %5957 = sst [smem:[#allocation124_spill]] %s5786_s13 }
   0xf   :  { %5958 = sst [smem:[#allocation125_spill]] %s5787_s14 }
  0x10   :  { %5959 = sst [smem:[#allocation126_spill]] %s5788_s15 }
  0x11   :  { %5960 = sst [smem:[#allocation127_spill]] %s5789_s16 }
  0x12   :  { %5961 = sst [smem:[#allocation128_spill]] %s5790_s17 }
  0x13   :  { %5962 = sst [smem:[#allocation129_spill]] %s5791_s18 }
  0x14   :  { %5963 = sst [smem:[#allocation130_spill]] %s5792_s19 }
  0x15   :  { %24 = vsyncpa [#allocation3], 0 }
  0x16   :  { %26 = vsyncpa [#allocation3 + $0x1], 0 }
  0x17   :  { %27 = vsyncpa [#allocation6], 0 }
  0x18   :  { %29 = vsyncpa [#allocation6 + $0x1], 0 }
  0x19   :  { %30 = vsyncpa [#allocation9], 0 }
  0x1a   :  { %32 = vsyncpa [#allocation9 + $0x1], 0 }
  0x1b   :  { %33 = vsyncpa [#allocation12], 0 }
  0x1c   :  { %35 = vsyncpa [#allocation12 + $0x1], 0 }
  0x1d   :  { %36 = vsyncpa [#allocation15], 0 }
  0x1e   :  { %38 = vsyncpa [#allocation15 + $0x1], 0 }
  0x1f   :  { %39 = vsyncpa [#allocation18], 0 }
  0x20   :  { %41 = vsyncpa [#allocation18 + $0x1], 0 }
  0x21   :  { %42 = vsyncpa [#allocation21], 0 }
  0x22   :  { %44 = vsyncpa [#allocation21 + $0x1], 0 }
  0x23   :  { %45 = vsyncpa [#allocation24], 0 }
  0x24   :  { %47 = vsyncpa [#allocation24 + $0x1], 0 }
  0x25   :  { %48 = vsyncpa [#allocation27], 0 }
  0x26   :  { %50 = vsyncpa [#allocation27 + $0x1], 0 }
  0x27   :  { %51 = vsyncpa [#allocation30], 0 }
  0x28   :  { %53 = vsyncpa [#allocation30 + $0x1], 0 }
  0x29   :  { %54 = vsyncpa [#allocation4], 0 }
  0x2a   :  { %56 = vsyncpa [#allocation4 + $0x1], 0  ;;  %s4204_s0 = smov 0   ;;  %s4206_s30 = smov 0  }
  0x2b   :  { %s4208_s20 = smov 0   ;;  %s4210_s21 = smov 0  }
  0x2c   :  { %5964 = sst [smem:[#allocation51_spill]] %s4208_s20  ;;  %s4212_s1 = smov 0  }
  0x2d   :  { %s4214_s22 = smov 0   ;;  %s4216_s2 = smov 0  }
  0x2e   :  { %5965 = sst [smem:[#allocation52_spill]] %s4216_s2  ;;  %s4218_s23 = smov 0  }
  0x2f   :  { %5966 = sst [smem:[#allocation53_spill]] %s4218_s23  ;;  %s4220_s24 = smov 0  }
  0x30   :  { %s4222_s25 = smov 0   ;;  %s4224_s3 = smov 0  }
  0x31   :  { %5967 = sst [smem:[#allocation54_spill]] %s4222_s25  ;;  %s4226_s26 = smov 0  }
  0x32   :  { %5968 = sst [smem:[#allocation55_spill]] %s4224_s3  ;;  %s4228_s27 = smov 0  }
  0x33   :  { %5969 = sst [smem:[#allocation56_spill]] %s4226_s26  ;;  %s4230_s28 = smov 0  }
  0x34   :  { %5970 = sst [smem:[#allocation57_spill]] %s4228_s27  ;;  %s4232_s29 = smov 0  }
  0x35   :  { %5971 = sst [smem:[#allocation58_spill]] %s4230_s28  ;;  %s4234_s19 = smov 0  }
  0x36   :  { %s4236_s18 = smov 0   ;;  %s4238_s17 = smov 0  }
  0x37   :  { %s4240_s16 = smov 0   ;;  %s4242_s14 = smov 0  }
  0x38   :  { %5972 = sst [smem:[#allocation59_spill]] %s4240_s16  ;;  %s4244_s12 = smov 0  }
  0x39   :  { %5973 = sst [smem:[#allocation60_spill]] %s4242_s14  ;;  %s4246_s10 = smov 0  }
  0x3a   :  { %5974 = sst [smem:[#allocation61_spill]] %s4244_s12  ;;  %s4248_s8 = smov 0  }
  0x3b   :  { %5975 = sst [smem:[#allocation62_spill]] %s4246_s10  ;;  %s4250_s6 = smov 0  }
  0x3c   :  { %5976 = sst [smem:[#allocation63_spill]] %s4248_s8  ;;  %s4252_s4 = smov 0  }
  0x3d   :  { %5977 = sst [smem:[#allocation64_spill]] %s4250_s6  ;;  %s4254_s15 = smov 0  }
  0x3e   :  { %5978 = sst [smem:[#allocation65_spill]] %s4252_s4  ;;  %s4256_s13 = smov 0  }
  0x3f   :  { %5979 = sst [smem:[#allocation66_spill]] %s4254_s15  ;;  %s4258_s11 = smov 0  }
  0x40   :  { %5980 = sst [smem:[#allocation67_spill]] %s4256_s13  ;;  %s4260_s9 = smov 0  }
  0x41   :  { %5981 = sst [smem:[#allocation68_spill]] %s4258_s11  ;;  %s4262_s7 = smov 0  }
  0x42   :  { %s4264_s5 = smov 0   ;;  %s4266_s12 = smov 0  }
  0x43   :  { %s4268_s10 = smov 0   ;;  %s4270_s8 = smov 0  }
  0x44   :  { %5982 = sst [smem:[#allocation69_spill]] %s4268_s10  ;;  %s4272_s6 = smov 0  }
  0x45   :  { %5983 = sst [smem:[#allocation70_spill]] %s4272_s6  ;;  %s4274_s4 = smov 0  }
  0x46   :  { %5984 = sst [smem:[#allocation71_spill]] %s4274_s4  ;;  %s4276_s15 = smov 0  }
  0x47   :  { %5985 = sst [smem:[#allocation72_spill]] %s4276_s15 }
  0x48 LB: > { %s6008_s20 = sld [smem:[#allocation51_spill]]  ;;  %s6009_s2 = sld [smem:[#allocation52_spill]]  ;;  %s4066_s8 = sphi %s4270_s8, %s6357_s8   ;;  %s4058_s12 = sphi %s4266_s12, %s6355_s12   ;;  %s4054_s5 = sphi %s4264_s5, %s6354_s5   ;;  %s4050_s7 = sphi %s4262_s7, %s6353_s7   ;;  %s4046_s9 = sphi %s4260_s9, %s6352_s9   ;;  %s4002_s17 = sphi %s4238_s17, %s6336_s17   ;;  %s3998_s18 = sphi %s4236_s18, %s6310_s18   ;;  %s3994_s19 = sphi %s4234_s19, %s6309_s19   ;;  %s3990_s29 = sphi %s4232_s29, %s6332_s29   ;;  %s3966_s24 = sphi %s4220_s24, %s6300_s24   ;;  %s3954_s22 = sphi %s4214_s22, %s6297_s22   ;;  %s3950_s1 = sphi %s4212_s1, %s6315_s1   ;;  %s3946_s21 = sphi %s4210_s21, %s6295_s21   ;;  %s3938_s30 = sphi %s4206_s30, %s6293_s30   ;;  %s3934_s0 = sphi %s4204_s0, %s6292_s0  }
  0x49   : > { %s6010_s23 = sld [smem:[#allocation53_spill]]  ;;  %s6011_s25 = sld [smem:[#allocation54_spill]] }
  0x4a   : > { %s6012_s3 = sld [smem:[#allocation55_spill]]  ;;  %s6013_s26 = sld [smem:[#allocation56_spill]] }
  0x4b   : > { %s6014_s27 = sld [smem:[#allocation57_spill]]  ;;  %s6015_s28 = sld [smem:[#allocation58_spill]] }
  0x4c   : > { %6016 = sst [smem:[#allocation51_spill]] %s3934_s0  ;;  %s6021_s14 = sld [smem:[#allocation60_spill]] }
  0x4d   : > { %6017 = sst [smem:[#allocation52_spill]] %s3938_s30  ;;  %s6019_s16 = sld [smem:[#allocation59_spill]] }
  0x4e   : > { %6018 = sst [smem:[#allocation53_spill]] %s6008_s20  ;;  %s6025_s4 = sld [smem:[#allocation62_spill]] }
  0x4f   : > { %6020 = sst [smem:[#allocation54_spill]] %s3946_s21  ;;  %s6023_s15 = sld [smem:[#allocation61_spill]] }
  0x50   : > { %6022 = sst [smem:[#allocation55_spill]] %s3950_s1  ;;  %s6029_s0 = sld [smem:[#allocation64_spill]] }
  0x51   : > { %6024 = sst [smem:[#allocation56_spill]] %s3954_s22  ;;  %s6027_s6 = sld [smem:[#allocation63_spill]] }
  0x52   : > { %6026 = sst [smem:[#allocation57_spill]] %s6009_s2  ;;  %s6033_s20 = sld [smem:[#allocation66_spill]] }
  0x53   : > { %6028 = sst [smem:[#allocation58_spill]] %s6010_s23  ;;  %s6031_s30 = sld [smem:[#allocation65_spill]] }
  0x54   : > { %6030 = sst [smem:[#allocation64_spill]] %s3966_s24  ;;  %s6035_s13 = sld [smem:[#allocation67_spill]] }
  0x55   : > { %6032 = sst [smem:[#allocation65_spill]] %s6011_s25  ;;  %s6037_s11 = sld [smem:[#allocation68_spill]] }
  0x56   : > { %6034 = sst [smem:[#allocation66_spill]] %s6012_s3  ;;  %s6041_s10 = sld [smem:[#allocation69_spill]] }
  0x57   : > { %6036 = sst [smem:[#allocation67_spill]] %s6013_s26  ;;  %s6043_s21 = sld [smem:[#allocation70_spill]] }
  0x58   : > { %6038 = sst [smem:[#allocation68_spill]] %s6015_s28  ;;  %s6045_s1 = sld [smem:[#allocation71_spill]] }
  0x59   : > { %6039 = sst [smem:[#allocation59_spill]] %s3990_s29  ;;  %s6047_s22 = sld [smem:[#allocation72_spill]] }
  0x5a   : > { %6040 = sst [smem:[#allocation60_spill]] %s3998_s18  ;;  %s6050_s23 = smov %s6029_s0 }
  0x5b   : > { %6042 = sst [smem:[#allocation69_spill]] %s4002_s17  ;;  %s6052_s25 = smov %s6033_s20 }
  0x5c   : > { %6044 = sst [smem:[#allocation70_spill]] %s6021_s14  ;;  %p105_p3 = scmp.ne.s32.totalorder %s4050_s7, %s4046_s9 }
  0x5d   : > { %6046 = sst [smem:[#allocation71_spill]] %s6023_s15  ;;  %s6060_s18 = smov %s6043_s21 }
  0x5e   : > { %6048 = sst [smem:[#allocation72_spill]] %s6027_s6  ;;  %s6062_s17 = smov %s6045_s1 }
  0x5f   : > { %6049 = sst [smem:[#allocation61_spill]] %s6029_s0  ;;  %p111_p7 = scmp.ne.s32.totalorder %s4046_s9, %s6037_s11 }
  0x60   : > { %6051 = sst [smem:[#allocation62_spill]] %s6033_s20  ;;  %s125_s2 = sadd.s32 2, %s4066_s8 }
  0x61   : > { %6053 = sst [smem:[#allocation63_spill]] %s6035_s13  ;;  %s136_s11 = sadd.s32 1, %s6035_s13 }
  0x62   : > { %6054 = sst [smem:[#allocation73_spill]] %s4046_s9  ;;  %p143_p11 = scmp.ne.s32.totalorder %s6035_s13, %s6052_s25 }
  0x63   : > { %6055 = sst [smem:[#allocation74_spill]] %s4054_s5  ;;  %s6064_s5 = smov %s6047_s22 }
  0x64   : > { %6056 = sst [smem:[#allocation75_spill]] %s4058_s12  ;;  %s4390_s0 = sadd.s32 4294967295, %s6064_s5  }
  0x65   : > { %6057 = sst [smem:[#allocation76_spill]] %s6041_s10  ;;  %s74_s12 = sadd.s32 1, %s4066_s8 }
  0x66   : > { %6058 = sst [smem:[#allocation77_spill]] %s4066_s8  ;;  %p75_p0 = scmp.ge.s32.totalorder %s74_s12, 2 }
  0x67   : > { %6059 = sst [smem:[#allocation78_spill]] %s6043_s21  ;;  %s77_s21 = sadd.s32 1, %s6060_s18 }
  0x68   : > { %6061 = sst [smem:[#allocation79_spill]] %s6045_s1  ;;  %s81_s10 = sadd.s32 1, %s6062_s17 }
  0x69   : > { %6063 = sst [smem:[#allocation80_spill]] %s6047_s22  ;;  %s2574_s1 = sshll.u32 %s6062_s17, 1 }
  0x6a   : > { %6065 = sst [smem:[#allocation81_spill]] %s4390_s0  ;;  %s6363_s12 = smov (%p75_p0, %s74_s12), 0 }
  0x6b   : > { %6066 = sst [smem:[#allocation82_spill]] %s6363_s12  ;;  %s6365_s21 = smov (!%p75_p0, %s77_s21), %s6060_s18 }
  0x6c   : > { %s86_s22 = sadd.s32 %s6060_s18, %s2574_s1  ;;  %s94_s24 = ssub.s32 %s4066_s8, %s6363_s12 }
  0x6d   : > { %p79_p1 = scmp.ge.s32.totalorder %s6365_s21, 2  ;;  %p87_p2 = scmp.lt.s32.totalorder %s86_s22, 2 }
  0x6e   : > { %p5867_p4 = scmp.eq.s32.totalorder %s6064_s5, 0  ;;  %p5844_p8 = scmp.eq.s32.totalorder %s4390_s0, 0 }
  0x6f   : > { %s6367_s21 = smov (%p79_p1, %s6365_s21), 0  ;;  %s6369_s10 = smov (!%p79_p1, %s81_s10), %s6062_s17 }
  0x70   : > { %6067 = sst [smem:[#allocation83_spill]] %s6367_s21  ;;  %s6068_s20 = smov %s6367_s21 }
  0x71   : > { %s6371_s22 = smov (!%p87_p2, %s86_s22), 2  ;;  %p83_p5 = scmp.ge.s32.totalorder %s6369_s10, 2 }
  0x72   : > { %6069 = sst [smem:[#allocation84_spill]] %s6371_s22  ;;  %p4414_p6 = por %p5867_p4, %p105_p3 }
  0x73   : > { %s6373_s10 = smov (%p83_p5, %s6369_s10), 0  ;;  %p4425_p9 = por %p5844_p8, %p111_p7 }
  0x74   : > { %s6070_s1 = scalar_select %p4414_p6, 1, 0 }
  0x75   : > { %6072 = sst [smem:[#allocation86_spill]] %s6373_s10  ;;  %s2575_s18 = sshll.u32 %s6373_s10, 1 }
  0x76   : > { %6071 = sst [smem:[#allocation85_spill]] %s6070_s1  ;;  %s130_s17 = sadd.s32 2, %s6363_s12 }
  0x77   : > { %s6073_s21 = scalar_select %p4425_p9, 1, 0 }
  0x78   : > { %s90_s3 = sadd.s32 %s2575_s18, %s6068_s20  ;;  %s132_s1 = ssub.s32 %s125_s2, %s130_s17 }
  0x79   : > { %6074 = sst [smem:[#allocation87_spill]] %s6073_s21  ;;  %p91_p10 = scmp.lt.s32.totalorder %s90_s3, 2 }
  0x7a   : > { %p149_p12 = scmp.ne.s32.totalorder %s6052_s25, %s6031_s30  ;;  %p4440_p13 = por %p143_p11, %p5867_p4 }
  0x7b   : > { %s6375_s3 = smov (!%p91_p10, %s90_s3), 2  ;;  %s163_s30 = sadd.s32 4, %s4066_s8 }
  0x7c   : > { %s6075_s21 = scalar_select %p4440_p13, 1, 0 }
  0x7d   : > { %p4446_p0 = por %p149_p12, %p5844_p8  ;;  %s4451_s18 = ssub.s32 %s6371_s22, %s6375_s3 }
  0x7e   : > { %6076 = sst [smem:[#allocation88_spill]] %s6075_s21  ;;  %s95_s2 = sor.u32 %s94_s24, %s4451_s18 }
  0x7f   : > { %s6077_s17 = scalar_select %p4446_p0, 1, 0 }
  0x80   : > { %s133_s20 = sor.u32 %s132_s1, %s4451_s18  ;;  %p96_p1 = scmp.eq.s32.totalorder %s95_s2, 0 }
  0x81   : > { %6078 = sst [smem:[#allocation89_spill]] %s6077_s17  ;;  %p134_p2 = scmp.eq.s32.totalorder %s133_s20, 0 }
  0x82   : > { %s168_s25 = sadd.s32 4, %s6363_s12  ;;  %s174_s17 = sadd.s32 1, %s6050_s23 }
  0x83   : > { %s6079_s9 = sadd.s32 1, %s4050_s7  ;;  %s170_s22 = ssub.s32 %s163_s30, %s168_s25 }
  0x84   : > { %s4461_s3 = scalar_select %p96_p1, %s4050_s7, %s6079_s9  }
  0x85   : > { %s4464_s21 = scalar_select %p134_p2, %s6035_s13, %s136_s11  }
  0x86   : > { %6080 = sst [smem:[#allocation90_spill]] %s4461_s3  ;;  %p181_p3 = scmp.ne.s32.totalorder %s6050_s23, %s6027_s6 }
  0x87   : > { %6081 = sst [smem:[#allocation91_spill]] %s4464_s21  ;;  %s171_s24 = sor.u32 %s170_s22, %s4451_s18 }
  0x88   : > { %p187_p5 = scmp.ne.s32.totalorder %s6027_s6, %s6025_s4  ;;  %p172_p7 = scmp.eq.s32.totalorder %s171_s24, 0 }
  0x89   : > { %p4473_p10 = por %p181_p3, %p5867_p4  ;;  %s6083_s9 = sld [smem:[#allocation69_spill]] }
  0x8a   : > { %p4479_p11 = por %p187_p5, %p5844_p8  ;;  %s201_s25 = sadd.s32 6, %s4066_s8 }
  0x8b   : > { %s6082_s20 = scalar_select %p4473_p10, 1, 0 }
  0x8c   : > { %s6084_s1 = scalar_select %p4479_p11, 1, 0 }
  0x8d   : > { %s6086_s21 = sld [smem:[#allocation60_spill]]  ;;  %s206_s4 = sadd.s32 6, %s6363_s12 }
  0x8e   : > { %6085 = sst [smem:[#allocation92_spill]] %s6084_s1  ;;  %s212_s30 = sadd.s32 1, %s6023_s15 }
  0x8f   : > { %s4485_s22 = scalar_select %p172_p7, %s6050_s23, %s174_s17  }
  0x90   : > { %s208_s2 = ssub.s32 %s201_s25, %s206_s4  ;;  %p219_p12 = scmp.ne.s32.totalorder %s6023_s15, %s6021_s14 }
  0x91   : > { %6087 = sst [smem:[#allocation93_spill]] %s4485_s22  ;;  %s209_s3 = sor.u32 %s208_s2, %s4451_s18 }
  0x92   : > { %p225_p1 = scmp.ne.s32.totalorder %s6021_s14, %s6019_s16  ;;  %p210_p2 = scmp.eq.s32.totalorder %s209_s3, 0 }
  0x93   : > { %p4496_p3 = por %p219_p12, %p5867_p4  ;;  %s239_s25 = sadd.s32 8, %s4066_s8 }
  0x94   : > { %p4502_p5 = por %p225_p1, %p5844_p8  ;;  %s244_s16 = sadd.s32 8, %s6363_s12 }
  0x95   : > { %s6088_s24 = scalar_select %p4496_p3, 1, 0 }
  0x96   : > { %s6089_s17 = scalar_select %p4502_p5, 1, 0 }
  0x97   : > { %s4508_s22 = scalar_select %p210_p2, %s6023_s15, %s212_s30  }
  0x98   : > { %6090 = sst [smem:[#allocation94_spill]] %s6089_s17  ;;  %s250_s4 = sadd.s32 1, %s6083_s9 }
  0x99   : > { %6091 = sst [smem:[#allocation95_spill]] %s4508_s22  ;;  %s246_s2 = ssub.s32 %s239_s25, %s244_s16 }
  0x9a   : > { %p257_p7 = scmp.ne.s32.totalorder %s6083_s9, %s6086_s21  ;;  %s247_s3 = sor.u32 %s246_s2, %s4451_s18 }
  0x9b   : > { %p263_p12 = scmp.ne.s32.totalorder %s6086_s21, %s3994_s19  ;;  %p248_p1 = scmp.eq.s32.totalorder %s247_s3, 0 }
  0x9c   : > { %p4519_p8 = por %p257_p7, %p5867_p4  ;;  %p6093_p2 = scmp.eq.s32.totalorder %s4390_s0, 0 }
  0x9d   : > { %s6094_s30 = smov %s6013_s26  ;;  %s277_s25 = sadd.s32 10, %s4066_s8 }
  0x9e   : > { %s6092_s10 = scalar_select %p4519_p8, 1, 0 }
  0x9f   : > { %p4525_p5 = por %p263_p12, %p6093_p2  ;;  %s6097_s16 = sld [smem:[#allocation66_spill]] }
  0xa0   : > { %s6377_s9 = smov (!%p248_p1, %s6083_s9), %s250_s4  ;;  %s282_s19 = sadd.s32 10, %s6363_s12 }
  0xa1   : > { %s6095_s26 = scalar_select %p4525_p5, 1, 0 }
  0xa2   : > { %6098 = sst [smem:[#allocation97_spill]] %s6377_s9  ;;  %s6099_s21 = sld [smem:[#allocation65_spill]] }
  0xa3   : > { %6096 = sst [smem:[#allocation96_spill]] %s6095_s26  ;;  %s288_s2 = sadd.s32 1, %s3990_s29 }
  0xa4   : > { %s284_s3 = ssub.s32 %s277_s25, %s282_s19  ;;  %p295_p7 = scmp.ne.s32.totalorder %s3990_s29, %s6015_s28 }
  0xa5   : > { %s285_s11 = sor.u32 %s284_s3, %s4451_s18  ;;  %p301_p12 = scmp.ne.s32.totalorder %s6015_s28, %s6014_s27 }
  0xa6   : > { %p286_p2 = scmp.eq.s32.totalorder %s285_s11, 0  ;;  %p4542_p5 = por %p295_p7, %p5867_p4 }
  0xa7   : > { %p6102_p1 = scmp.eq.s32.totalorder %s4390_s0, 0  ;;  %s6103_s4 = sld [smem:[#allocation64_spill]] }
  0xa8   : > { %s6100_s22 = scalar_select %p4542_p5, 1, 0 }
  0xa9   : > { %p4548_p11 = por %p301_p12, %p6102_p1  ;;  %s315_s25 = sadd.s32 12, %s4066_s8 }
  0xaa   : > { %6101 = sst [smem:[#allocation65_spill]] %s6100_s22  ;;  %s6106_s19 = sld [smem:[#allocation58_spill]] }
  0xab   : > { %s6104_s9 = scalar_select %p4548_p11, 1, 0 }
  0xac   : > { %s4554_s3 = scalar_select %p286_p2, %s3990_s29, %s288_s2  }
  0xad   : > { %6105 = sst [smem:[#allocation98_spill]] %s6104_s9  ;;  %s320_s27 = sadd.s32 12, %s6363_s12 }
  0xae   : > { %6107 = sst [smem:[#allocation99_spill]] %s4554_s3  ;;  %s6108_s11 = sld [smem:[#allocation57_spill]] }
  0xaf   : > { %s326_s28 = sadd.s32 1, %s6094_s30  ;;  %s322_s26 = ssub.s32 %s315_s25, %s320_s27 }
  0xb0   : > { %p333_p7 = scmp.ne.s32.totalorder %s6094_s30, %s6097_s16  ;;  %s323_s17 = sor.u32 %s322_s26, %s4451_s18 }
  0xb1   : > { %p339_p12 = scmp.ne.s32.totalorder %s6097_s16, %s6099_s21  ;;  %p324_p1 = scmp.eq.s32.totalorder %s323_s17, 0 }
  0xb2   : > { %p4565_p11 = por %p333_p7, %p5867_p4  ;;  %p6111_p2 = scmp.eq.s32.totalorder %s4390_s0, 0 }
  0xb3   : > { %s6112_s2 = sld [smem:[#allocation56_spill]]  ;;  %s353_s25 = sadd.s32 14, %s4066_s8 }
  0xb4   : > { %s6109_s9 = scalar_select %p4565_p11, 1, 0 }
  0xb5   : > { %p4571_p0 = por %p339_p12, %p6111_p2  ;;  %s6115_s27 = sld [smem:[#allocation55_spill]] }
  0xb6   : > { %6110 = sst [smem:[#allocation57_spill]] %s6109_s9  ;;  %s6379_s30 = smov (!%p324_p1, %s6094_s30), %s326_s28 }
  0xb7   : > { %s6113_s3 = scalar_select %p4571_p0, 1, 0 }
  0xb8   : > { %6116 = sst [smem:[#allocation101_spill]] %s6379_s30  ;;  %s358_s26 = sadd.s32 14, %s6363_s12 }
  0xb9   : > { %6114 = sst [smem:[#allocation100_spill]] %s6113_s3  ;;  %s6117_s17 = sld [smem:[#allocation54_spill]] }
  0xba   : > { %s364_s16 = sadd.s32 1, %s6103_s4  ;;  %s360_s21 = ssub.s32 %s353_s25, %s358_s26 }
  0xbb   : > { %p371_p7 = scmp.ne.s32.totalorder %s6103_s4, %s6106_s19  ;;  %s361_s14 = sor.u32 %s360_s21, %s4451_s18 }
  0xbc   : > { %s6118_s1 = sld [smem:[#allocation86_spill]]  ;;  %s6119_s6 = sld [smem:[#allocation79_spill]] }
  0xbd   : > { %p377_p12 = scmp.ne.s32.totalorder %s6106_s19, %s6108_s11  ;;  %p362_p2 = scmp.eq.s32.totalorder %s361_s14, 0 }
  0xbe   : > { %p4588_p0 = por %p371_p7, %p5867_p4  ;;  %p6122_p1 = scmp.eq.s32.totalorder %s4390_s0, 0 }
  0xbf   : > { %s6123_s28 = sld [smem:[#allocation53_spill]]  ;;  %s6126_s25 = sld [smem:[#allocation52_spill]] }
  0xc0   : > { %s6120_s3 = scalar_select %p4588_p0, 1, 0 }
  0xc1   : > { %p4594_p9 = por %p377_p12, %p6122_p1  ;;  %s391_s26 = sadd.s32 16, %s4066_s8 }
  0xc2   : > { %6121 = sst [smem:[#allocation54_spill]] %s6120_s3  ;;  %s6381_s4 = smov (!%p362_p2, %s6103_s4), %s364_s16 }
  0xc3   : > { %s6124_s30 = scalar_select %p4594_p9, 1, 0 }
  0xc4   : > { %6127 = sst [smem:[#allocation103_spill]] %s6381_s4  ;;  %s396_s19 = sadd.s32 16, %s6363_s12 }
  0xc5   : > { %6125 = sst [smem:[#allocation102_spill]] %s6124_s30  ;;  %s402_s14 = sadd.s32 1, %s6112_s2 }
  0xc6   : > { %s6128_s11 = sld [smem:[#allocation51_spill]]  ;;  %s398_s21 = ssub.s32 %s391_s26, %s396_s19 }
  0xc7   : > { %p409_p7 = scmp.ne.s32.totalorder %s6112_s2, %s6115_s27  ;;  %s399_s9 = sor.u32 %s398_s21, %s4451_s18 }
  0xc8   : > { %p415_p4 = scmp.ne.s32.totalorder %s6115_s27, %s6117_s17  ;;  %p400_p12 = scmp.eq.s32.totalorder %s399_s9, 0 }
  0xc9   : > { %p6129_p1 = scmp.eq.s32.totalorder %s6064_s5, 0  ;;  %p6131_p9 = scmp.eq.s32.totalorder %s4390_s0, 0 }
  0xca   : > { %s799_s12 = ssub.s32 %s6119_s6, %s6118_s1  ;;  %s6383_s2 = smov (!%p400_p12, %s6112_s2), %s402_s14 }
  0xcb   : > { %p4611_p11 = por %p409_p7, %p6129_p1  ;;  %p4617_p8 = por %p415_p4, %p6131_p9 }
  0xcc   : > { %6134 = sst [smem:[#allocation105_spill]] %s6383_s2  ;;  %p800_p2 = scmp.eq.s32.totalorder %s799_s12, 0 }
  0xcd   : > { %s6130_s30 = scalar_select %p4611_p11, 1, 0 }
  0xce   : > { %s6132_s16 = scalar_select %p4617_p8, 1, 0 }
  0xcf   : > { %s802_s26 = sadd.s32 1, %s6123_s28  ;;  %p812_p10 = scmp.ne.s32.totalorder %s6123_s28, %s6126_s25 }
  0xd0   : > { %6133 = sst [smem:[#allocation104_spill]] %s6132_s16  ;;  %p813_p6 = scmp.eq.s32.totalorder %s4390_s0, 7 }
  0xd1   : > { %s6385_s28 = smov (!%p800_p2, %s6123_s28), %s802_s26  ;;  %p818_p7 = scmp.ne.s32.totalorder %s6126_s25, %s6128_s11 }
  0xd2   : > { %6135 = sst [smem:[#allocation106_spill]] %s6385_s28  ;;  %p4633_p0 = por %p813_p6, %p812_p10 }
  0xd3   : > { %s6138_s9 = sadd.s32 4294967294, %s6064_s5   ;;  %p2613_p9 = scmp.ge.s32.totalorder %s6064_s5, 8 }
  0xd4   : > { %s6136_s18 = scalar_select %p4633_p0, 1, 0 }
  0xd5   : > { %p819_p1 = scmp.eq.s32.totalorder %s6138_s9, 7  ;;  %835 = sbr.rel (%p2613_p9) target bundleno = 743 (0x2e7), region = 16 }
  0xd6   : > { %6137 = sst [smem:[#allocation107_spill]] %s6136_s18 }
  0xd7   : > { %p4641_p4 = por %p819_p1, %p818_p7 }
  0xd9   : > { %s6139_s27 = scalar_select %p4641_p4, 1, 0 }
  0xdb   : > { %6140 = sst [smem:[#allocation108_spill]] %s6139_s27 }
  0xdc   : > { %s6141_s6 = sld [smem:[#allocation84_spill]]  ;;  %s6142_s12 = sld [smem:[#allocation88_spill]] }
  0xdd   : > { %s4648_s17 = sand.u32 1, %s6064_s5   ;;  %s865_s19 = sand.u32 1, %s6035_s13  }
  0xde   : > { %s4652_s14 = sshll.u32 %s865_s19, 3  ;;  %s6143_s9 = sld [smem:[#allocation112_spill]] }
  0xdf   : > { %s867_s28 = scalar_lea.vmem [#allocation5], %s4652_s14 }
  0xe0   : > { %s881_s27 = sshll.u32 %s867_s28, 4  ;;  %s882_s27 = int_to_ptr.vmem [resolvable:$true] %s881_s27 }
  0xe2   : > { %s2710_s1 = smul.u32 18, %s6141_s6  ;;  %s5890_s6 = scalar_lea.sflag [#allocation6], %s4648_s17 }
  0xe4   : > { %s852_s25 = sadd.s32 %s4066_s8, %s2710_s1  ;;  %s6144_s4 = smov %s6143_s9 }
  0xe5   : > { %s4654_s11 = sshll.u32 %s852_s25, 7  ;;  %s3164_s8 = scalar_lea.hbm %s6144_s4, 6912 }
  0xe6   : > { %s2118_s2 = scalar_lea.hbm %s6143_s9, %s4654_s11 }
  0xe7   : > { %s4661_s18 = scalar_lea.hbm %s2118_s2, 256  ;;  %s3188_s1 = scalar_lea.hbm %s2118_s2, 384 }
  0xe8   : > { %p3161_p6 = scmp.ne.s32.totalorder %s4661_s18, %s3188_s1  ;;  %p3165_p2 = scmp.lt.u32.totalorder %s4661_s18, %s6144_s4 }
  0xe9   : > { %p3166_p7 = scmp.lt.u32.totalorder %s3164_s8, %s3188_s1  ;;  %p3168_p9 = scmp.lt.u32.totalorder %s3188_s1, %s4661_s18 }
  0xea   : > { %p3162_p10 = pnand %p3161_p6, %p4440_p13 }
  0xeb   : > { %p3167_p1 = por %p3166_p7, %p3165_p2 }
  0xec   : > { %p3163_p12 = pneg %p3162_p10 }
  0xed   : > { %p3169_p4 = por %p3168_p9, %p3167_p1 }
  0xef   : > { %p3170_p0 = pnand %p3169_p4, %p3163_p12 }
  0xf1   : > { %3173 = shalt.err (!%p3170_p0)
}
  0xf2   : > { %s3174_s28 = scalar_lea.vmem %s882_s27, 128  ;;  %s4080_s2 = smov [#allocation5]  }
  0xf3   : > { %p3175_p8 = scmp.ne.s32.totalorder %s882_s27, %s3174_s28  ;;  %s3178_s9 = sshll.u32 %s4080_s2, 4  ;;  %s3179_s9 = int_to_ptr.vmem [resolvable:$false] %s3178_s9 }
  0xf4   : > { %s3180_s19 = scalar_lea.vmem %s3179_s9, 256  ;;  %p3181_p11 = scmp.lt.s32.totalorder %s882_s27, %s3179_s9 }
  0xf5   : > { %p3176_p6 = pnand %p3175_p8, %p4440_p13  ;;  %p3182_p5 = scmp.lt.s32.totalorder %s3180_s19, %s3174_s28 }
  0xf7   : > { %p3177_p10 = pneg %p3176_p6  ;;  %p3183_p3 = por %p3182_p5, %p3181_p11 }
  0xf9   : > { %p3184_p2 = pnand %p3183_p3, %p3177_p10 }
  0xfb   : > { %3187 = shalt.err (!%p3184_p2)
}
  0xfc   : > { %2725 = dma.hbm_to_vmem [thread:$0]  (%p4440_p13), %s4661_s18, 128, %s882_s27, %s5890_s6  }
  0xfd   : > { %s915_s8 = sand.u32 1, %s6023_s15   ;;  %s6145_s26 = sld [smem:[#allocation114_spill]] }
  0xfe   : > { %s4683_s1 = sshll.u32 %s915_s8, 3  ;;  %s965_s13 = sand.u32 1, %s3990_s29  }
  0xff   : > { %s917_s9 = scalar_lea.vmem [#allocation8], %s4683_s1  ;;  %s5895_s16 = scalar_lea.sflag [#allocation9], %s4648_s17 }
 0x100   : > { %s931_s19 = sshll.u32 %s917_s9, 4  ;;  %p6147_p0 = scmp.ne.s32.totalorder %s6088_s24, 0  ;;  %s4692_s19 = int_to_ptr.vmem [resolvable:$true] %s931_s19 }
 0x103   : > { %s6146_s4 = smov %s6145_s26  ;;  %s2134_s28 = scalar_lea.hbm %s6145_s26, %s4654_s11 }
 0x104   : > { %s4689_s2 = scalar_lea.hbm %s2134_s28, 768  ;;  %s3217_s18 = scalar_lea.hbm %s2134_s28, 896 }
 0x105   : > { %p3190_p8 = scmp.ne.s32.totalorder %s4689_s2, %s3217_s18  ;;  %s3193_s25 = scalar_lea.hbm %s6146_s4, 6912 }
 0x106   : > { %p3194_p5 = scmp.lt.u32.totalorder %s4689_s2, %s6146_s4  ;;  %p3195_p4 = scmp.lt.u32.totalorder %s3193_s25, %s3217_s18 }
 0x107   : > { %p3191_p11 = pnand %p3190_p8, %p6147_p0  ;;  %p3197_p7 = scmp.lt.u32.totalorder %s3217_s18, %s4689_s2 }
 0x108   : > { %p3196_p12 = por %p3195_p4, %p3194_p5 }
 0x109   : > { %p3192_p3 = pneg %p3191_p11 }
 0x10a   : > { %p3198_p1 = por %p3197_p7, %p3196_p12 }
 0x10c   : > { %p3199_p9 = pnand %p3198_p1, %p3192_p3 }
 0x10e   : > { %3202 = shalt.err (!%p3199_p9)
}
 0x10f   : > { %s3203_s28 = scalar_lea.vmem %s4692_s19, 128  ;;  %s4081_s9 = smov [#allocation8]  }
 0x110   : > { %p3204_p6 = scmp.ne.s32.totalorder %s4692_s19, %s3203_s28  ;;  %s3207_s27 = sshll.u32 %s4081_s9, 4  ;;  %s3208_s27 = int_to_ptr.vmem [resolvable:$false] %s3207_s27 }
 0x111   : > { %s3209_s8 = scalar_lea.vmem %s3208_s27, 256  ;;  %p3210_p8 = scmp.lt.s32.totalorder %s4692_s19, %s3208_s27 }
 0x112   : > { %p3205_p10 = pnand %p3204_p6, %p6147_p0  ;;  %p3211_p11 = scmp.lt.s32.totalorder %s3209_s8, %s3203_s28 }
 0x114   : > { %p3206_p2 = pneg %p3205_p10  ;;  %p3212_p5 = por %p3211_p11, %p3210_p8 }
 0x116   : > { %p3213_p4 = pnand %p3212_p5, %p3206_p2 }
 0x118   : > { %3216 = shalt.err (!%p3213_p4)
}
 0x119   : > { %s6148_s18 = sld [smem:[#allocation64_spill]]  ;;  %s4720_s25 = sshll.u32 %s965_s13, 3 }
 0x11a   : > { %2727 = dma.hbm_to_vmem [thread:$0]  (%p6147_p0), %s4689_s2, 128, %s4692_s19, %s5895_s16  }
 0x11b   : > { %6149 = sst [smem:[#allocation109_spill]] %s4720_s25  ;;  %s6150_s28 = sld [smem:[#allocation116_spill]] }
 0x11c   : > { %s967_s8 = scalar_lea.vmem [#allocation11], %s4720_s25  ;;  %s5897_s0 = scalar_lea.sflag [#allocation12], %s4648_s17 }
 0x11d   : > { %s981_s4 = sshll.u32 %s967_s8, 4  ;;  %p6152_p12 = scmp.ne.s32.totalorder %s6100_s22, 0  ;;  %s4729_s4 = int_to_ptr.vmem [resolvable:$true] %s981_s4 }
 0x11f   : > { %s1015_s15 = sand.u32 1, %s6148_s18  }
 0x121   : > { %s6151_s6 = smov %s6150_s28  ;;  %s2150_s9 = scalar_lea.hbm %s6150_s28, %s4654_s11 }
 0x122   : > { %s4726_s27 = scalar_lea.hbm %s2150_s9, 1280  ;;  %s3246_s2 = scalar_lea.hbm %s2150_s9, 1408 }
 0x123   : > { %p3219_p3 = scmp.ne.s32.totalorder %s4726_s27, %s3246_s2  ;;  %s3222_s21 = scalar_lea.hbm %s6151_s6, 6912 }
 0x124   : > { %p3223_p9 = scmp.lt.u32.totalorder %s4726_s27, %s6151_s6  ;;  %p3224_p6 = scmp.lt.u32.totalorder %s3222_s21, %s3246_s2 }
 0x125   : > { %p3220_p7 = pnand %p3219_p3, %p6152_p12  ;;  %p3226_p2 = scmp.lt.u32.totalorder %s3246_s2, %s4726_s27 }
 0x126   : > { %p3225_p10 = por %p3224_p6, %p3223_p9 }
 0x127   : > { %p3221_p1 = pneg %p3220_p7 }
 0x128   : > { %p3227_p8 = por %p3226_p2, %p3225_p10 }
 0x12a   : > { %p3228_p11 = pnand %p3227_p8, %p3221_p1 }
 0x12c   : > { %3231 = shalt.err (!%p3228_p11)
}
 0x12d   : > { %s3232_s9 = scalar_lea.vmem %s4729_s4, 128  ;;  %s4082_s8 = smov [#allocation11]  }
 0x12e   : > { %p3233_p5 = scmp.ne.s32.totalorder %s4729_s4, %s3232_s9  ;;  %s3236_s13 = sshll.u32 %s4082_s8, 4  ;;  %s3237_s13 = int_to_ptr.vmem [resolvable:$false] %s3236_s13 }
 0x12f   : > { %s3238_s19 = scalar_lea.vmem %s3237_s13, 256  ;;  %p3239_p7 = scmp.lt.s32.totalorder %s4729_s4, %s3237_s13 }
 0x130   : > { %p3234_p4 = pnand %p3233_p5, %p6152_p12  ;;  %p3240_p0 = scmp.lt.s32.totalorder %s3238_s19, %s3232_s9 }
 0x132   : > { %p3235_p3 = pneg %p3234_p4  ;;  %p3241_p9 = por %p3240_p0, %p3239_p7 }
 0x134   : > { %p3242_p6 = pnand %p3241_p9, %p3235_p3 }
 0x136   : > { %3245 = shalt.err (!%p3242_p6)
}
 0x137   : > { %2729 = dma.hbm_to_vmem [thread:$0]  (%p6152_p12), %s4726_s27, 128, %s4729_s4, %s5897_s0  }
 0x138   : > { %s4757_s2 = sshll.u32 %s1015_s15, 3  ;;  %s6154_s28 = sld [smem:[#allocation118_spill]] }
 0x139   : > { %6153 = sst [smem:[#allocation110_spill]] %s4757_s2  ;;  %s1017_s13 = scalar_lea.vmem [#allocation14], %s4757_s2 }
 0x13a   : > { %s1031_s19 = sshll.u32 %s1017_s13, 4  ;;  %s5899_s6 = sand.u32 1, %s4050_s7   ;;  %s4767_s19 = int_to_ptr.vmem [resolvable:$true] %s1031_s19 }
 0x13b   : > { %s4771_s4 = sshll.u32 %s5899_s6, 3  ;;  %s5903_s15 = scalar_lea.sflag [#allocation15], %s4648_s17 }
 0x13c   : > { %p6156_p1 = scmp.ne.s32.totalorder %s6120_s3, 0 }
 0x13e   : > { %s6155_s16 = smov %s6154_s28  ;;  %s2166_s9 = scalar_lea.hbm %s6154_s28, %s4654_s11 }
 0x13f   : > { %s4763_s8 = scalar_lea.hbm %s2166_s9, 1792  ;;  %s3275_s18 = scalar_lea.hbm %s2166_s9, 1920 }
 0x140   : > { %p3248_p0 = scmp.ne.s32.totalorder %s4763_s8, %s3275_s18  ;;  %s3251_s26 = scalar_lea.hbm %s6155_s16, 6912 }
 0x141   : > { %p3252_p8 = scmp.lt.u32.totalorder %s4763_s8, %s6155_s16  ;;  %p3253_p11 = scmp.lt.u32.totalorder %s3251_s26, %s3275_s18 }
 0x142   : > { %p3249_p10 = pnand %p3248_p0, %p6156_p1  ;;  %p3255_p4 = scmp.lt.u32.totalorder %s3275_s18, %s4763_s8 }
 0x143   : > { %p3254_p5 = por %p3253_p11, %p3252_p8 }
 0x144   : > { %p3250_p2 = pneg %p3249_p10 }
 0x145   : > { %p3256_p3 = por %p3255_p4, %p3254_p5 }
 0x147   : > { %p3257_p7 = pnand %p3256_p3, %p3250_p2 }
 0x149   : > { %3260 = shalt.err (!%p3257_p7)
}
 0x14a   : > { %s3261_s9 = scalar_lea.vmem %s4767_s19, 128  ;;  %s4083_s13 = smov [#allocation14]  }
 0x14b   : > { %p3262_p9 = scmp.ne.s32.totalorder %s4767_s19, %s3261_s9  ;;  %s3265_s27 = sshll.u32 %s4083_s13, 4  ;;  %s3266_s27 = int_to_ptr.vmem [resolvable:$false] %s3265_s27 }
 0x14c   : > { %s3267_s0 = scalar_lea.vmem %s3266_s27, 256  ;;  %p3268_p10 = scmp.lt.s32.totalorder %s4767_s19, %s3266_s27 }
 0x14d   : > { %p3263_p6 = pnand %p3262_p9, %p6156_p1  ;;  %p3269_p12 = scmp.lt.s32.totalorder %s3267_s0, %s3261_s9 }
 0x14f   : > { %p3264_p0 = pneg %p3263_p6  ;;  %p3270_p8 = por %p3269_p12, %p3268_p10 }
 0x151   : > { %p3271_p11 = pnand %p3270_p8, %p3264_p0 }
 0x153   : > { %3274 = shalt.err (!%p3271_p11)
}
 0x154   : > { %s6157_s18 = sld [smem:[#allocation85_spill]]  ;;  %s1067_s9 = scalar_lea.vmem [#allocation17], %s4771_s4 }
 0x155   : > { %2731 = dma.hbm_to_vmem [thread:$0]  (%p6156_p1), %s4763_s8, 128, %s4767_s19, %s5903_s15  }
 0x156   : > { %s6158_s28 = sld [smem:[#allocation120_spill]]  ;;  %s1080_s27 = sshll.u32 %s1067_s9, 4  ;;  %s4803_s27 = int_to_ptr.vmem [resolvable:$true] %s1080_s27 }
 0x157   : > { %s890_s0 = sand.u32 1, %s6050_s23   ;;  %s5913_s16 = scalar_lea.sflag [#allocation18], %s4648_s17 }
 0x15a   : > { %p6160_p2 = scmp.ne.s32.totalorder %s6157_s18, 0 }
 0x15c   : > { %s6159_s6 = smov %s6158_s28  ;;  %s4800_s13 = scalar_lea.hbm %s6158_s28, %s4654_s11 }
 0x15d   : > { %s3276_s29 = scalar_lea.hbm %s4800_s13, 128  ;;  %s3280_s21 = scalar_lea.hbm %s6159_s6, 6912 }
 0x15e   : > { %p3277_p12 = scmp.ne.s32.totalorder %s4800_s13, %s3276_s29  ;;  %p3281_p3 = scmp.lt.u32.totalorder %s4800_s13, %s6159_s6 }
 0x15f   : > { %p3282_p7 = scmp.lt.u32.totalorder %s3280_s21, %s3276_s29  ;;  %p3284_p6 = scmp.lt.u32.totalorder %s3276_s29, %s4800_s13 }
 0x160   : > { %p3278_p5 = pnand %p3277_p12, %p6160_p2 }
 0x161   : > { %p3283_p9 = por %p3282_p7, %p3281_p3 }
 0x162   : > { %p3279_p4 = pneg %p3278_p5 }
 0x163   : > { %p3285_p0 = por %p3284_p6, %p3283_p9 }
 0x165   : > { %p3286_p10 = pnand %p3285_p0, %p3279_p4 }
 0x167   : > { %3289 = shalt.err (!%p3286_p10)
}
 0x168   : > { %s3290_s9 = scalar_lea.vmem %s4803_s27, 128  ;;  %s4084_s8 = smov [#allocation17]  }
 0x169   : > { %p3291_p8 = scmp.ne.s32.totalorder %s4803_s27, %s3290_s9  ;;  %s3294_s19 = sshll.u32 %s4084_s8, 4  ;;  %s3295_s19 = int_to_ptr.vmem [resolvable:$false] %s3294_s19 }
 0x16a   : > { %s3296_s26 = scalar_lea.vmem %s3295_s19, 256  ;;  %p3297_p5 = scmp.lt.s32.totalorder %s4803_s27, %s3295_s19 }
 0x16b   : > { %p3292_p11 = pnand %p3291_p8, %p6160_p2  ;;  %p3298_p1 = scmp.lt.s32.totalorder %s3296_s26, %s3290_s9 }
 0x16d   : > { %p3293_p12 = pneg %p3292_p11  ;;  %p3299_p3 = por %p3298_p1, %p3297_p5 }
 0x16f   : > { %p3300_p7 = pnand %p3299_p3, %p3293_p12 }
 0x171   : > { %3303 = shalt.err (!%p3300_p7)
}
 0x172   : > { %s6161_s29 = sld [smem:[#allocation69_spill]]  ;;  %s4832_s21 = sshll.u32 %s890_s0, 3 }
 0x173   : > { %2733 = dma.hbm_to_vmem [thread:$0]  (%p6160_p2), %s4800_s13, 128, %s4803_s27, %s5913_s16  }
 0x174   : > { %s6162_s8 = sld [smem:[#allocation122_spill]]  ;;  %s1116_s6 = scalar_lea.vmem [#allocation20], %s4832_s21 }
 0x175   : > { %s1130_s5 = sshll.u32 %s1116_s6, 4  ;;  %s5917_s2 = scalar_lea.sflag [#allocation21], %s4648_s17  ;;  %s4841_s5 = int_to_ptr.vmem [resolvable:$true] %s1130_s5 }
 0x176   : > { %p6164_p4 = scmp.ne.s32.totalorder %s6082_s20, 0 }
 0x178   : > { %s940_s3 = sand.u32 1, %s6161_s29  }
 0x17a   : > { %s6163_s15 = smov %s6162_s8  ;;  %s2197_s19 = scalar_lea.hbm %s6162_s8, %s4654_s11 }
 0x17b   : > { %s4838_s26 = scalar_lea.hbm %s2197_s19, 512  ;;  %s3332_s13 = scalar_lea.hbm %s2197_s19, 640 }
 0x17c   : > { %p3305_p1 = scmp.ne.s32.totalorder %s4838_s26, %s3332_s13  ;;  %s3308_s28 = scalar_lea.hbm %s6163_s15, 6912 }
 0x17d   : > { %p3309_p0 = scmp.lt.u32.totalorder %s4838_s26, %s6163_s15  ;;  %p3310_p10 = scmp.lt.u32.totalorder %s3308_s28, %s3332_s13 }
 0x17e   : > { %p3306_p9 = pnand %p3305_p1, %p6164_p4  ;;  %p3312_p11 = scmp.lt.u32.totalorder %s3332_s13, %s4838_s26 }
 0x17f   : > { %p3311_p8 = por %p3310_p10, %p3309_p0 }
 0x180   : > { %p3307_p6 = pneg %p3306_p9 }
 0x181   : > { %p3313_p12 = por %p3312_p11, %p3311_p8 }
 0x183   : > { %p3314_p5 = pnand %p3313_p12, %p3307_p6 }
 0x185   : > { %3317 = shalt.err (!%p3314_p5)
}
 0x186   : > { %s3318_s6 = scalar_lea.vmem %s4841_s5, 128  ;;  %s4085_s19 = smov [#allocation20]  }
 0x187   : > { %p3319_p3 = scmp.ne.s32.totalorder %s4841_s5, %s3318_s6  ;;  %s3322_s27 = sshll.u32 %s4085_s19, 4  ;;  %s3323_s27 = int_to_ptr.vmem [resolvable:$false] %s3322_s27 }
 0x188   : > { %s3324_s0 = scalar_lea.vmem %s3323_s27, 256  ;;  %p3325_p9 = scmp.lt.s32.totalorder %s4841_s5, %s3323_s27 }
 0x189   : > { %p3320_p7 = pnand %p3319_p3, %p6164_p4  ;;  %p3326_p13 = scmp.lt.s32.totalorder %s3324_s0, %s3318_s6 }
 0x18b   : > { %p3321_p1 = pneg %p3320_p7  ;;  %p3327_p0 = por %p3326_p13, %p3325_p9 }
 0x18d   : > { %p3328_p10 = pnand %p3327_p0, %p3321_p1 }
 0x18f   : > { %3331 = shalt.err (!%p3328_p10)
}
 0x190   : > { %s6165_s13 = sld [smem:[#allocation67_spill]]  ;;  %s4869_s28 = sshll.u32 %s940_s3, 3 }
 0x191   : > { %2735 = dma.hbm_to_vmem [thread:$0]  (%p6164_p4), %s4838_s26, 128, %s4841_s5, %s5917_s2  }
 0x192   : > { %s6166_s6 = sld [smem:[#allocation124_spill]]  ;;  %s1166_s0 = scalar_lea.vmem [#allocation23], %s4869_s28 }
 0x193   : > { %s1180_s16 = sshll.u32 %s1166_s0, 4  ;;  %s5924_s23 = scalar_lea.sflag [#allocation24], %s4648_s17  ;;  %s4878_s16 = int_to_ptr.vmem [resolvable:$true] %s1180_s16 }
 0x194   : > { %p6167_p6 = scmp.ne.s32.totalorder %s6092_s10, 0 }
 0x196   : > { %s990_s15 = sand.u32 1, %s6165_s13  }
 0x198   : > { %s2213_s19 = scalar_lea.hbm %s6166_s6, %s4654_s11  ;;  %s3337_s26 = scalar_lea.hbm %s6166_s6, 6912 }
 0x199   : > { %s4875_s27 = scalar_lea.hbm %s2213_s19, 1024  ;;  %s3361_s5 = scalar_lea.hbm %s2213_s19, 1152 }
 0x19a   : > { %p3334_p13 = scmp.ne.s32.totalorder %s4875_s27, %s3361_s5  ;;  %p3338_p12 = scmp.lt.u32.totalorder %s4875_s27, %s6166_s6 }
 0x19b   : > { %p3339_p5 = scmp.lt.u32.totalorder %s3337_s26, %s3361_s5  ;;  %p3341_p7 = scmp.lt.u32.totalorder %s3361_s5, %s4875_s27 }
 0x19c   : > { %p3335_p8 = pnand %p3334_p13, %p6167_p6 }
 0x19d   : > { %p3340_p3 = por %p3339_p5, %p3338_p12 }
 0x19e   : > { %p3336_p11 = pneg %p3335_p8 }
 0x19f   : > { %p3342_p1 = por %p3341_p7, %p3340_p3 }
 0x1a1   : > { %p3343_p9 = pnand %p3342_p1, %p3336_p11 }
 0x1a3   : > { %3346 = shalt.err (!%p3343_p9)
}
 0x1a4   : > { %s3347_s19 = scalar_lea.vmem %s4878_s16, 128  ;;  %s4086_s0 = smov [#allocation23]  }
 0x1a5   : > { %p3348_p0 = scmp.ne.s32.totalorder %s4878_s16, %s3347_s19  ;;  %s3351_s3 = sshll.u32 %s4086_s0, 4  ;;  %s3352_s3 = int_to_ptr.vmem [resolvable:$false] %s3351_s3 }
 0x1a6   : > { %s3353_s29 = scalar_lea.vmem %s3352_s3, 256  ;;  %p3354_p8 = scmp.lt.s32.totalorder %s4878_s16, %s3352_s3 }
 0x1a7   : > { %p3349_p10 = pnand %p3348_p0, %p6167_p6  ;;  %p3355_p4 = scmp.lt.s32.totalorder %s3353_s29, %s3347_s19 }
 0x1a9   : > { %p3350_p13 = pneg %p3349_p10  ;;  %p3356_p12 = por %p3355_p4, %p3354_p8 }
 0x1ab   : > { %p3357_p5 = pnand %p3356_p12, %p3350_p13 }
 0x1ad   : > { %3360 = shalt.err (!%p3357_p5)
}
 0x1ae   : > { %s6168_s5 = sld [smem:[#allocation57_spill]]  ;;  %s4906_s26 = sshll.u32 %s990_s15, 3 }
 0x1af   : > { %2737 = dma.hbm_to_vmem [thread:$0]  (%p6167_p6), %s4875_s27, 128, %s4878_s16, %s5924_s23  }
 0x1b0   : > { %s6169_s19 = sld [smem:[#allocation126_spill]]  ;;  %s1216_s29 = scalar_lea.vmem [#allocation26], %s4906_s26 }
 0x1b1   : > { %s1230_s6 = sshll.u32 %s1216_s29, 4  ;;  %s5926_s22 = scalar_lea.sflag [#allocation27], %s4648_s17  ;;  %s1231_s6 = int_to_ptr.vmem [resolvable:$true] %s1230_s6 }
 0x1b4   : > { %p6171_p11 = scmp.ne.s32.totalorder %s6168_s5, 0 }
 0x1b6   : > { %s6170_s2 = smov %s6169_s19  ;;  %s2229_s0 = scalar_lea.hbm %s6169_s19, %s4654_s11 }
 0x1b7   : > { %s4912_s3 = scalar_lea.hbm %s2229_s0, 1536  ;;  %s3390_s25 = scalar_lea.hbm %s2229_s0, 1664 }
 0x1b8   : > { %p3363_p4 = scmp.ne.s32.totalorder %s4912_s3, %s3390_s25  ;;  %s3366_s13 = scalar_lea.hbm %s6170_s2, 6912 }
 0x1b9   : > { %p3367_p1 = scmp.lt.u32.totalorder %s4912_s3, %s6170_s2  ;;  %p3368_p9 = scmp.lt.u32.totalorder %s3366_s13, %s3390_s25 }
 0x1ba   : > { %p3364_p3 = pnand %p3363_p4, %p6171_p11  ;;  %p3370_p10 = scmp.lt.u32.totalorder %s3390_s25, %s4912_s3 }
 0x1bb   : > { %p3369_p0 = por %p3368_p9, %p3367_p1 }
 0x1bc   : > { %p3365_p7 = pneg %p3364_p3 }
 0x1bd   : > { %p3371_p13 = por %p3370_p10, %p3369_p0 }
 0x1bf   : > { %p3372_p8 = pnand %p3371_p13, %p3365_p7 }
 0x1c1   : > { %3375 = shalt.err (!%p3372_p8)
}
 0x1c2   : > { %s3376_s8 = scalar_lea.vmem %s1231_s6, 128  ;;  %s4087_s19 = smov [#allocation26]  }
 0x1c3   : > { %p3377_p12 = scmp.ne.s32.totalorder %s1231_s6, %s3376_s8  ;;  %s3380_s0 = sshll.u32 %s4087_s19, 4  ;;  %s3381_s0 = int_to_ptr.vmem [resolvable:$false] %s3380_s0 }
 0x1c4   : > { %s3382_s29 = scalar_lea.vmem %s3381_s0, 256  ;;  %p3383_p3 = scmp.lt.s32.totalorder %s1231_s6, %s3381_s0 }
 0x1c5   : > { %p3378_p5 = pnand %p3377_p12, %p6171_p11  ;;  %p3384_p6 = scmp.lt.s32.totalorder %s3382_s29, %s3376_s8 }
 0x1c7   : > { %p3379_p4 = pneg %p3378_p5  ;;  %p3385_p2 = por %p3384_p6, %p3383_p3 }
 0x1c9   : > { %p3386_p1 = pnand %p3385_p2, %p3379_p4 }
 0x1cb   : > { %3389 = shalt.err (!%p3386_p1)
}
 0x1cc   : > { %2739 = dma.hbm_to_vmem [thread:$0]  (%p6171_p11), %s4912_s3, 128, %s1231_s6, %s5926_s22  }
 0x1cd   : > { %s6172_s15 = sld [smem:[#allocation111_spill]]  ;;  %s843_s27 = scalar_lea.vmem [#allocation2], %s4771_s4 }
 0x1ce   : > { %s856_s9 = sshll.u32 %s843_s27, 4  ;;  %s6173_s0 = sld [smem:[#allocation113_spill]]  ;;  %s4941_s9 = int_to_ptr.vmem [resolvable:$true] %s856_s9 }
 0x1cf   : > { %s6175_s2 = sand.u32 1, %s4050_s7   ;;  %p6176_p6 = scmp.ne.s32.totalorder %s6157_s18, 0 }
 0x1d0   : > { %s840_s6 = scalar_lea.sflag [#allocation3], %s6175_s2 }
 0x1d3   : > { %s4938_s13 = scalar_lea.hbm %s6172_s15, %s4654_s11  ;;  %s3395_s22 = scalar_lea.hbm %s6172_s15, 6912 }
 0x1d4   : > { %s6174_s23 = smov %s6173_s0  ;;  %s4947_s29 = scalar_lea.hbm %s6173_s0, %s4654_s11 }
 0x1d5   : > { %s3391_s3 = scalar_lea.hbm %s4938_s13, 128  ;;  %p3396_p0 = scmp.lt.u32.totalorder %s4938_s13, %s6172_s15 }
 0x1d6   : > { %p3392_p2 = scmp.ne.s32.totalorder %s4938_s13, %s3391_s3  ;;  %p3397_p10 = scmp.lt.u32.totalorder %s3395_s22, %s3391_s3 }
 0x1d7   : > { %p3399_p8 = scmp.lt.u32.totalorder %s3391_s3, %s4938_s13 }
 0x1d8   : > { %p3393_p7 = pnand %p3392_p2, %p6176_p6  ;;  %p3398_p13 = por %p3397_p10, %p3396_p0 }
 0x1da   : > { %p3394_p9 = pneg %p3393_p7  ;;  %p3400_p12 = por %p3399_p8, %p3398_p13 }
 0x1dc   : > { %p3401_p5 = pnand %p3400_p12, %p3394_p9 }
 0x1de   : > { %3404 = shalt.err (!%p3401_p5)
}
 0x1df   : > { %s3405_s2 = scalar_lea.vmem %s4941_s9, 128  ;;  %s4088_s8 = smov [#allocation2]  }
 0x1e0   : > { %p3406_p4 = scmp.ne.s32.totalorder %s4941_s9, %s3405_s2  ;;  %s3409_s19 = sshll.u32 %s4088_s8, 4  ;;  %s3410_s19 = int_to_ptr.vmem [resolvable:$false] %s3409_s19 }
 0x1e1   : > { %s3411_s0 = scalar_lea.vmem %s3410_s19, 256  ;;  %p3412_p2 = scmp.lt.s32.totalorder %s4941_s9, %s3410_s19 }
 0x1e2   : > { %p3407_p3 = pnand %p3406_p4, %p6176_p6  ;;  %p3413_p7 = scmp.lt.s32.totalorder %s3411_s0, %s3405_s2 }
 0x1e4   : > { %p3408_p1 = pneg %p3407_p3  ;;  %p3414_p0 = por %p3413_p7, %p3412_p2 }
 0x1e6   : > { %p3415_p10 = pnand %p3414_p0, %p3408_p1 }
 0x1e8   : > { %3418 = shalt.err (!%p3415_p10)
}
 0x1e9   : > { %2724 = dma.hbm_to_vmem [thread:$0]  (%p6176_p6), %s4938_s13, 128, %s4941_s9, %s840_s6  }
 0x1ea   : > { %s4973_s22 = scalar_lea.hbm %s4947_s29, 512  ;;  %s892_s3 = scalar_lea.vmem [#allocation7], %s4832_s21 }
 0x1eb   : > { %s906_s25 = sshll.u32 %s892_s3, 4  ;;  %s3447_s16 = scalar_lea.hbm %s4947_s29, 640  ;;  %s907_s25 = int_to_ptr.vmem [resolvable:$true] %s906_s25 }
 0x1ec   : > { %p3420_p9 = scmp.ne.s32.totalorder %s4973_s22, %s3447_s16  ;;  %p6177_p13 = scmp.ne.s32.totalorder %s6082_s20, 0 }
 0x1ed   : > { %s3423_s27 = scalar_lea.hbm %s6174_s23, 6912  ;;  %p3424_p6 = scmp.lt.u32.totalorder %s4973_s22, %s6174_s23 }
 0x1ee   : > { %p3421_p8 = pnand %p3420_p9, %p6177_p13  ;;  %p3425_p5 = scmp.lt.u32.totalorder %s3423_s27, %s3447_s16 }
 0x1ef   : > { %p3427_p3 = scmp.lt.u32.totalorder %s3447_s16, %s4973_s22 }
 0x1f0   : > { %p3422_p12 = pneg %p3421_p8  ;;  %p3426_p4 = por %p3425_p5, %p3424_p6 }
 0x1f2   : > { %p3428_p1 = por %p3427_p3, %p3426_p4 }
 0x1f4   : > { %p3429_p2 = pnand %p3428_p1, %p3422_p12 }
 0x1f6   : > { %3432 = shalt.err (!%p3429_p2)
}
 0x1f7   : > { %s3433_s21 = scalar_lea.vmem %s907_s25, 128  ;;  %s4089_s13 = smov [#allocation7]  }
 0x1f8   : > { %p3434_p7 = scmp.ne.s32.totalorder %s907_s25, %s3433_s21  ;;  %s3437_s9 = sshll.u32 %s4089_s13, 4  ;;  %s3438_s9 = int_to_ptr.vmem [resolvable:$false] %s3437_s9 }
 0x1f9   : > { %s3439_s29 = scalar_lea.vmem %s3438_s9, 256  ;;  %p3440_p9 = scmp.lt.s32.totalorder %s907_s25, %s3438_s9 }
 0x1fa   : > { %p3435_p0 = pnand %p3434_p7, %p6177_p13  ;;  %p3441_p8 = scmp.lt.s32.totalorder %s3439_s29, %s3433_s21 }
 0x1fc   : > { %p3436_p10 = pneg %p3435_p0  ;;  %p3442_p11 = por %p3441_p8, %p3440_p9 }
 0x1fe   : > { %p3443_p5 = pnand %p3442_p11, %p3436_p10 }
 0x200   : > { %3446 = shalt.err (!%p3443_p5)
}
 0x201   : > { %s6178_s6 = scalar_lea.sflag [#allocation6], %s4648_s17  ;;  %s6179_s3 = sld [smem:[#allocation115_spill]] }
 0x202   : > { %2726 = dma.hbm_to_vmem [thread:$0]  (%p6177_p13), %s4973_s22, 128, %s907_s25, %s6178_s6  }
 0x203   : > { %s942_s4 = scalar_lea.vmem [#allocation10], %s4869_s28  ;;  %p6181_p12 = scmp.ne.s32.totalorder %s6092_s10, 0 }
 0x204   : > { %s956_s27 = sshll.u32 %s942_s4, 4  ;;  %s957_s27 = int_to_ptr.vmem [resolvable:$true] %s956_s27 }
 0x207   : > { %s6180_s16 = smov %s6179_s3  ;;  %s2142_s18 = scalar_lea.hbm %s6179_s3, %s4654_s11 }
 0x208   : > { %s2143_s2 = scalar_lea.hbm %s2142_s18, 1024  ;;  %s3476_s8 = scalar_lea.hbm %s2142_s18, 1152 }
 0x209   : > { %p3449_p11 = scmp.ne.s32.totalorder %s2143_s2, %s3476_s8  ;;  %s3452_s13 = scalar_lea.hbm %s6180_s16, 6912 }
 0x20a   : > { %p3453_p13 = scmp.lt.u32.totalorder %s2143_s2, %s6180_s16  ;;  %p3454_p3 = scmp.lt.u32.totalorder %s3452_s13, %s3476_s8 }
 0x20b   : > { %p3450_p6 = pnand %p3449_p11, %p6181_p12  ;;  %p3456_p2 = scmp.lt.u32.totalorder %s3476_s8, %s2143_s2 }
 0x20c   : > { %p3455_p1 = por %p3454_p3, %p3453_p13 }
 0x20d   : > { %p3451_p4 = pneg %p3450_p6 }
 0x20e   : > { %p3457_p7 = por %p3456_p2, %p3455_p1 }
 0x210   : > { %p3458_p0 = pnand %p3457_p7, %p3451_p4 }
 0x212   : > { %3461 = shalt.err (!%p3458_p0)
}
 0x213   : > { %s3462_s28 = scalar_lea.vmem %s957_s27, 128  ;;  %s4090_s22 = smov [#allocation10]  }
 0x214   : > { %p3463_p10 = scmp.ne.s32.totalorder %s957_s27, %s3462_s28  ;;  %s3466_s25 = sshll.u32 %s4090_s22, 4  ;;  %s3467_s25 = int_to_ptr.vmem [resolvable:$false] %s3466_s25 }
 0x215   : > { %s3468_s6 = scalar_lea.vmem %s3467_s25, 256  ;;  %p3469_p5 = scmp.lt.s32.totalorder %s957_s27, %s3467_s25 }
 0x216   : > { %p3464_p9 = pnand %p3463_p10, %p6181_p12  ;;  %p3470_p11 = scmp.lt.s32.totalorder %s3468_s6, %s3462_s28 }
 0x218   : > { %p3465_p8 = pneg %p3464_p9  ;;  %p3471_p6 = por %p3470_p11, %p3469_p5 }
 0x21a   : > { %p3472_p3 = pnand %p3471_p6, %p3465_p8 }
 0x21c   : > { %3475 = shalt.err (!%p3472_p3)
}
 0x21d   : > { %s6182_s19 = scalar_lea.sflag [#allocation9], %s4648_s17  ;;  %s6183_s0 = sld [smem:[#allocation56_spill]] }
 0x21e   : > { %2728 = dma.hbm_to_vmem [thread:$0]  (%p6181_p12), %s2143_s2, 128, %s957_s27, %s6182_s19  }
 0x21f   : > { %s6184_s4 = sld [smem:[#allocation117_spill]]  ;;  %s992_s21 = scalar_lea.vmem [#allocation13], %s4906_s26 }
 0x220   : > { %s1006_s13 = sshll.u32 %s992_s21, 4  ;;  %p6185_p13 = scmp.ne.s32.totalorder %s6168_s5, 0  ;;  %s1007_s13 = int_to_ptr.vmem [resolvable:$true] %s1006_s13 }
 0x223   : > { %s5929_s10 = sand.u32 1, %s6183_s0  }
 0x225   : > { %s2158_s8 = scalar_lea.hbm %s6184_s4, %s4654_s11  ;;  %s3481_s2 = scalar_lea.hbm %s6184_s4, 6912 }
 0x226   : > { %s5018_s20 = scalar_lea.hbm %s2158_s8, 1536  ;;  %s3505_s9 = scalar_lea.hbm %s2158_s8, 1664 }
 0x227   : > { %p3478_p4 = scmp.ne.s32.totalorder %s5018_s20, %s3505_s9  ;;  %p3482_p12 = scmp.lt.u32.totalorder %s5018_s20, %s6184_s4 }
 0x228   : > { %p3483_p7 = scmp.lt.u32.totalorder %s3481_s2, %s3505_s9  ;;  %p3485_p10 = scmp.lt.u32.totalorder %s3505_s9, %s5018_s20 }
 0x229   : > { %p3479_p1 = pnand %p3478_p4, %p6185_p13 }
 0x22a   : > { %p3484_p0 = por %p3483_p7, %p3482_p12 }
 0x22b   : > { %p3480_p2 = pneg %p3479_p1 }
 0x22c   : > { %p3486_p9 = por %p3485_p10, %p3484_p0 }
 0x22e   : > { %p3487_p8 = pnand %p3486_p9, %p3480_p2 }
 0x230   : > { %3490 = shalt.err (!%p3487_p8)
}
 0x231   : > { %s3491_s26 = scalar_lea.vmem %s1007_s13, 128  ;;  %s4091_s25 = smov [#allocation13]  }
 0x232   : > { %p3492_p5 = scmp.ne.s32.totalorder %s1007_s13, %s3491_s26  ;;  %s3495_s6 = sshll.u32 %s4091_s25, 4  ;;  %s3496_s6 = int_to_ptr.vmem [resolvable:$false] %s3495_s6 }
 0x233   : > { %s3497_s19 = scalar_lea.vmem %s3496_s6, 256  ;;  %p3498_p3 = scmp.lt.s32.totalorder %s1007_s13, %s3496_s6 }
 0x234   : > { %p3493_p11 = pnand %p3492_p5, %p6185_p13  ;;  %p3499_p4 = scmp.lt.s32.totalorder %s3497_s19, %s3491_s26 }
 0x236   : > { %p3494_p6 = pneg %p3493_p11  ;;  %p3500_p1 = por %p3499_p4, %p3498_p3 }
 0x238   : > { %p3501_p7 = pnand %p3500_p1, %p3494_p6 }
 0x23a   : > { %3504 = shalt.err (!%p3501_p7)
}
 0x23b   : > { %s6186_s3 = scalar_lea.sflag [#allocation12], %s4648_s17  ;;  %s5042_s18 = sshll.u32 %s5929_s10, 3 }
 0x23c   : > { %2730 = dma.hbm_to_vmem [thread:$0]  (%p6185_p13), %s5018_s20, 128, %s1007_s13, %s6186_s3  }
 0x23d   : > { %s6187_s9 = sld [smem:[#allocation119_spill]]  ;;  %s1042_s5 = scalar_lea.vmem [#allocation16], %s5042_s18 }
 0x23e   : > { %s1056_s28 = sshll.u32 %s1042_s5, 4  ;;  %s6189_s25 = sld [smem:[#allocation121_spill]]  ;;  %s1057_s28 = int_to_ptr.vmem [resolvable:$true] %s1056_s28 }
 0x23f   : > { %p6191_p2 = scmp.ne.s32.totalorder %s6130_s30, 0 }
 0x243   : > { %s6188_s2 = smov %s6187_s9  ;;  %s2174_s29 = scalar_lea.hbm %s6187_s9, %s4654_s11 }
 0x244   : > { %s5048_s27 = scalar_lea.hbm %s2174_s29, 2048  ;;  %s6190_s6 = smov %s6189_s25 }
 0x245   : > { %s5055_s20 = scalar_lea.hbm %s6189_s25, %s4654_s11  ;;  %s3534_s13 = scalar_lea.hbm %s2174_s29, 2176 }
 0x246   : > { %p3507_p13 = scmp.ne.s32.totalorder %s5048_s27, %s3534_s13  ;;  %s3510_s8 = scalar_lea.hbm %s6188_s2, 6912 }
 0x247   : > { %p3511_p10 = scmp.lt.u32.totalorder %s5048_s27, %s6188_s2  ;;  %p3512_p9 = scmp.lt.u32.totalorder %s3510_s8, %s3534_s13 }
 0x248   : > { %p3508_p12 = pnand %p3507_p13, %p6191_p2  ;;  %p3514_p5 = scmp.lt.u32.totalorder %s3534_s13, %s5048_s27 }
 0x249   : > { %p3513_p8 = por %p3512_p9, %p3511_p10 }
 0x24a   : > { %p3509_p0 = pneg %p3508_p12 }
 0x24b   : > { %p3515_p11 = por %p3514_p5, %p3513_p8 }
 0x24d   : > { %p3516_p6 = pnand %p3515_p11, %p3509_p0 }
 0x24f   : > { %3519 = shalt.err (!%p3516_p6)
}
 0x250   : > { %s3520_s5 = scalar_lea.vmem %s1057_s28, 128  ;;  %s4092_s29 = smov [#allocation16]  }
 0x251   : > { %p3521_p3 = scmp.ne.s32.totalorder %s1057_s28, %s3520_s5  ;;  %s3524_s22 = sshll.u32 %s4092_s29, 4  ;;  %s3525_s22 = int_to_ptr.vmem [resolvable:$false] %s3524_s22 }
 0x252   : > { %s3526_s26 = scalar_lea.vmem %s3525_s22, 256  ;;  %p3527_p7 = scmp.lt.s32.totalorder %s1057_s28, %s3525_s22 }
 0x253   : > { %p3522_p4 = pnand %p3521_p3, %p6191_p2  ;;  %p3528_p13 = scmp.lt.s32.totalorder %s3526_s26, %s3520_s5 }
 0x255   : > { %p3523_p1 = pneg %p3522_p4  ;;  %p3529_p12 = por %p3528_p13, %p3527_p7 }
 0x257   : > { %p3530_p9 = pnand %p3529_p12, %p3523_p1 }
 0x259   : > { %3533 = shalt.err (!%p3530_p9)
}
 0x25a   : > { %s6192_s25 = scalar_lea.sflag [#allocation15], %s4648_s17  ;;  %s5076_s13 = scalar_lea.hbm %s5055_s20, 256 }
 0x25b   : > { %2732 = dma.hbm_to_vmem [thread:$0]  (%p6191_p2), %s5048_s27, 128, %s1057_s28, %s6192_s25  }
 0x25c   : > { %s1091_s19 = scalar_lea.vmem [#allocation19], %s4652_s14  ;;  %s3563_s8 = scalar_lea.hbm %s5055_s20, 384 }
 0x25d   : > { %s1105_s3 = sshll.u32 %s1091_s19, 4  ;;  %p3536_p0 = scmp.ne.s32.totalorder %s5076_s13, %s3563_s8  ;;  %s1106_s3 = int_to_ptr.vmem [resolvable:$true] %s1105_s3 }
 0x25e   : > { %p6193_p10 = scmp.ne.s32.totalorder %s6142_s12, 0  ;;  %s3539_s5 = scalar_lea.hbm %s6190_s6, 6912 }
 0x25f   : > { %p3540_p11 = scmp.lt.u32.totalorder %s5076_s13, %s6190_s6  ;;  %p3541_p6 = scmp.lt.u32.totalorder %s3539_s5, %s3563_s8 }
 0x260   : > { %p3537_p8 = pnand %p3536_p0, %p6193_p10  ;;  %p3543_p4 = scmp.lt.u32.totalorder %s3563_s8, %s5076_s13 }
 0x261   : > { %p3542_p3 = por %p3541_p6, %p3540_p11 }
 0x262   : > { %p3538_p5 = pneg %p3537_p8 }
 0x263   : > { %p3544_p1 = por %p3543_p4, %p3542_p3 }
 0x265   : > { %p3545_p7 = pnand %p3544_p1, %p3538_p5 }
 0x267   : > { %3548 = shalt.err (!%p3545_p7)
}
 0x268   : > { %s3549_s14 = scalar_lea.vmem %s1106_s3, 128  ;;  %s4093_s27 = smov [#allocation19]  }
 0x269   : > { %p3550_p13 = scmp.ne.s32.totalorder %s1106_s3, %s3549_s14  ;;  %s3553_s28 = sshll.u32 %s4093_s27, 4  ;;  %s3554_s28 = int_to_ptr.vmem [resolvable:$false] %s3553_s28 }
 0x26a   : > { %s3555_s20 = scalar_lea.vmem %s3554_s28, 256  ;;  %p3556_p0 = scmp.lt.s32.totalorder %s1106_s3, %s3554_s28 }
 0x26b   : > { %p3551_p12 = pnand %p3550_p13, %p6193_p10  ;;  %p3557_p8 = scmp.lt.s32.totalorder %s3555_s20, %s3549_s14 }
 0x26d   : > { %p3552_p9 = pneg %p3551_p12  ;;  %p3558_p2 = por %p3557_p8, %p3556_p0 }
 0x26f   : > { %p3559_p6 = pnand %p3558_p2, %p3552_p9 }
 0x271   : > { %3562 = shalt.err (!%p3559_p6)
}
 0x272   : > { %s6194_s26 = scalar_lea.sflag [#allocation18], %s4648_s17  ;;  %s6195_s8 = sld [smem:[#allocation123_spill]] }
 0x273   : > { %2734 = dma.hbm_to_vmem [thread:$0]  (%p6193_p10), %s5076_s13, 128, %s1106_s3, %s6194_s26  }
 0x274   : > { %s1141_s9 = scalar_lea.vmem [#allocation22], %s4683_s1  ;;  %p6197_p5 = scmp.ne.s32.totalorder %s6088_s24, 0 }
 0x275   : > { %s1155_s5 = sshll.u32 %s1141_s9, 4  ;;  %s1156_s5 = int_to_ptr.vmem [resolvable:$true] %s1155_s5 }
 0x278   : > { %s6196_s10 = smov %s6195_s8  ;;  %s2205_s21 = scalar_lea.hbm %s6195_s8, %s4654_s11 }
 0x279   : > { %s2206_s29 = scalar_lea.hbm %s2205_s21, 768  ;;  %s3592_s22 = scalar_lea.hbm %s2205_s21, 896 }
 0x27a   : > { %p3565_p2 = scmp.ne.s32.totalorder %s2206_s29, %s3592_s22  ;;  %s3568_s27 = scalar_lea.hbm %s6196_s10, 6912 }
 0x27b   : > { %p3569_p10 = scmp.lt.u32.totalorder %s2206_s29, %s6196_s10  ;;  %p3570_p4 = scmp.lt.u32.totalorder %s3568_s27, %s3592_s22 }
 0x27c   : > { %p3566_p11 = pnand %p3565_p2, %p6197_p5  ;;  %p3572_p7 = scmp.lt.u32.totalorder %s3592_s22, %s2206_s29 }
 0x27d   : > { %p3571_p1 = por %p3570_p4, %p3569_p10 }
 0x27e   : > { %p3567_p3 = pneg %p3566_p11 }
 0x27f   : > { %p3573_p13 = por %p3572_p7, %p3571_p1 }
 0x281   : > { %p3574_p12 = pnand %p3573_p13, %p3567_p3 }
 0x283   : > { %3577 = shalt.err (!%p3574_p12)
}
 0x284   : > { %s3578_s1 = scalar_lea.vmem %s1156_s5, 128  ;;  %s4094_s13 = smov [#allocation22]  }
 0x285   : > { %p3579_p9 = scmp.ne.s32.totalorder %s1156_s5, %s3578_s1  ;;  %s3582_s3 = sshll.u32 %s4094_s13, 4  ;;  %s3583_s3 = int_to_ptr.vmem [resolvable:$false] %s3582_s3 }
 0x286   : > { %s3584_s26 = scalar_lea.vmem %s3583_s3, 256  ;;  %p3585_p6 = scmp.lt.s32.totalorder %s1156_s5, %s3583_s3 }
 0x287   : > { %p3580_p0 = pnand %p3579_p9, %p6197_p5  ;;  %p3586_p2 = scmp.lt.s32.totalorder %s3584_s26, %s3578_s1 }
 0x289   : > { %p3581_p8 = pneg %p3580_p0  ;;  %p3587_p11 = por %p3586_p2, %p3585_p6 }
 0x28b   : > { %p3588_p4 = pnand %p3587_p11, %p3581_p8 }
 0x28d   : > { %3591 = shalt.err (!%p3588_p4)
}
 0x28e   : > { %s6198_s25 = scalar_lea.sflag [#allocation21], %s4648_s17  ;;  %s6199_s19 = sld [smem:[#allocation109_spill]] }
 0x28f   : > { %s6200_s8 = sld [smem:[#allocation65_spill]]  ;;  %s6201_s22 = sld [smem:[#allocation125_spill]] }
 0x290   : > { %2736 = dma.hbm_to_vmem [thread:$0]  (%p6197_p5), %s2206_s29, 128, %s1156_s5, %s6198_s25  }
 0x294   : > { %s1191_s27 = scalar_lea.vmem [#allocation25], %s6199_s19 }
 0x295   : > { %s6202_s20 = smov %s6201_s22  ;;  %s2221_s12 = scalar_lea.hbm %s6201_s22, %s4654_s11 }
 0x296   : > { %s5121_s14 = scalar_lea.hbm %s2221_s12, 1280  ;;  %s1205_s28 = sshll.u32 %s1191_s27, 4  ;;  %s1206_s28 = int_to_ptr.vmem [resolvable:$true] %s1205_s28 }
 0x297   : > { %s3621_s1 = scalar_lea.hbm %s2221_s12, 1408  ;;  %p6203_p10 = scmp.ne.s32.totalorder %s6200_s8, 0 }
 0x298   : > { %p3594_p3 = scmp.ne.s32.totalorder %s5121_s14, %s3621_s1  ;;  %s3597_s5 = scalar_lea.hbm %s6202_s20, 6912 }
 0x299   : > { %p3598_p5 = scmp.lt.u32.totalorder %s5121_s14, %s6202_s20  ;;  %p3599_p13 = scmp.lt.u32.totalorder %s3597_s5, %s3621_s1 }
 0x29a   : > { %p3595_p1 = pnand %p3594_p3, %p6203_p10  ;;  %p3601_p9 = scmp.lt.u32.totalorder %s3621_s1, %s5121_s14 }
 0x29b   : > { %p3600_p12 = por %p3599_p13, %p3598_p5 }
 0x29c   : > { %p3596_p7 = pneg %p3595_p1 }
 0x29d   : > { %p3602_p0 = por %p3601_p9, %p3600_p12 }
 0x29f   : > { %p3603_p8 = pnand %p3602_p0, %p3596_p7 }
 0x2a1   : > { %3606 = shalt.err (!%p3603_p8)
}
 0x2a2   : > { %s3607_s26 = scalar_lea.vmem %s1206_s28, 128  ;;  %s4095_s25 = smov [#allocation25]  }
 0x2a3   : > { %p3608_p6 = scmp.ne.s32.totalorder %s1206_s28, %s3607_s26  ;;  %s3611_s19 = sshll.u32 %s4095_s25, 4  ;;  %s3612_s19 = int_to_ptr.vmem [resolvable:$false] %s3611_s19 }
 0x2a4   : > { %s3613_s21 = scalar_lea.vmem %s3612_s19, 256  ;;  %p3614_p4 = scmp.lt.s32.totalorder %s1206_s28, %s3612_s19 }
 0x2a5   : > { %p3609_p2 = pnand %p3608_p6, %p6203_p10  ;;  %p3615_p3 = scmp.lt.s32.totalorder %s3613_s21, %s3607_s26 }
 0x2a7   : > { %p3610_p11 = pneg %p3609_p2  ;;  %p3616_p1 = por %p3615_p3, %p3614_p4 }
 0x2a9   : > { %p3617_p5 = pnand %p3616_p1, %p3610_p11 }
 0x2ab   : > { %3620 = shalt.err (!%p3617_p5)
}
 0x2ac   : > { %s6204_s9 = scalar_lea.sflag [#allocation24], %s4648_s17  ;;  %s6205_s22 = sld [smem:[#allocation110_spill]] }
 0x2ad   : > { %s6206_s12 = sld [smem:[#allocation54_spill]]  ;;  %s6207_s24 = sld [smem:[#allocation127_spill]] }
 0x2ae   : > { %2738 = dma.hbm_to_vmem [thread:$0]  (%p6203_p10), %s5121_s14, 128, %s1206_s28, %s6204_s9  }
 0x2b2   : > { %s1241_s5 = scalar_lea.vmem [#allocation28], %s6205_s22 }
 0x2b3   : > { %s6208_s2 = smov %s6207_s24  ;;  %s2237_s13 = scalar_lea.hbm %s6207_s24, %s4654_s11 }
 0x2b4   : > { %s1255_s29 = sshll.u32 %s1241_s5, 4  ;;  %s2238_s3 = scalar_lea.hbm %s2237_s13, 1792  ;;  %s1256_s29 = int_to_ptr.vmem [resolvable:$true] %s1255_s29 }
 0x2b5   : > { %s3650_s26 = scalar_lea.hbm %s2237_s13, 1920  ;;  %p6209_p13 = scmp.ne.s32.totalorder %s6206_s12, 0 }
 0x2b6   : > { %p3623_p7 = scmp.ne.s32.totalorder %s2238_s3, %s3650_s26  ;;  %s3626_s19 = scalar_lea.hbm %s6208_s2, 6912 }
 0x2b7   : > { %p3627_p10 = scmp.lt.u32.totalorder %s2238_s3, %s6208_s2  ;;  %p3628_p0 = scmp.lt.u32.totalorder %s3626_s19, %s3650_s26 }
 0x2b8   : > { %p3624_p12 = pnand %p3623_p7, %p6209_p13  ;;  %p3630_p6 = scmp.lt.u32.totalorder %s3650_s26, %s2238_s3 }
 0x2b9   : > { %p3629_p8 = por %p3628_p0, %p3627_p10 }
 0x2ba   : > { %p3625_p9 = pneg %p3624_p12 }
 0x2bb   : > { %p3631_p2 = por %p3630_p6, %p3629_p8 }
 0x2bd   : > { %p3632_p11 = pnand %p3631_p2, %p3625_p9 }
 0x2bf   : > { %3635 = shalt.err (!%p3632_p11)
}
 0x2c0   : > { %s3636_s14 = scalar_lea.vmem %s1256_s29, 128  ;;  %s4096_s28 = smov [#allocation28]  }
 0x2c1   : > { %p3637_p4 = scmp.ne.s32.totalorder %s1256_s29, %s3636_s14  ;;  %s3640_s9 = sshll.u32 %s4096_s28, 4  ;;  %s3641_s9 = int_to_ptr.vmem [resolvable:$false] %s3640_s9 }
 0x2c2   : > { %s3642_s22 = scalar_lea.vmem %s3641_s9, 256  ;;  %p3643_p5 = scmp.lt.s32.totalorder %s1256_s29, %s3641_s9 }
 0x2c3   : > { %p3638_p3 = pnand %p3637_p4, %p6209_p13  ;;  %p3644_p7 = scmp.lt.s32.totalorder %s3642_s22, %s3636_s14 }
 0x2c5   : > { %p3639_p1 = pneg %p3638_p3  ;;  %p3645_p12 = por %p3644_p7, %p3643_p5 }
 0x2c7   : > { %p3646_p0 = pnand %p3645_p12, %p3639_p1 }
 0x2c9   : > { %3649 = shalt.err (!%p3646_p0)
}
 0x2ca   : > { %s6210_s4 = scalar_lea.sflag [#allocation27], %s4648_s17  ;;  %s6211_s24 = sld [smem:[#allocation128_spill]] }
 0x2cb   : > { %2740 = dma.hbm_to_vmem [thread:$0]  (%p6209_p13), %s2238_s3, 128, %s1256_s29, %s6210_s4  }
 0x2cc   : > { %s1266_s5 = scalar_lea.vmem [#allocation29], %s5042_s18  ;;  %s6213_s12 = sand.u32 1, %s6183_s0  }
 0x2cd   : > { %s1280_s26 = sshll.u32 %s1266_s5, 4  ;;  %s1263_s25 = scalar_lea.sflag [#allocation30], %s6213_s12  ;;  %s1281_s26 = int_to_ptr.vmem [resolvable:$true] %s1280_s26 }
 0x2ce   : > { %p6214_p10 = scmp.ne.s32.totalorder %s6130_s30, 0 }
 0x2d0   : > { %s6212_s2 = smov %s6211_s24  ;;  %s2245_s13 = scalar_lea.hbm %s6211_s24, %s4654_s11 }
 0x2d1   : > { %s5166_s8 = scalar_lea.hbm %s2245_s13, 2048  ;;  %s3679_s17 = scalar_lea.hbm %s2245_s13, 2176 }
 0x2d2   : > { %p3652_p9 = scmp.ne.s32.totalorder %s5166_s8, %s3679_s17  ;;  %s3655_s19 = scalar_lea.hbm %s6212_s2, 6912 }
 0x2d3   : > { %p3656_p13 = scmp.lt.u32.totalorder %s5166_s8, %s6212_s2  ;;  %p3657_p2 = scmp.lt.u32.totalorder %s3655_s19, %s3679_s17 }
 0x2d4   : > { %p3653_p8 = pnand %p3652_p9, %p6214_p10  ;;  %p3659_p4 = scmp.lt.u32.totalorder %s3679_s17, %s5166_s8 }
 0x2d5   : > { %p3658_p11 = por %p3657_p2, %p3656_p13 }
 0x2d6   : > { %p3654_p6 = pneg %p3653_p8 }
 0x2d7   : > { %p3660_p3 = por %p3659_p4, %p3658_p11 }
 0x2d9   : > { %p3661_p1 = pnand %p3660_p3, %p3654_p6 }
 0x2db   : > { %3664 = shalt.err (!%p3661_p1)
}
 0x2dc   : > { %s3665_s0 = scalar_lea.vmem %s1281_s26, 128  ;;  %s4097_s21 = smov [#allocation29]  }
 0x2dd   : > { %p3666_p5 = scmp.ne.s32.totalorder %s1281_s26, %s3665_s0  ;;  %s3669_s14 = sshll.u32 %s4097_s21, 4  ;;  %s3670_s14 = int_to_ptr.vmem [resolvable:$false] %s3669_s14 }
 0x2de   : > { %s3671_s28 = scalar_lea.vmem %s3670_s14, 256  ;;  %p3672_p0 = scmp.lt.s32.totalorder %s1281_s26, %s3670_s14 }
 0x2df   : > { %p3667_p7 = pnand %p3666_p5, %p6214_p10  ;;  %p3673_p9 = scmp.lt.s32.totalorder %s3671_s28, %s3665_s0 }
 0x2e1   : > { %p3668_p12 = pneg %p3667_p7  ;;  %p3674_p8 = por %p3673_p9, %p3672_p0 }
 0x2e3   : > { %p3675_p2 = pnand %p3674_p8, %p3668_p12 }
 0x2e5   : > { %3678 = shalt.err (!%p3675_p2)
}
 0x2e6   : > { %2741 = dma.hbm_to_vmem [thread:$0]  (%p6214_p10), %s5166_s8, 128, %s1281_s26, %s1263_s25  }
 0x2e7 PF: > { %s6215_s9 = sld [smem:[#allocation80_spill]] }
 0x2ed   : > { %p2668_p6 = scmp.ge.s32.totalorder %s6215_s9, 1  ;;  %p1300_p13 = scmp.lt.s32.totalorder %s6215_s9, 9 }
 0x2ef   : > { %p1301_p11 = pnand %p2668_p6, %p1300_p13 }
 0x2f0   : > { %s6216_s22 = sld [smem:[#allocation73_spill]] (!%p1301_p11) }
 0x2f1   : > { %1304 = sbr.rel (%p1301_p11) target bundleno = 1165 (0x48d), region = 96  ;;  %s6217_s4 = sld [smem:[#allocation87_spill]] (!%p1301_p11) }
 0x2f6   : > { %s1306_s27 = sand.u32 (!%p1301_p11), 1, %s6216_s22  }
 0x2f7   : > { %s5189_s1 = sshll.u32 (!%p1301_p11), %s1306_s27, 3  ;;  %s1307_s24 = scalar_lea.sflag (!%p1301_p11), [#allocation3], %s1306_s27 }
 0x2f8   : > { %p6218_p4 = scmp.ne.s32.totalorder %s6217_s4, 0 }
 0x2fa   : > { %3857 = dma.done.wait (%p6218_p4), %s1307_s24, 128  }
 0x2fb   : > { %3859 = vsyncadd (%p6218_p4), %s1307_s24, 4294967168  ;;  %s6219_s30 = sld [smem:[#allocation81_spill]]  ;;  %s6221_s26 = sld [smem:[#allocation89_spill]] }
 0x2fc   : > { %s6220_s5 = sld [smem:[#allocation62_spill]] }
 0x301   : > { %s5197_s8 = sand.u32 1, %s6219_s30   ;;  %p6222_p10 = scmp.ne.s32.totalorder %s6221_s26, 0 }
 0x302   : > { %s1317_s12 = sand.u32 1, %s6220_s5   ;;  %s1316_s17 = scalar_lea.sflag [#allocation6], %s5197_s8 }
 0x303   : > { %s5200_s25 = sshll.u32 %s1317_s12, 3 }
 0x304   : > { %3861 = dma.done.wait (%p6222_p10), %s1316_s17, 128  }
 0x305   : > { %3863 = vsyncadd (%p6222_p10), %s1316_s17, 4294967168  ;;  %s6223_s3 = sld [smem:[#allocation72_spill]]  ;;  %s6224_s19 = sld [smem:[#allocation92_spill]] }
 0x30b   : > { %s1326_s11 = sand.u32 1, %s6223_s3   ;;  %p6225_p3 = scmp.ne.s32.totalorder %s6224_s19, 0 }
 0x30c   : > { %s5209_s18 = sshll.u32 %s1326_s11, 3 }
 0x30d   : > { %3865 = dma.done.wait (%p6225_p3), %s1316_s17, 128  }
 0x30e   : > { %3867 = vsyncadd (%p6225_p3), %s1316_s17, 4294967168  ;;  %s6226_s21 = sld [smem:[#allocation70_spill]]  ;;  %s6227_s14 = sld [smem:[#allocation94_spill]] }
 0x30f   : > { %s1334_s22 = scalar_lea.sflag [#allocation9], %s5197_s8 }
 0x314   : > { %s1335_s28 = sand.u32 1, %s6226_s21   ;;  %p6228_p1 = scmp.ne.s32.totalorder %s6227_s14, 0 }
 0x315   : > { %s5217_s9 = sshll.u32 %s1335_s28, 3 }
 0x316   : > { %3869 = dma.done.wait (%p6228_p1), %s1334_s22, 128  }
 0x317   : > { %3871 = vsyncadd (%p6228_p1), %s1334_s22, 4294967168  ;;  %s6229_s24 = sld [smem:[#allocation60_spill]]  ;;  %s6230_s30 = sld [smem:[#allocation96_spill]] }
 0x31d   : > { %s1344_s5 = sand.u32 1, %s6229_s24   ;;  %p6231_p5 = scmp.ne.s32.totalorder %s6230_s30, 0 }
 0x31e   : > { %s5226_s12 = sshll.u32 %s1344_s5, 3 }
 0x31f   : > { %3873 = dma.done.wait (%p6231_p5), %s1334_s22, 128  }
 0x320   : > { %3875 = vsyncadd (%p6231_p5), %s1334_s22, 4294967168  ;;  %s6232_s3 = sld [smem:[#allocation68_spill]]  ;;  %s6233_s11 = sld [smem:[#allocation98_spill]] }
 0x321   : > { %s1352_s13 = scalar_lea.sflag [#allocation12], %s5197_s8 }
 0x326   : > { %s1353_s21 = sand.u32 1, %s6232_s3   ;;  %p6234_p7 = scmp.ne.s32.totalorder %s6233_s11, 0 }
 0x327   : > { %s5234_s28 = sshll.u32 %s1353_s21, 3 }
 0x328   : > { %3877 = dma.done.wait (%p6234_p7), %s1352_s13, 128  }
 0x329   : > { %3879 = vsyncadd (%p6234_p7), %s1352_s13, 4294967168  ;;  %s6235_s24 = sld [smem:[#allocation66_spill]]  ;;  %s6236_s5 = sld [smem:[#allocation100_spill]] }
 0x32f   : > { %s1362_s29 = sand.u32 1, %s6235_s24   ;;  %p6237_p12 = scmp.ne.s32.totalorder %s6236_s5, 0 }
 0x330   : > { %s5243_s17 = sshll.u32 %s1362_s29, 3 }
 0x331   : > { %3881 = dma.done.wait (%p6237_p12), %s1352_s13, 128  }
 0x332   : > { %3883 = vsyncadd (%p6237_p12), %s1352_s13, 4294967168  ;;  %s6238_s3 = sld [smem:[#allocation58_spill]]  ;;  %s6239_s21 = sld [smem:[#allocation102_spill]] }
 0x333   : > { %s1370_s2 = scalar_lea.sflag [#allocation15], %s5197_s8 }
 0x338   : > { %s1371_s0 = sand.u32 1, %s6238_s3   ;;  %p6240_p0 = scmp.ne.s32.totalorder %s6239_s21, 0 }
 0x339   : > { %s5251_s27 = sshll.u32 %s1371_s0, 3 }
 0x33a   : > { %3885 = dma.done.wait (%p6240_p0), %s1370_s2, 128  }
 0x33b   : > { %3887 = vsyncadd (%p6240_p0), %s1370_s2, 4294967168  ;;  %s6241_s29 = sld [smem:[#allocation55_spill]]  ;;  %s6242_s24 = sld [smem:[#allocation104_spill]] }
 0x341   : > { %s1380_s22 = sand.u32 1, %s6241_s29   ;;  %p6243_p9 = scmp.ne.s32.totalorder %s6242_s24, 0 }
 0x342   : > { %s5262_s13 = sshll.u32 %s1380_s22, 3 }
 0x343   : > { %3889 = dma.done.wait (%p6243_p9), %s1370_s2, 128  }
 0x344   : > { %3891 = vsyncadd (%p6243_p9), %s1370_s2, 4294967168  ;;  %s1388_s0 = scalar_lea.sflag [#allocation18], %s5197_s8 }
 0x345   : > { %3893 = dma.done.wait (%p6218_p4), %s1388_s0, 128  }
 0x346   : > { %3895 = vsyncadd (%p6218_p4), %s1388_s0, 4294967168 }
 0x347   : > { %3897 = dma.done.wait (%p6222_p10), %s1388_s0, 128  }
 0x348   : > { %3899 = vsyncadd (%p6222_p10), %s1388_s0, 4294967168  ;;  %s1406_s2 = scalar_lea.sflag [#allocation21], %s5197_s8 }
 0x349   : > { %3901 = dma.done.wait (%p6225_p3), %s1406_s2, 128  }
 0x34a   : > { %3903 = vsyncadd (%p6225_p3), %s1406_s2, 4294967168  ;;  %s1418_s4 = scalar_lea.vmem [#allocation22], %s5217_s9 }
 0x34b   : > { %3905 = dma.done.wait (%p6228_p1), %s1406_s2, 128  }
 0x34c   : > { %3907 = vsyncadd (%p6228_p1), %s1406_s2, 4294967168  ;;  %s1424_s26 = scalar_lea.sflag [#allocation24], %s5197_s8  ;;  %s1427_s0 = scalar_lea.vmem [#allocation23], %s5226_s12 }
 0x34d   : > { %3909 = dma.done.wait (%p6231_p5), %s1424_s26, 128  }
 0x34e   : > { %3911 = vsyncadd (%p6231_p5), %s1424_s26, 4294967168 }
 0x34f   : > { %3913 = dma.done.wait (%p6234_p7), %s1424_s26, 128  }
 0x350   : > { %3915 = vsyncadd (%p6234_p7), %s1424_s26, 4294967168  ;;  %s1442_s14 = scalar_lea.sflag [#allocation27], %s5197_s8 }
 0x351   : > { %3917 = dma.done.wait (%p6237_p12), %s1442_s14, 128  }
 0x352   : > { %3919 = vsyncadd (%p6237_p12), %s1442_s14, 4294967168 }
 0x353   : > { %3921 = dma.done.wait (%p6240_p0), %s1442_s14, 128  }
 0x354   : > { %3923 = vsyncadd (%p6240_p0), %s1442_s14, 4294967168  ;;  %s1460_s11 = scalar_lea.sflag [#allocation30], %s1380_s22 }
 0x355   : > { %3925 = dma.done.wait (%p6243_p9), %s1460_s11, 128  }
 0x356   : > { %3927 = vsyncadd (%p6243_p9), %s1460_s11, 4294967168  ;;  %s6244_s5 = sld [smem:[#allocation52_spill]]  ;;  %s6245_s26 = sld [smem:[#allocation76_spill]] }
 0x357   : > { %s6246_s30 = sld [smem:[#allocation75_spill]]  ;;  %s6247_s19 = sld [smem:[#allocation74_spill]] }
 0x358   : > { %s6248_s10 = sld [smem:[#allocation129_spill]] }
 0x35c   : > { %s1608_s2 = sand.u32 1, %s6244_s5   ;;  %s2687_s21 = sshll.u32 %s6245_s26, 1 }
 0x35d   : > { %s2712_s14 = smul.u32 40, %s1608_s2  ;;  %s5325_s29 = sadd.s32 %s6246_s30, %s2687_s21 }
 0x35e   : > { %p1701_p8 = scmp.lt.s32.totalorder %s5325_s29, 2  ;;  %p1711_p2 = scmp.eq.s32.totalorder %s6246_s30, 0 }
 0x35f   : > { %p1712_p6 = scmp.eq.s32.totalorder %s6247_s19, 0  ;;  %s5339_s5 = scalar_lea.vmem [#allocation31], %s2712_s14 }
 0x360   : > { %s5331_s22 = scalar_select %p1701_p8, %s5325_s29, 2 }
 0x361   : > { %p1713_p13 = pnand %p1712_p6, %p1711_p2 }
 0x362   : > { %s1704_s24 = scalar_select %p1701_p8, %s5331_s22, 2 }
 0x363   : > { %1716 = sbr.rel (%p1713_p13) target bundleno = 874 (0x36a), region = 172  ;;  %v4098_v0 = vmov (!%p1713_p13), 0.0  }
 0x364   : > { %s2691_s11 = sshll.u32 %s1704_s24, 3  ;;  %1717 = vst [vmem:[%s5339_s5] sm:$0xff] (!%p1713_p13), %v4098_v0  ;;  %1718 = vst [vmem:[%s5339_s5 + $0x8] sm:$0xff] (!%p1713_p13), %v4098_v0 }
 0x365   : > { %s5337_s6 = scalar_lea.vmem %s6248_s10, %s2691_s11  ;;  %1719 = vst [vmem:[%s5339_s5 + $0x10] sm:$0xff] (!%p1713_p13), %v4098_v0  ;;  %1720 = vst [vmem:[%s5339_s5 + $0x18] sm:$0xff] (!%p1713_p13), %v4098_v0 }
 0x366   : > { %1721 = vst [vmem:[%s5339_s5 + $0x20] sm:$0xff] (!%p1713_p13), %v4098_v0 }
 0x36a PF: > { %v5348_v1 = vld [vmem:[%s1418_s4] sm:$0xff]  ;;  %s6249_s10 = scalar_lea.vmem [#allocation8], %s5217_s9  ;;  %s6250_s3 = scalar_lea.vmem [#allocation10], %s5226_s12  ;;  %v1880_v5 = vld [vmem:[%s1427_s0] sm:$0xff]  ;;  %v4099_v10 = vmov 0   ;;  %v1728_v34 = vlaneseq  ;;  %vm4100_vm11 = vmmov 1  }
 0x36b   : > { %v1877_v2 = vld [vmem:[%s6249_s10] sm:$0xff]  ;;  %v1878_v3 = vld [vmem:[%s6250_s3] sm:$0xff]  ;;  %s6251_s19 = scalar_lea.vmem [#allocation13], %s5243_s17  ;;  %s6252_s30 = scalar_lea.vmem [#allocation19], %s5200_s25  ;;  %3118 = vset.pattern.permute.xlu1 %v4099_v10  ;;  %3119 = vset.pattern.permute.xlu0 %v4099_v10  ;;  %vm1874_vm8 = vcmp.ne.f32.partialorder %v5348_v1, %v5348_v1 }
 0x36c   : > { %v1879_v4 = vld [vmem:[%s6251_s19] sm:$0xff]  ;;  %v1882_v6 = vsub.f32 %v1877_v2, %v5348_v1  ;;  %v1884_v7 = vsub.f32 %v1878_v3, %v1880_v5  ;;  %s6253_s9 = scalar_lea.vmem [#allocation5], %s5200_s25  ;;  %s6254_s4 = scalar_lea.vmem [#allocation7], %s5209_s18  ;;  %v1729_v44 = vshrl.u32 %v1728_v34, 7  ;;  %vm5412_vm12 = vmxor %vm1874_vm8, %vm4100_vm11 }
 0x36d   : > { %v1894_v8 = vmul.f32 0.33333334, %v1879_v4  ;;  %v5361_v9 = vld [vmem:[%s6252_s30] sm:$0xff]  ;;  %v1814_v12 = vld [vmem:[%s6253_s9] sm:$0xff]  ;;  %s6255_s8 = scalar_lea.vmem [#allocation11], %s5234_s28  ;;  %s6256_s12 = scalar_lea.vmem [#allocation20], %s5209_s18 }
 0x36e   : > { %v1883_v11 = vmul.f32 %v1882_v6, %v1882_v6  ;;  %v1815_v13 = vld [vmem:[%s6254_s4] sm:$0xff]  ;;  %v1816_v14 = vld [vmem:[%s6255_s8] sm:$0xff]  ;;  %v1885_v15 = vmul.f32 %v1884_v7, %v1884_v7  ;;  %v1819_v17 = vsub.f32 %v1814_v12, %v5361_v9  ;;  %s6257_s0 = scalar_lea.vmem [#allocation17], %s5189_s1  ;;  %s6258_s25 = scalar_lea.vmem [#allocation2], %s5189_s1  ;;  %vm1811_vm13 = vcmp.ne.f32.partialorder %v5361_v9, %v5361_v9  ;;  %v2702_v6 = vld [vmem:[%s5339_s5 + $0x18] sm:$0xff] }
 0x36f   : > { %3120 = vtanh.f32 %v1894_v8  ;;  %v1817_v16 = vld [vmem:[%s6256_s12] sm:$0xff]  ;;  %v1832_v19 = vmul.f32 0.33333334, %v1816_v14  ;;  %v1739_v22 = vld [vmem:[%s6258_s25] sm:$0xff]  ;;  %s6259_s18 = scalar_lea.vmem [#allocation14], %s5251_s27  ;;  %s6260_s26 = scalar_lea.vmem [#allocation16], %s5262_s13  ;;  %vm5430_vm15 = vmxor %vm1811_vm13, %vm4100_vm11 }
 0x370   : > { %v1821_v18 = vsub.f32 %v1815_v13, %v1817_v16  ;;  %v5374_v20 = vld [vmem:[%s6257_s0] sm:$0xff]  ;;  %v1886_v21 = vadd.f32 %v1885_v15, %v1883_v11  ;;  %v1820_v23 = vmul.f32 %v1819_v17, %v1819_v17  ;;  %vm1748_vm2 = vcmp.lt.f32.partialorder %v1739_v22, -15.0  ;;  %v5389_v28 = vld [vmem:[%s6260_s26] sm:$0xff]  ;;  %p1724_p11 = scmp.lt.s32.totalorder %s5325_s29, 3  ;;  %s2693_s1 = sshll.u32 %s5331_s22, 3 }
 0x371   : > { %vm1745_vm0 = vcmp.gt.f32.partialorder %v5374_v20, 0.0  ;;  %3122 = vtanh.f32 %v1832_v19  ;;  %v5384_v26 = vld [vmem:[%s6259_s18] sm:$0xff]  ;;  %v1992_v31 = vand.u32 2147483647, %v5389_v28  ;;  %v1730_v49 = vstv %s2693_s1  ;;  %s6261_s14 = scalar_lea.vmem [#allocation26], %s5243_s17  ;;  %s6262_s29 = scalar_lea.vmem [#allocation25], %s5234_s28 }
 0x372   : > { %v1822_v24 = vmul.f32 %v1821_v18, %v1821_v18  ;;  %v5380_v25 = vsel %vm1745_vm0, 1.0, %v5374_v20  ;;  %3124 = vrsqrt.f32 %v1886_v21  ;;  %v1941_v29 = vand.u32 2147483647, %v5384_v26  ;;  %s1733_s21 = scalar_select %p1724_p11, 1, 0  ;;  %v1881_v59 = vld [vmem:[%s6261_s14] sm:$0xff] }
 0x373   : > { %vm1747_vm1 = vcmp.eq.f32.partialorder %v5380_v25, 0.0  ;;  %v1993_v38 = vsub.f32 0.0, %v1992_v31  ;;  %vm1889_vm4 = vcmp.eq.f32.partialorder %v1886_v21, inf  ;;  %vm1891_vm5 = vcmp.eq.f32.partialorder %v1886_v21, 0.0  ;;  %v1818_v2 = vld [vmem:[%s6262_s29] sm:$0xff]  ;;  %s6263_s22 = scalar_lea.vmem [#allocation28], %s5251_s27 }
 0x374   : > { %v1823_v27 = vadd.f32 %v1822_v24, %v1820_v23  ;;  %vm1749_vm3 = vmand %vm1747_vm1, %vm1748_vm2  ;;  %v1942_v30 = vsub.f32 0.0, %v1941_v29  ;;  %v1892_v52 = vand.u32 2147483648, %v1886_v21  ;;  %v1731_v56 = vadd.s32 %v1730_v49, %v1729_v44  ;;  %v1935_v4 = vld [vmem:[%s6263_s22] sm:$0xff]  ;;  %s6268_s27 = scalar_lea.vmem [#allocation29], %s5262_s13  ;;  %s6281_s0 = sld [smem:[#allocation76_spill]] }
 0x375   : > { %v5393_v32 = vsel %vm1749_vm3, -15.0, %v1739_v22  ;;  %v1994_v42 = vmul.f32 1.442695, %v1993_v38  ;;  %v1734_v57 = vstv %s1733_s21  ;;  %v1951_v13 = vadd.f32 0.1, %v1935_v4  ;;  %v1986_v14 = vld [vmem:[%s6268_s27] sm:$0xff] }
 0x376   : > { %3126 = vrsqrt.f32 %v1823_v27  ;;  %v1751_v35 = vand.u32 2147483647, %v5393_v32  ;;  %v1943_v36 = vmul.f32 1.442695, %v1942_v30  ;;  %vm1826_vm6 = vcmp.eq.f32.partialorder %v1823_v27, inf  ;;  %s6283_s26 = sld [smem:[#allocation107_spill]] }
 0x377   : > { %v1829_v58 = vand.u32 2147483648, %v1823_v27  ;;  %vm1828_vm7 = vcmp.eq.f32.partialorder %v1823_v27, 0.0  ;;  %vm1732_vm9 = vcmp.lt.s32.totalorder %v1731_v56, 24  ;;  %vm1735_vm10 = vcmp.eq.s32.totalorder %v1734_v57, 1  ;;  %s2051_s21 = sshll.u32 %s5339_s5, 4  ;;  %v2705_v38 = vld [vmem:[%s5339_s5 + $0x20] sm:$0xff]  ;;  %s5619_s21 = int_to_ptr.vmem [resolvable:$true] %s2051_s21 }
 0x378   : > { %v1752_v39 = vsub.f32 0.0, %v1751_v35  ;;  %3128 = vpow2.f32 %v1943_v36  ;;  %vm5420_vm14 = vmand %vm1732_vm9, %vm1735_vm10  ;;  %v2002_v18 = vadd.f32 0.1, %v1986_v14  ;;  %v1756_v23 = vmax.f32 %v5393_v32, 0.0  ;;  %s6284_s22 = sld [smem:[#allocation130_spill]] }
 0x379   : > { %v3121_v33 = vpop.eup %3120  ;;  %3130 = vpow2.f32 %v1994_v42  ;;  %vm1876_vm0 = vmand %vm5412_vm12, %vm5420_vm14  ;;  %v1757_v24 = vmul.f32 %v5393_v32, %v5380_v25  ;;  %vm1740_vm2 = vcmp.ne.f32.partialorder %v5374_v20, %v5374_v20  ;;  %vm1936_vm3 = vcmp.ne.f32.partialorder %v1935_v4, %v1935_v4 }
 0x37a   : > { %v5396_v37 = vmul.f32 3.0, %v3121_v33  ;;  %v1753_v46 = vmul.f32 1.442695, %v1752_v39  ;;  %vm1813_vm1 = vmand %vm5430_vm15, %vm5420_vm14  ;;  %v1991_v33 = vmax.f32 %v5389_v28, 0.0  ;;  %s2723_s1 = smul.u32 640, %s6281_s0 }
 0x37b   : > { %v3123_v40 = vpop.eup %3122  ;;  %v1758_v35 = vsub.f32 %v1756_v23, %v1757_v24 }
 0x37c   : > { %v1898_v41 = vsub.f32 0.0, %v5396_v37  ;;  %v3125_v43 = vpop.eup %3124  ;;  %v1834_v45 = vmul.f32 3.0, %v3123_v40  ;;  %3132 = vpow2.f32 %v1753_v46  ;;  %p6286_p12 = scmp.ne.s32.totalorder %s6283_s26, 0 }
 0x37d   : > { %v1888_v47 = vmul.f32 %v3125_v43, %v1886_v21 }
 0x37e   : > { %v1899_v48 = vmul.f32 1.442695, %v1898_v41  ;;  %v1836_v50 = vsub.f32 0.0, %v1834_v45  ;;  %s5617_s27 = scalar_lea.hbm %s6284_s22, %s2723_s1 }
 0x37f   : > { %v1890_v53 = vsel %vm1889_vm4, %v1886_v21, %v1888_v47  ;;  %vm5468_vm4 = vmxor %vm1740_vm2, %vm4100_vm11 }
 0x380   : > { %v3127_v51 = vpop.eup %3126  ;;  %3134 = vpow2.f32 %v1899_v48  ;;  %v1837_v55 = vmul.f32 1.442695, %v1836_v50  ;;  %v1893_v60 = vsel %vm1891_vm5, %v1892_v52, %v1890_v53  ;;  %vm5473_vm5 = vmxor %vm1936_vm3, %vm4100_vm11  ;;  %v1737_v53 = vld [vmem:[%s5337_s6] sm:$0xff] }
 0x381   : > { %v1825_v54 = vmul.f32 %v3127_v51, %v1823_v27  ;;  %v1897_v0 = vadd.f32 %v1893_v60, %v1881_v59  ;;  %vm1938_vm8 = vmand %vm5473_vm5, %vm5420_vm14 }
 0x382   : > { %3136 = vpow2.f32 %v1837_v55  ;;  %v3129_v62 = vpop.eup %3128 }
 0x383   : > { %v1827_v61 = vsel %vm1826_vm6, %v1823_v27, %v1825_v54  ;;  %v1945_v63 = vadd.f32 1.0, %v3129_v62  ;;  %v3131_v5 = vpop.eup %3130  ;;  %v1940_v27 = vmax.f32 %v5384_v26, 0.0  ;;  %vm1987_vm6 = vcmp.ne.f32.partialorder %v1986_v14, %v1986_v14  ;;  %v2699_v26 = vld [vmem:[%s5339_s5 + $0x10] sm:$0xff] }
 0x384   : > { %v1830_v3 = vsel %vm1828_vm7, %v1829_v58, %v1827_v61  ;;  %v1996_v8 = vadd.f32 1.0, %v3131_v5  ;;  %vm1744_vm7 = vmand %vm5468_vm4, %vm5420_vm14 }
 0x385   : > { %3138 = vlog2.f32 %v1945_v63  ;;  %v1835_v11 = vadd.f32 %v1830_v3, %v1818_v2  ;;  %vm5486_vm9 = vmxor %vm1987_vm6, %vm4100_vm11  ;;  %vm1788_vm11 = vcmp.ge.f32.partialorder %v5393_v32, 0.0 }
 0x386   : > { %v5418_v1 = vpop.eup %3132  ;;  %3140 = vlog2.f32 %v1996_v8  ;;  %vm1989_vm10 = vmand %vm5486_vm9, %vm5420_vm14 }
 0x387   : > { %v5425_v12 = vadd.f32 1.0, %v5418_v1 }
 0x389   : > { %3142 = vlog2.f32 %v5425_v12 }
 0x38a   : > { %v3135_v10 = vpop.eup %3134  ;;  %3144 = vrcp.f32 %v1951_v13 }
 0x38b   : > { %v1901_v15 = vmul.f32 %v3135_v10, %v1897_v0  ;;  %3146 = vrcp.f32 %v2002_v18 }
 0x38c   : > { %v3137_v16 = vpop.eup %3136  ;;  %3148 = vrcp.f32 %v5425_v12 }
 0x38d   : > { %v1902_v17 = vadd.f32 %v1901_v15, %v5396_v37  ;;  %v1839_v19 = vmul.f32 %v3137_v16, %v1835_v11 }
 0x38f   : > { %v5445_v21 = vsel %vm1876_vm0, %v1902_v17, 0.0  ;;  %v1840_v22 = vadd.f32 %v1839_v19, %v1834_v45  ;;  %v3139_v29 = vpop.eup %3138 }
 0x390   : > { %1904 = vmax.xlane.f32.xlu1 %v5445_v21  ;;  %v1947_v31 = vmul.f32 0.6931472, %v3139_v29  ;;  %v3141_v34 = vpop.eup %3140 }
 0x391   : > { %v5461_v30 = vsel %vm1813_vm1, %v1840_v22, 0.0  ;;  %v1998_v20 = vmul.f32 0.6931472, %v3141_v34 }
 0x392   : > { %1842 = vmax.xlane.f32.xlu0 %v5461_v30  ;;  %v1948_v36 = vadd.f32 %v1947_v31, %v1940_v27  ;;  %vm1855_vm2 = vcmp.gt.f32.partialorder %v5461_v30, 5.0 }
 0x393   : > { %v3143_v37 = vpop.eup %3142  ;;  %v1999_v28 = vadd.f32 %v1998_v20, %v1991_v33  ;;  %v2695_v20 = vadd.f32 -5.0, %v5461_v30 }
 0x394   : > { %v1760_v39 = vmul.f32 0.6931472, %v3143_v37  ;;  %v1949_v40 = vsub.f32 %v1948_v36, %v1935_v4  ;;  %v3145_v41 = vpop.eup %3144 }
 0x395   : > { %v2000_v45 = vsub.f32 %v1999_v28, %v1986_v14  ;;  %v3147_v46 = vpop.eup %3146 }
 0x396   : > { %v1761_v42 = vadd.f32 %v1760_v39, %v1758_v35  ;;  %v1950_v43 = vand.u32 2147483647, %v1949_v40  ;;  %v2698_v40 = vadd.f32 -5.0, %v5445_v21 }
 0x397   : > { %v2001_v49 = vand.u32 2147483647, %v2000_v45 }
 0x398   : > { %v5495_v47 = vsel %vm1744_vm7, %v1761_v42, 0.0  ;;  %v1953_v48 = vmul.f32 %v3145_v41, %v1950_v43  ;;  %v1857_v41 = vadd.f32 1.0, %v2695_v20  ;;  %v1919_v42 = vadd.f32 1.0, %v2698_v40  ;;  %v3149_v43 = vpop.eup %3148  ;;  %v1800_v20 = vld [vmem:[%s5339_s5] sm:$0xff] }
 0x399   : > { %1763 = vmax.xlane.f32.xlu0 %v5495_v47  ;;  %v2004_v51 = vmul.f32 %v3147_v46, %v2001_v49  ;;  %v2694_v37 = vadd.f32 -5.0, %v5495_v47  ;;  %v1789_v46 = vsel %vm1788_vm11, 1.0, %v5418_v1  ;;  %vm1776_vm13 = vcmp.gt.f32.partialorder %v5495_v47, 5.0 }
 0x39a   : > { %v5503_v50 = vsel %vm1938_vm8, %v1953_v48, 0.0  ;;  %v1791_v12 = vmul.f32 %v3149_v43, %v1789_v46  ;;  %vm1917_vm11 = vcmp.gt.f32.partialorder %v5445_v21, 5.0 }
 0x39b   : > { %1955 = vmax.xlane.f32.xlu1 %v5503_v50  ;;  %v5515_v52 = vsel %vm1989_vm10, %v2004_v51, 0.0  ;;  %v1778_v39 = vadd.f32 1.0, %v2694_v37  ;;  %v2701_v28 = vadd.f32 -5.0, %v5503_v50 }
 0x39c   : > { %v2704_v48 = vadd.f32 -5.0, %v5515_v52  ;;  %v1792_v32 = vmul.f32 %v1791_v12, %v5380_v25 }
 0x39d   : > { %2006 = vmax.xlane.f32.xlu0 %v5515_v52  ;;  %3150 = vlog2.f32 %v1778_v39  ;;  %v1970_v45 = vadd.f32 1.0, %v2701_v28 }
 0x39e   : > { %3152 = vlog2.f32 %v1857_v41  ;;  %v2021_v51 = vadd.f32 1.0, %v2704_v48 }
 0x39f   : > { %3154 = vlog2.f32 %v1919_v42 }
 0x3a0   : > { %3156 = vlog2.f32 %v1970_v45 }
 0x3a1   : > { %3158 = vlog2.f32 %v2021_v51 }
 0x3a7   : > { %v3151_v49 = vpop.eup %3150 }
 0x3ac   : > { %1804 = vperm.xlu1 %3118, %v1737_v53   ;;  %v1793_v53 = vsub.f32 1.0, %v1791_v12 }
 0x41d   : > { %v1905_v54 = vpop.xlane.xlu1 %1904 }
 0x41e   : > { %v1906_v57 = vrot.slane %v1905_v54, 4 }
 0x41f   : > { %v1843_v55 = vpop.xlane.xlu0 %1842 }
 0x420   : > { %v1844_v56 = vrot.slane %v1843_v55, 4  ;;  %v1907_v59 = vmax.f32 %v1905_v54, %v1906_v57  ;;  %v1794_v54 = vsub.f32 1.0, %v5380_v25 }
 0x422   : > { %v1845_v58 = vmax.f32 %v1843_v55, %v1844_v56  ;;  %v1908_v62 = vrot.slane %v1907_v59, 2  ;;  %v3153_v55 = vpop.eup %3152  ;;  %v1780_v56 = vmul.f32 0.6931472, %v3151_v49  ;;  %v1795_v57 = vmul.f32 %v1794_v54, %v1793_v53 }
 0x424   : > { %v1846_v60 = vrot.slane %v1845_v58, 2  ;;  %v1909_v11 = vmax.f32 %v1907_v59, %v1908_v62  ;;  %v3155_v59 = vpop.eup %3154  ;;  %v1781_v1 = vadd.f32 5.0, %v1780_v56 }
 0x426   : > { %v1764_v61 = vpop.xlane.xlu0 %1763  ;;  %v1847_v4 = vmax.f32 %v1845_v58, %v1846_v60  ;;  %v1910_v19 = vrot.slane %v1909_v11, 1  ;;  %v1859_v58 = vmul.f32 0.6931472, %v3153_v55  ;;  %v3157_v60 = vpop.eup %3156 }
 0x427   : > { %v1765_v63 = vrot.slane %v1764_v61, 4  ;;  %v1972_v25 = vmul.f32 0.6931472, %v3157_v60 }
 0x428   : > { %v1956_v0 = vpop.xlane.xlu1 %1955  ;;  %v1848_v17 = vrot.slane %v1847_v4, 1  ;;  %v1911_v33 = vmax.f32 %v1909_v11, %v1910_v19  ;;  %v1860_v62 = vadd.f32 5.0, %v1859_v58 }
 0x429   : > { %v1766_v2 = vmax.f32 %v1764_v61, %v1765_v63  ;;  %v1957_v3 = vrot.slane %v1956_v0, 4  ;;  %v1796_v61 = vadd.f32 %v1795_v57, %v1792_v32  ;;  %v1921_v63 = vmul.f32 0.6931472, %v3155_v59 }
 0x42a   : > { %v2007_v10 = vpop.xlane.xlu0 %2006  ;;  %v1849_v31 = vmax.f32 %v1847_v4, %v1848_v17  ;;  %v1861_v11 = vsel %vm1855_vm2, %v1860_v62, %v5461_v30  ;;  %vm1968_vm2 = vcmp.gt.f32.partialorder %v5503_v50, 5.0 }
 0x42b   : > { %v1767_v5 = vrot.slane %v1766_v2, 2  ;;  %v1958_v8 = vmax.f32 %v1956_v0, %v1957_v3  ;;  %v2008_v13 = vrot.slane %v2007_v10, 4  ;;  %v1782_v0 = vsel %vm1776_vm13, %v1781_v1, %v5495_v47 }
 0x42c   : > { %v1797_v4 = vsub.f32 1.0, %v1796_v61 }
 0x42d   : > { %v1959_v14 = vrot.slane %v1958_v8, 2  ;;  %v1768_v15 = vmax.f32 %v1766_v2, %v1767_v5  ;;  %v2009_v16 = vmax.f32 %v2007_v10, %v2008_v13  ;;  %v3159_v5 = vpop.eup %3158  ;;  %v1922_v13 = vadd.f32 5.0, %v1921_v63 }
 0x42f   : > { %v1769_v18 = vrot.slane %v1768_v15, 1  ;;  %v1960_v22 = vmax.f32 %v1958_v8, %v1959_v14  ;;  %v2010_v23 = vrot.slane %v2009_v16, 2 }
 0x431   : > { %v1770_v24 = vmax.f32 %v1768_v15, %v1769_v18  ;;  %v1961_v27 = vrot.slane %v1960_v22, 1  ;;  %v2011_v29 = vmax.f32 %v2009_v16, %v2010_v23  ;;  %v1973_v15 = vadd.f32 5.0, %v1972_v25  ;;  %v1805_v23 = vpop.permute.xlu1 %1804 }
 0x433   : > { %2713 = vpush %v1770_v24  ;;  %v1962_v34 = vmax.f32 %v1960_v22, %v1961_v27  ;;  %v2012_v35 = vrot.slane %v2011_v29, 1  ;;  %v2023_v22 = vmul.f32 0.6931472, %v3159_v5  ;;  %v1923_v24 = vsel %vm1917_vm11, %v1922_v13, %v5445_v21 }
 0x434   : > { %2715 = vpush %v1849_v31  ;;  %vm2019_vm11 = vcmp.gt.f32.partialorder %v5515_v52, 5.0 }
 0x435   : > { %2717 = vpush %v1911_v33  ;;  %v2013_v36 = vmax.f32 %v2011_v29, %v2012_v35  ;;  %v2696_v29 = vld [vmem:[%s5339_s5 + $0x8] sm:$0xff]  ;;  %v2024_v37 = vadd.f32 5.0, %v2023_v22 }
 0x436   : > { %2719 = vpush %v1962_v34 }
 0x437   : > { %2721 = vpush %v2013_v36  ;;  %v2025_v12 = vsel %vm2019_vm11, %v2024_v37, %v5515_v52 }
 0x464   : > { %s2714_s6 = spop %2713 }
 0x465   : > { %p1772_p4 = scmp.gt.f32.partialorder %s2714_s6, 5.0  ;;  %s2716_s17 = spop %2715 }
 0x466   : > { %p1851_p10 = scmp.gt.f32.partialorder %s2716_s17, 5.0  ;;  %s5530_s28 = spop %2717 }
 0x467   : > { %s2760_s13 = scalar_select %p1772_p4, 1, 0 }
 0x468   : > { %s2811_s24 = scalar_select %p1772_p4, 0, 1 }
 0x469   : > { %v2761_v2 = vstv %s2760_s13  ;;  %s2769_s11 = scalar_select %p1851_p10, 1, 0 }
 0x46a   : > { %vm5534_vm3 = vcmp.ne.s32.totalorder %v2761_v2, 0  ;;  %v2766_v10 = vstv %s2811_s24  ;;  %s2812_s10 = scalar_select %p1851_p10, 0, 1 }
 0x46b   : > { %v2763_v8 = vsel %vm5534_vm3, %v1782_v0, 0  ;;  %vm2767_vm6 = vcmp.ne.s32.totalorder %v2766_v10, 0  ;;  %v2770_v14 = vstv %s2769_s11  ;;  %p1913_p3 = scmp.gt.f32.partialorder %s5530_s28, 5.0  ;;  %s2720_s3 = spop %2719 }
 0x46c   : > { %v2768_v16 = vsel %vm2767_vm6, %v5495_v47, %v2763_v8  ;;  %vm2771_vm13 = vcmp.ne.s32.totalorder %v2770_v14, 0  ;;  %v2775_v17 = vstv %s2812_s10  ;;  %p1964_p1 = scmp.gt.f32.partialorder %s2720_s3, 5.0  ;;  %s5547_s19 = spop %2721 }
 0x46d   : > { %v1798_v18 = vmul.f32 %v2768_v16, %v1797_v4  ;;  %v2772_v19 = vsel %vm2771_vm13, %v1861_v11, 0  ;;  %vm2776_vm3 = vcmp.ne.s32.totalorder %v2775_v17, 0  ;;  %s2778_s30 = scalar_select %p1913_p3, 1, 0 }
 0x46e   : > { %v2777_v47 = vsel %vm2776_vm3, %v5461_v30, %v2772_v19  ;;  %s2813_s9 = scalar_select %p1913_p3, 0, 1  ;;  %v1974_v30 = vsel %vm1968_vm2, %v1973_v15, %v5503_v50 }
 0x46f   : > { %v2779_v27 = vstv %s2778_s30  ;;  %v1799_v31 = vmul.f32 0.5, %v1798_v18  ;;  %v1869_v33 = vsel %vm1813_vm1, %v2777_v47, 0.0  ;;  %s2787_s4 = scalar_select %p1964_p1, 1, 0 }
 0x470   : > { %vm5561_vm6 = vcmp.ne.s32.totalorder %v2779_v27, 0  ;;  %v1870_v35 = vmul.f32 %v1869_v33, %v1805_v23  ;;  %v2784_v36 = vstv %s2813_s9  ;;  %s2814_s8 = scalar_select %p1964_p1, 0, 1 }
 0x471   : > { %v2781_v9 = vsel %vm5561_vm6, %v1923_v24, 0  ;;  %v1801_v39 = vsel %vm1744_vm7, %v1799_v31, 0.0  ;;  %vm2785_vm15 = vcmp.ne.s32.totalorder %v2784_v36, 0  ;;  %v2788_v40 = vstv %s2787_s4  ;;  %p2015_p5 = scmp.gt.f32.partialorder %s5547_s19, 5.0  ;;  %s6285_s6 = smov %s6284_s22 }
 0x472   : > { %v1807_v41 = vmul.f32 %v1805_v23, %v1801_v39  ;;  %v1871_v28 = vadd.f32 %v2696_v29, %v1870_v35  ;;  %vm2789_vm1 = vcmp.ne.s32.totalorder %v2788_v40, 0  ;;  %v2793_v42 = vstv %s2814_s8  ;;  %s5624_s17 = scalar_lea.sflag [#allocation4], %s1608_s2  ;;  %s3680_s28 = scalar_lea.vmem %s5619_s21, 640 }
 0x473   : > { %v2786_v43 = vsel %vm2785_vm15, %v5445_v21, %v2781_v9  ;;  %v2790_v45 = vsel %vm2789_vm1, %v1974_v30, 0  ;;  %vm2794_vm13 = vcmp.ne.s32.totalorder %v2793_v42, 0  ;;  %s2796_s12 = scalar_select %p2015_p5, 1, 0 }
 0x474   : > { %v1808_v46 = vadd.f32 %v1807_v41, %v1800_v20  ;;  %2697 = vst [vmem:[%s5339_s5 + $0x8] sm:$0xff] %v1871_v28  ;;  %v1931_v48 = vsel %vm1876_vm0, %v2786_v43, 0.0  ;;  %v2795_v49 = vsel %vm2794_vm13, %v5503_v50, %v2790_v45  ;;  %s2815_s25 = scalar_select %p2015_p5, 0, 1 }
 0x475   : > { %v1932_v21 = vmul.f32 %v1931_v48, %v1805_v23  ;;  %v2797_v51 = vstv %s2796_s12  ;;  %v1982_v53 = vsel %vm1938_vm8, %v2795_v49, 0.0  ;;  %p3681_p7 = scmp.ne.s32.totalorder %s5619_s21, %s3680_s28  ;;  %s4101_s13 = smov [#allocation31]  }
 0x476   : > { %1809 = vst [vmem:[%s5339_s5] sm:$0xff] %v1808_v46  ;;  %vm2798_vm12 = vcmp.ne.s32.totalorder %v2797_v51, 0  ;;  %v1983_v55 = vmul.f32 %v1982_v53, %v1805_v23  ;;  %v2802_v50 = vstv %s2815_s25  ;;  %s3684_s24 = sshll.u32 %s4101_s13, 4  ;;  %s3685_s24 = int_to_ptr.vmem [resolvable:$false] %s3684_s24 }
 0x477   : > { %v1933_v54 = vadd.f32 %v2699_v26, %v1932_v21  ;;  %v2799_v56 = vsel %vm2798_vm12, %v2025_v12, 0  ;;  %vm2803_vm0 = vcmp.ne.s32.totalorder %v2802_v50, 0  ;;  %p3682_p0 = pnand %p3681_p7, %p6286_p12  ;;  %s3686_s11 = scalar_lea.vmem %s3685_s24, 1280 }
 0x478   : > { %v1984_v32 = vadd.f32 %v2702_v6, %v1983_v55  ;;  %v2804_v57 = vsel %vm2803_vm0, %v5515_v52, %v2799_v56  ;;  %p3687_p8 = scmp.lt.s32.totalorder %s5619_s21, %s3685_s24  ;;  %p3688_p2 = scmp.lt.s32.totalorder %s3686_s11, %s3680_s28 }
 0x479   : > { %2700 = vst [vmem:[%s5339_s5 + $0x10] sm:$0xff] %v1933_v54  ;;  %v2033_v58 = vsel %vm1989_vm10, %v2804_v57, 0.0  ;;  %p3683_p9 = pneg %p3682_p0 }
 0x47a   : > { %2703 = vst [vmem:[%s5339_s5 + $0x18] sm:$0xff] %v1984_v32  ;;  %v2034_v59 = vmul.f32 %v2033_v58, %v1805_v23  ;;  %p3689_p6 = por %p3688_p2, %p3687_p8 }
 0x47c   : > { %v2035_v52 = vadd.f32 %v2705_v38, %v2034_v59  ;;  %p3690_p13 = pnand %p3689_p6, %p3683_p9 }
 0x47e   : > { %2706 = vst [vmem:[%s5339_s5 + $0x20] sm:$0xff] %v2035_v52 }
 0x47f   : > { %3693 = shalt.err (!%p3690_p13)
}
 0x480   : > { %s3694_s2 = scalar_lea.hbm %s5617_s27, 640  ;;  %s3698_s3 = scalar_lea.hbm %s6285_s6, 1280 }
 0x481   : > { %p3695_p11 = scmp.ne.s32.totalorder %s5617_s27, %s3694_s2  ;;  %p3699_p3 = scmp.lt.u32.totalorder %s5617_s27, %s6285_s6 }
 0x482   : > { %p3700_p1 = scmp.lt.u32.totalorder %s3698_s3, %s3694_s2  ;;  %p3702_p7 = scmp.lt.u32.totalorder %s3694_s2, %s5617_s27 }
 0x483   : > { %p3696_p4 = pnand %p3695_p11, %p6286_p12 }
 0x484   : > { %p3701_p5 = por %p3700_p1, %p3699_p3 }
 0x485   : > { %p3697_p10 = pneg %p3696_p4 }
 0x486   : > { %p3703_p0 = por %p3702_p7, %p3701_p5 }
 0x488   : > { %p3704_p9 = pnand %p3703_p0, %p3697_p10 }
 0x48a   : > { %3707 = shalt.err (!%p3704_p9)
}
 0x48b   : > { %s4102_s9 = smov 128   ;;  %s4103_s4 = smov 8  }
 0x48c   : > { %2805 = dma.vmem_to_hbm [thread:$0]  (%p6286_p12), %s5619_s21, 640, %s5617_s27, %s5624_s17, %s4102_s9, %s4102_s9, %s4103_s4  }
 0x48d PF: > { %s6287_s22 = sld [smem:[#allocation80_spill]]  ;;  %s6289_s12 = sld [smem:[#allocation51_spill]] }
 0x48e   : > { %s6290_s0 = sld [smem:[#allocation108_spill]] }
 0x493   : > { %s6288_s8 = smov %s6287_s22  ;;  %p2816_p8 = scmp.ge.s32.totalorder %s6287_s22, 2 }
 0x494   : > { %s2066_s25 = sand.u32 1, %s6289_s12   ;;  %p6291_p2 = scmp.ne.s32.totalorder %s6290_s0, 0 }
 0x495   : > { %s2067_s18 = scalar_lea.sflag [#allocation4], %s2066_s25 }
 0x496   : > { %p2808_p6 = pnand %p2816_p8, %p6291_p2 }
 0x498   : > { %3929 = dma.done.wait (!%p2808_p6), %s2067_s18, 640  }
 0x499   : > { %3931 = vsyncadd (!%p2808_p6), %s2067_s18, 4294966656  ;;  %s5936_s2 = sadd.s32 1, %s6288_s8   ;;  %s6292_s0 = sld [smem:[#allocation52_spill]] }
 0x49a   : > { %s6293_s30 = sld [smem:[#allocation53_spill]]  ;;  %s6294_s1 = sld [smem:[#allocation106_spill]] }
 0x49b   : > { %s6295_s21 = sld [smem:[#allocation55_spill]]  ;;  %s6296_s26 = sld [smem:[#allocation56_spill]] }
 0x49c   : > { %s6297_s22 = sld [smem:[#allocation105_spill]]  ;;  %s6298_s14 = sld [smem:[#allocation58_spill]] }
 0x49d   : > { %s6299_s29 = sld [smem:[#allocation64_spill]]  ;;  %s6301_s25 = sld [smem:[#allocation66_spill]] }
 0x49e   : > { %s6300_s24 = sld [smem:[#allocation103_spill]]  ;;  %s6302_s3 = sld [smem:[#allocation67_spill]] }
 0x49f   : > { %s6303_s27 = sld [smem:[#allocation101_spill]]  ;;  %s6304_s17 = sld [smem:[#allocation68_spill]] }
 0x4a0   : > { %s6305_s28 = sld [smem:[#allocation59_spill]]  ;;  %s6306_s13 = sld [smem:[#allocation99_spill]] }
 0x4a1   : > { %p5655_p12 = scmp.ge.s32.totalorder %s5936_s2, 10   ;;  %s6309_s19 = sld [smem:[#allocation60_spill]] }
 0x4a2   : > { %s6310_s18 = sld [smem:[#allocation69_spill]]  ;;  %6312 = sst [smem:[#allocation51_spill]] %s6294_s1 }
 0x4a3   : > { %s6307_s11 = scalar_select %p5655_p12, 1, 0 }
 0x4a4   : > { %s6311_s5 = sld [smem:[#allocation97_spill]]  ;;  %s6313_s10 = sld [smem:[#allocation70_spill]] }
 0x4a5   : > { %6308 = sst [smem:[#allocation68_spill]] %s6307_s11  ;;  %s6314_s9 = sld [smem:[#allocation71_spill]] }
 0x4a6   : > { %s6315_s1 = smov %s6296_s26  ;;  %s6316_s4 = sld [smem:[#allocation95_spill]] }
 0x4a7   : > { %s6317_s12 = sld [smem:[#allocation72_spill]]  ;;  %6318 = sst [smem:[#allocation52_spill]] %s6298_s14 }
 0x4a8   : > { %s6319_s2 = sld [smem:[#allocation61_spill]]  ;;  %s6321_s6 = sld [smem:[#allocation93_spill]] }
 0x4a9   : > { %6320 = sst [smem:[#allocation53_spill]] %s6299_s29  ;;  %s6322_s15 = sld [smem:[#allocation62_spill]] }
 0x4aa   : > { %6323 = sst [smem:[#allocation54_spill]] %s6301_s25  ;;  %s6324_s16 = sld [smem:[#allocation63_spill]] }
 0x4ab   : > { %6325 = sst [smem:[#allocation55_spill]] %s6302_s3  ;;  %s6326_s20 = sld [smem:[#allocation91_spill]] }
 0x4ac   : > { %6327 = sst [smem:[#allocation56_spill]] %s6303_s27  ;;  %s6328_s23 = sld [smem:[#allocation73_spill]] }
 0x4ad   : > { %6329 = sst [smem:[#allocation57_spill]] %s6304_s17  ;;  %s6332_s29 = smov %s6306_s13 }
 0x4ae   : > { %6330 = sst [smem:[#allocation58_spill]] %s6305_s28  ;;  %s6331_s8 = sld [smem:[#allocation90_spill]] }
 0x4af   : > { %s6333_s11 = sld [smem:[#allocation77_spill]]  ;;  %s6334_s14 = sld [smem:[#allocation78_spill]] }
 0x4b0   : > { %s6335_s25 = sld [smem:[#allocation79_spill]]  ;;  %s6336_s17 = smov %s6311_s5 }
 0x4b1   : > { %s6337_s3 = sld [smem:[#allocation82_spill]]  ;;  %6338 = sst [smem:[#allocation59_spill]] %s6313_s10 }
 0x4b2   : > { %s6339_s26 = sld [smem:[#allocation83_spill]]  ;;  %6340 = sst [smem:[#allocation60_spill]] %s6314_s9 }
 0x4b3   : > { %s6341_s27 = sld [smem:[#allocation86_spill]]  ;;  %6342 = sst [smem:[#allocation61_spill]] %s6316_s4 }
 0x4b4   : > { %s6343_s28 = sld [smem:[#allocation80_spill]]  ;;  %6344 = sst [smem:[#allocation62_spill]] %s6317_s12 }
 0x4b5   : > { %6346 = sst [smem:[#allocation63_spill]] %s6319_s2  ;;  %s6352_s9 = smov %s4050_s7 }
 0x4b6   : > { %6347 = sst [smem:[#allocation64_spill]] %s6321_s6  ;;  %s6353_s7 = smov %s6331_s8 }
 0x4b7   : > { %6348 = sst [smem:[#allocation65_spill]] %s6322_s15  ;;  %s6354_s5 = smov %s6333_s11 }
 0x4b8   : > { %6349 = sst [smem:[#allocation66_spill]] %s6324_s16  ;;  %s6355_s12 = smov %s6334_s14 }
 0x4b9   : > { %6350 = sst [smem:[#allocation67_spill]] %s6326_s20  ;;  %s6357_s8 = smov %s6337_s3 }
 0x4ba   : > { %6351 = sst [smem:[#allocation68_spill]] %s6328_s23  ;;  %s6360_s15 = sadd.s32 1, %s6343_s28  }
 0x4bb   : > { %6356 = sst [smem:[#allocation69_spill]] %s6335_s25  ;;  %61 = sbr.rel (!%p5655_p12) target bundleno = 72 (0x48), region = 397 }
 0x4bc   : > { %6358 = sst [smem:[#allocation70_spill]] %s6339_s26 }
 0x4bd   : > { %6359 = sst [smem:[#allocation71_spill]] %s6341_s27 }
 0x4be   : > { %6361 = sst [smem:[#allocation72_spill]] %s6360_s15 }
 0x4c2   :  { %2072 = vsyncpa [#allocation3], 1 }
 0x4c3   :  { %2074 = vsyncpa [#allocation3 + $0x1], 1 }
 0x4c4   :  { %2075 = vsyncpa [#allocation6], 1 }
 0x4c5   :  { %2077 = vsyncpa [#allocation6 + $0x1], 1 }
 0x4c6   :  { %2078 = vsyncpa [#allocation9], 1 }
 0x4c7   :  { %2080 = vsyncpa [#allocation9 + $0x1], 1 }
 0x4c8   :  { %2081 = vsyncpa [#allocation12], 1 }
 0x4c9   :  { %2083 = vsyncpa [#allocation12 + $0x1], 1 }
 0x4ca   :  { %2084 = vsyncpa [#allocation15], 1 }
 0x4cb   :  { %2086 = vsyncpa [#allocation15 + $0x1], 1 }
 0x4cc   :  { %2087 = vsyncpa [#allocation18], 1 }
 0x4cd   :  { %2089 = vsyncpa [#allocation18 + $0x1], 1 }
 0x4ce   :  { %2090 = vsyncpa [#allocation21], 1 }
 0x4cf   :  { %2092 = vsyncpa [#allocation21 + $0x1], 1 }
 0x4d0   :  { %2093 = vsyncpa [#allocation24], 1 }
 0x4d1   :  { %2095 = vsyncpa [#allocation24 + $0x1], 1 }
 0x4d2   :  { %2096 = vsyncpa [#allocation27], 1 }
 0x4d3   :  { %2098 = vsyncpa [#allocation27 + $0x1], 1 }
 0x4d4   :  { %2099 = vsyncpa [#allocation30], 1 }
 0x4d5   :  { %2101 = vsyncpa [#allocation30 + $0x1], 1 }
 0x4d6   :  { %2102 = vsyncpa [#allocation4], 1 }
 0x4d7   :  { %2104 = vsyncpa [#allocation4 + $0x1], 1 }

</bundles_post_ra>
